<compile_context>
chip_gen: v7x
topology: tpu7x:2x2x1
jax: 0.10.0
libtpu: 0.0.40
codegen_flags: <defaults>
</compile_context>

<pallas_src>
import functools
import math

import numpy as np
import jax
import jax.numpy as jnp
from jax.experimental import pallas as pl
from jax.experimental.pallas import tpu as pltpu


# ----------------------------- kernel helpers (traced inside kernel) ------------------


def _layernorm(z, w, b, eps=1e-5):
    mu = jnp.mean(z, axis=-1, keepdims=True)
    var = jnp.mean((z - mu) ** 2, axis=-1, keepdims=True)
    return (z - mu) * jax.lax.rsqrt(var + eps) * w + b


# --------------------------------- the Pallas kernel ----------------------------------


def trans_kernel(x_ref, pe_ref, w_fc1_ref,
                 wq_ref, bq_ref, wk_ref, bk_ref, wv_ref, bv_ref,
                 wo_ref, bo_ref,
                 ln1w_ref, ln1b_ref, w1_ref, b1_ref, w2_ref, b2_ref,
                 ln2w_ref, ln2b_ref, fnw_ref, fnb_ref,
                 w_fc2_ref, w_score_ref, out_ref):
    TB, S, F = x_ref.shape
    L, H, D, hd = wq_ref.shape
    N = TB * S
    f32 = jnp.float32
    cd = wq_ref.dtype                                   # compute dtype for MXU inputs (bf16)

    # ---- fc1 (bias=False, sqrt(D) pre-folded) + relu, then positional-encoding add
    x = x_ref[...].reshape(N, F)
    h = jnp.maximum(jnp.dot(x.astype(w_fc1_ref.dtype), w_fc1_ref[...],
                            preferred_element_type=f32), 0.0)            # (N, D) f32
    h = (h.reshape(TB, S, D) + pe_ref[...]).reshape(N, D)

    # ---- num_layers x post-norm TransformerEncoderLayer (relu FFN)
    # TODO(synk): dropout (p=0.1 inside the encoder, p=dropout in the head) is
    # implemented as identity (eval-mode semantics).
    for l in range(L):
        hb = h.astype(cd)                               # cast once per layer for projections
        attn = None
        for hh in range(H):                             # small H, statically unrolled
            # per-head projections straight into (·, hd) -> no head-dim relayouts
            q = (jnp.dot(hb, wq_ref[l, hh], preferred_element_type=f32)
                 + bq_ref[l, hh]).reshape(TB, S, hd)    # 1/sqrt(hd) pre-folded into wq/bq
            k = (jnp.dot(hb, wk_ref[l, hh], preferred_element_type=f32)
                 + bk_ref[l, hh]).reshape(TB, S, hd)
            v = (jnp.dot(hb, wv_ref[l, hh], preferred_element_type=f32)
                 + bv_ref[l, hh]).reshape(TB, S, hd)

            s = jnp.einsum('bqe,bke->bqk', q.astype(cd), k.astype(cd),
                           preferred_element_type=f32)                   # (TB, S, S)
            s = s - jnp.max(s, axis=-1, keepdims=True)
            p = jnp.exp(s)
            p = p * pl.reciprocal(jnp.sum(p, axis=-1, keepdims=True), approx=True)
            ctx = jnp.einsum('bqk,bke->bqe', p.astype(cd), v.astype(cd),
                             preferred_element_type=f32)                 # (TB, S, hd)

            # fold this head's output projection in by accumulation (no concat)
            contrib = jnp.dot(ctx.reshape(N, hd).astype(cd), wo_ref[l, hh],
                              preferred_element_type=f32)                # (N, D)
            attn = contrib if attn is None else attn + contrib
        attn = attn + bo_ref[l]
        h = _layernorm(h + attn, ln1w_ref[l], ln1b_ref[l])

        # -- feed-forward
        ff = jnp.maximum(jnp.dot(h.astype(cd), w1_ref[l],
                                 preferred_element_type=f32) + b1_ref[l], 0.0)
        ff = jnp.dot(ff.astype(cd), w2_ref[l],
                     preferred_element_type=f32) + b2_ref[l]
        h = _layernorm(h + ff, ln2w_ref[l], ln2b_ref[l])

    # ---- last timestep first, then final encoder LayerNorm (per-row -> equivalent)
    last = h.reshape(TB, S, D)[:, S - 1, :]                              # (TB, D)
    last = _layernorm(last, fnw_ref[...], fnb_ref[...])

    # ---- fc2 (bias=False) + relu; score_layer as a VPU reduction (no tail MXU op)
    z = jnp.maximum(jnp.dot(last.astype(w_fc2_ref.dtype), w_fc2_ref[...],
                            preferred_element_type=f32), 0.0)            # (TB, D//2)
    score = jnp.sum(z * w_score_ref[...], axis=-1, keepdims=True)        # (TB, 1)
    out_ref[...] = score.reshape(1, 1, TB).astype(out_ref.dtype)         # lane-dense block


# -------------------------- one-time parameter preparation ----------------------------


def prepare_params(params, num_heads, compute_dtype=jnp.bfloat16):
    """Hoisted, one-time layout/dtype prep of the torch-style params (outside the kernel)."""
    D = params['w_fc1'].shape[0]
    L = params['ipw'].shape[0]
    H = num_heads
    hd = D // H
    scale = 1.0 / math.sqrt(hd)
    cd = compute_dtype

    def to_heads_in(w):   # torch (L, D_out, D_in) -> (L, H, D_in, hd)
        return jnp.swapaxes(w, 1, 2).reshape(L, D, H, hd).transpose(0, 2, 1, 3)

    def to_heads_bias(b):  # (L, 1, D_out) -> (L, H, 1, hd)
        return b.reshape(L, 1, H, hd).transpose(0, 2, 1, 3)

    ipw, ipb = params['ipw'], params['ipb']
    return dict(
        pe=params['pe'],                                                # (S, D) f32
        w_fc1=(params['w_fc1'] * math.sqrt(D)).T.astype(cd),            # sqrt(D) folded, (F, D)
        wq=(to_heads_in(ipw[:, :D, :]) * scale).astype(cd),             # (L, H, D, hd)
        bq=to_heads_bias(ipb[:, :, :D]) * scale,                        # (L, H, 1, hd) f32
        wk=to_heads_in(ipw[:, D:2 * D, :]).astype(cd),
        bk=to_heads_bias(ipb[:, :, D:2 * D]),
        wv=to_heads_in(ipw[:, 2 * D:, :]).astype(cd),
        bv=to_heads_bias(ipb[:, :, 2 * D:]),
        wo=jnp.swapaxes(params['opw'], 1, 2).reshape(L, H, hd, D).astype(cd),  # (L, H, hd, D)
        bo=params['opb'],
        ln1w=params['ln1w'], ln1b=params['ln1b'],
        w1=jnp.swapaxes(params['l1w'], 1, 2).astype(cd), b1=params['l1b'],
        w2=jnp.swapaxes(params['l2w'], 1, 2).astype(cd), b2=params['l2b'],
        ln2w=params['ln2w'], ln2b=params['ln2b'],
        fnw=params['fnw'], fnb=params['fnb'],
        w_fc2=params['w_fc2'].T.astype(cd),                             # (D, D//2)
        w_score=params['w_score'],                                      # (1, D//2) f32 row
    )


# ------------------------------------ wrapper -----------------------------------------


@jax.jit
def trans_forward(x, prepped):
    B, S, Fin = x.shape

    # Batch tiling: TB items per grid step, targeting ~128 token rows per step, but
    # keep >= 2 grid steps so both v7x TensorCores get work (harmless on v5e/v6e).
    TB = max(1, min(B, 128 // max(S, 1)))
    nsteps = -(-B // TB)
    if nsteps < 2 and B > 1:
        nsteps = 2
        TB = -(-B // nsteps)
    b_pad = nsteps * TB
    if b_pad != B:
        x = jnp.pad(x, ((0, b_pad - B), (0, 0), (0, 0)))

    p = prepped
    args = (x, p['pe'], p['w_fc1'],
            p['wq'], p['bq'], p['wk'], p['bk'], p['wv'], p['bv'],
            p['wo'], p['bo'],
            p['ln1w'], p['ln1b'], p['w1'], p['b1'], p['w2'], p['b2'],
            p['ln2w'], p['ln2b'], p['fnw'], p['fnb'],
            p['w_fc2'], p['w_score'])

    def bcast_spec(a):
        nd = a.ndim
        return pl.BlockSpec(a.shape, lambda b, _nd=nd: (0,) * _nd)      # fetched once

    in_specs = [pl.BlockSpec((TB, S, Fin), lambda b: (b, 0, 0))]
    in_specs += [bcast_spec(a) for a in args[1:]]

    out = pl.pallas_call(
        trans_kernel,
        out_shape=jax.ShapeDtypeStruct((nsteps, 1, TB), jnp.float32),
        grid=(nsteps,),
        in_specs=in_specs,
        out_specs=pl.BlockSpec((1, 1, TB), lambda b: (b, 0, 0)),
        compiler_params=pltpu.CompilerParams(
            dimension_semantics=("parallel",)),
    )(*args)
    return out.reshape(b_pad, 1)[:B]


# ---------------------------- deterministic parameter init ----------------------------


def positional_encoding(d_model, max_len):
    pe = np.zeros((max_len, d_model), dtype=np.float32)
    position = np.arange(max_len, dtype=np.float32)[:, None]
    div = np.exp(np.arange(0, d_model, 2, dtype=np.float32)
                 * (-math.log(10000.0) / d_model))
    pe[:, 0::2] = np.sin(position * div)
    if d_model % 2 != 0:
        pe[:, 1::2] = np.cos(position * div[:-1])
    else:
        pe[:, 1::2] = np.cos(position * div)
    return jnp.asarray(pe)


def init_params(seed, input_size, num_heads, dim_model, dim_ff, seq_len, num_layers):
    key = jax.random.PRNGKey(seed)
    ks = iter(jax.random.split(key, 32))
    D = dim_model

    def w(shape, fan_in, scl=1.0):
        return jax.random.normal(next(ks), shape, jnp.float32) * (scl / math.sqrt(fan_in))

    p = {}
    p['w_fc1'] = w((D, input_size), input_size)
    p['pe'] = positional_encoding(D, seq_len + 1)[:seq_len]          # (S, D)
    p['ipw'] = w((num_layers, 3 * D, D), D)
    p['ipb'] = w((num_layers, 1, 3 * D), D, 0.1)
    p['opw'] = w((num_layers, D, D), D)
    p['opb'] = w((num_layers, 1, D), D, 0.1)
    p['ln1w'] = jnp.ones((num_layers, 1, D), jnp.float32)
    p['ln1b'] = jnp.zeros((num_layers, 1, D), jnp.float32)
    p['l1w'] = w((num_layers, dim_ff, D), D)
    p['l1b'] = w((num_layers, 1, dim_ff), D, 0.1)
    p['l2w'] = w((num_layers, D, dim_ff), dim_ff)
    p['l2b'] = w((num_layers, 1, D), dim_ff, 0.1)
    p['ln2w'] = jnp.ones((num_layers, 1, D), jnp.float32)
    p['ln2b'] = jnp.zeros((num_layers, 1, D), jnp.float32)
    p['fnw'] = jnp.ones((1, D), jnp.float32)
    p['fnb'] = jnp.zeros((1, D), jnp.float32)
    p['w_fc2'] = w((D // 2, D), D)
    p['w_score'] = w((1, D // 2), D // 2)
    return p


# ------------------------------ pure-JAX reference ------------------------------------


def trans_reference(x, p, num_heads):
    B, S, F = x.shape
    D = p['w_fc1'].shape[0]
    L = p['ipw'].shape[0]
    hd = D // num_heads

    def dense(z, w, b=None):
        y = z @ w.T
        return y if b is None else y + b

    def ln(z, w, b, eps=1e-5):
        mu = z.mean(-1, keepdims=True)
        var = ((z - mu) ** 2).mean(-1, keepdims=True)
        return (z - mu) / jnp.sqrt(var + eps) * w + b

    h = jnp.maximum(dense(x.reshape(B * S, F), p['w_fc1']), 0.0)
    h = h * math.sqrt(D)
    h = (h.reshape(B, S, D) + p['pe'][None]).reshape(B * S, D)
    for l in range(L):
        qkv = dense(h, p['ipw'][l], p['ipb'][l])
        q = qkv[:, :D].reshape(B, S, D)
        k = qkv[:, D:2 * D].reshape(B, S, D)
        v = qkv[:, 2 * D:].reshape(B, S, D)
        heads = []
        for hh in range(num_heads):
            sl = slice(hh * hd, (hh + 1) * hd)
            s = jnp.einsum('bqe,bke->bqk', q[..., sl] / math.sqrt(hd), k[..., sl])
            pr = jax.nn.softmax(s, axis=-1)
            heads.append(jnp.einsum('bqk,bke->bqe', pr, v[..., sl]))
        attn = dense(jnp.concatenate(heads, -1).reshape(B * S, D),
                     p['opw'][l], p['opb'][l])
        h = ln(h + attn, p['ln1w'][l], p['ln1b'][l])
        ff = jnp.maximum(dense(h, p['l1w'][l], p['l1b'][l]), 0.0)
        ff = dense(ff, p['l2w'][l], p['l2b'][l])
        h = ln(h + ff, p['ln2w'][l], p['ln2b'][l])
    h = ln(h, p['fnw'], p['fnb'])
    last = h.reshape(B, S, D)[:, -1, :]
    z = jnp.maximum(dense(last, p['w_fc2']), 0.0)
    return dense(z, p['w_score'])


# ----------------------------------------- main ---------------------------------------

if __name__ == "__main__":
    # small config consistent with the module's forward:
    # x: (batch=2, seq_len=8, input_size=16); dim_model=32, heads=4, dim_ff=64, layers=2
    B, S, F = 2, 8, 16
    D, H, FF, L = 32, 4, 64, 2

    params = init_params(0, F, H, D, FF, S, L)
    prepped = prepare_params(params, H)      # one-time layout/dtype prep (hoisted)
    x = jax.random.normal(jax.random.PRNGKey(0), (B, S, F), jnp.float32)

    # TODO(synk): only the addi_x=None path is implemented; the embeddim/add_xdim
    # auxiliary-attention branch of the reference code is inconsistent (mixed 2D/3D
    # transposes) and is not reproduced.
    out = jax.block_until_ready(trans_forward(x, prepped))

    ref = trans_reference(x, params, H)
    assert out.shape == (B, 1)
    assert bool(jnp.all(jnp.isfinite(out)))
    assert bool(jnp.allclose(out, ref, atol=5e-2, rtol=5e-2))
    print("KERNEL_OK")
</pallas_src>

<mosaic_0001>
module attributes {stable_mosaic.version = 11 : i64} {
  func.func @trans_kernel(%arg0: i32, %arg1: memref<1x8x16xf32, #tpu.memory_space<vmem>>, %arg2: memref<8x32xf32, #tpu.memory_space<vmem>>, %arg3: memref<16x32xbf16, #tpu.memory_space<vmem>>, %arg4: memref<2x4x32x8xbf16, #tpu.memory_space<vmem>>, %arg5: memref<2x4x1x8xf32, #tpu.memory_space<vmem>>, %arg6: memref<2x4x32x8xbf16, #tpu.memory_space<vmem>>, %arg7: memref<2x4x1x8xf32, #tpu.memory_space<vmem>>, %arg8: memref<2x4x32x8xbf16, #tpu.memory_space<vmem>>, %arg9: memref<2x4x1x8xf32, #tpu.memory_space<vmem>>, %arg10: memref<2x4x8x32xbf16, #tpu.memory_space<vmem>>, %arg11: memref<2x1x32xf32, #tpu.memory_space<vmem>>, %arg12: memref<2x1x32xf32, #tpu.memory_space<vmem>>, %arg13: memref<2x1x32xf32, #tpu.memory_space<vmem>>, %arg14: memref<2x32x64xbf16, #tpu.memory_space<vmem>>, %arg15: memref<2x1x64xf32, #tpu.memory_space<vmem>>, %arg16: memref<2x64x32xbf16, #tpu.memory_space<vmem>>, %arg17: memref<2x1x32xf32, #tpu.memory_space<vmem>>, %arg18: memref<2x1x32xf32, #tpu.memory_space<vmem>>, %arg19: memref<2x1x32xf32, #tpu.memory_space<vmem>>, %arg20: memref<1x32xf32, #tpu.memory_space<vmem>>, %arg21: memref<1x32xf32, #tpu.memory_space<vmem>>, %arg22: memref<32x16xbf16, #tpu.memory_space<vmem>>, %arg23: memref<1x16xf32, #tpu.memory_space<vmem>>, %arg24: memref<1x1x1xf32, #tpu.memory_space<vmem>>) attributes {dimension_semantics = [#tpu.dimension_semantics<parallel>], iteration_bounds = array<i64: 2>, scalar_prefetch = 0 : i64, scratch_operands = 0 : i64, tpu.core_type = #tpu.core_type<tc>, window_params = [{transform_indices = @transform_0, window_bounds = array<i64: 1, 8, 16>}, {pipeline_mode = #tpu.pipeline_mode<synchronous>, transform_indices = @transform_1, window_bounds = array<i64: 8, 32>}, {pipeline_mode = #tpu.pipeline_mode<synchronous>, transform_indices = @transform_2, window_bounds = array<i64: 16, 32>}, {pipeline_mode = #tpu.pipeline_mode<synchronous>, transform_indices = @transform_3, window_bounds = array<i64: 2, 4, 32, 8>}, {pipeline_mode = #tpu.pipeline_mode<synchronous>, transform_indices = @transform_4, window_bounds = array<i64: 2, 4, 1, 8>}, {pipeline_mode = #tpu.pipeline_mode<synchronous>, transform_indices = @transform_5, window_bounds = array<i64: 2, 4, 32, 8>}, {pipeline_mode = #tpu.pipeline_mode<synchronous>, transform_indices = @transform_6, window_bounds = array<i64: 2, 4, 1, 8>}, {pipeline_mode = #tpu.pipeline_mode<synchronous>, transform_indices = @transform_7, window_bounds = array<i64: 2, 4, 32, 8>}, {pipeline_mode = #tpu.pipeline_mode<synchronous>, transform_indices = @transform_8, window_bounds = array<i64: 2, 4, 1, 8>}, {pipeline_mode = #tpu.pipeline_mode<synchronous>, transform_indices = @transform_9, window_bounds = array<i64: 2, 4, 8, 32>}, {pipeline_mode = #tpu.pipeline_mode<synchronous>, transform_indices = @transform_10, window_bounds = array<i64: 2, 1, 32>}, {pipeline_mode = #tpu.pipeline_mode<synchronous>, transform_indices = @transform_11, window_bounds = array<i64: 2, 1, 32>}, {pipeline_mode = #tpu.pipeline_mode<synchronous>, transform_indices = @transform_12, window_bounds = array<i64: 2, 1, 32>}, {pipeline_mode = #tpu.pipeline_mode<synchronous>, transform_indices = @transform_13, window_bounds = array<i64: 2, 32, 64>}, {pipeline_mode = #tpu.pipeline_mode<synchronous>, transform_indices = @transform_14, window_bounds = array<i64: 2, 1, 64>}, {pipeline_mode = #tpu.pipeline_mode<synchronous>, transform_indices = @transform_15, window_bounds = array<i64: 2, 64, 32>}, {pipeline_mode = #tpu.pipeline_mode<synchronous>, transform_indices = @transform_16, window_bounds = array<i64: 2, 1, 32>}, {pipeline_mode = #tpu.pipeline_mode<synchronous>, transform_indices = @transform_17, window_bounds = array<i64: 2, 1, 32>}, {pipeline_mode = #tpu.pipeline_mode<synchronous>, transform_indices = @transform_18, window_bounds = array<i64: 2, 1, 32>}, {pipeline_mode = #tpu.pipeline_mode<synchronous>, transform_indices = @transform_19, window_bounds = array<i64: 1, 32>}, {pipeline_mode = #tpu.pipeline_mode<synchronous>, transform_indices = @transform_20, window_bounds = array<i64: 1, 32>}, {pipeline_mode = #tpu.pipeline_mode<synchronous>, transform_indices = @transform_21, window_bounds = array<i64: 32, 16>}, {pipeline_mode = #tpu.pipeline_mode<synchronous>, transform_indices = @transform_22, window_bounds = array<i64: 1, 16>}, {transform_indices = @transform_23, window_bounds = array<i64: 1, 1, 1>}]} {
    %c0 = arith.constant 0 : index
    %c0_0 = arith.constant 0 : index
    %c0_1 = arith.constant 0 : index
    %0 = vector.load %arg1[%c0, %c0_0, %c0_1] : memref<1x8x16xf32, #tpu.memory_space<vmem>>, vector<1x8x16xf32>
    %1 = vector.shape_cast %0 : vector<1x8x16xf32> to vector<8x16xf32>
    %2 = arith.truncf %1 : vector<8x16xf32> to vector<8x16xbf16>
    %c0_2 = arith.constant 0 : index
    %c0_3 = arith.constant 0 : index
    %3 = vector.load %arg3[%c0_2, %c0_3] : memref<16x32xbf16, #tpu.memory_space<vmem>>, vector<16x32xbf16>
    %cst = arith.constant dense<0.000000e+00> : vector<8x32xf32>
    %4 = tpu.matmul %2, %3, %cst {dimension_numbers = #tpu.dot_dimension_numbers<[1], [0], [0], [1], [0, 0, 1, 1], [], []>} : vector<8x16xbf16>, vector<16x32xbf16>, vector<8x32xf32> -> vector<8x32xf32>
    %cst_4 = arith.constant 0.000000e+00 : f32
    %5 = vector.broadcast %cst_4 : f32 to vector<8x32xf32>
    %6 = arith.maximumf %4, %5 : vector<8x32xf32>
    %7 = vector.shape_cast %6 : vector<8x32xf32> to vector<1x8x32xf32>
    %c0_5 = arith.constant 0 : index
    %c0_6 = arith.constant 0 : index
    %8 = vector.load %arg2[%c0_5, %c0_6] : memref<8x32xf32, #tpu.memory_space<vmem>>, vector<8x32xf32>
    %9 = vector.shape_cast %8 : vector<8x32xf32> to vector<1x8x32xf32>
    %10 = arith.addf %7, %9 : vector<1x8x32xf32>
    %11 = vector.shape_cast %10 : vector<1x8x32xf32> to vector<8x32xf32>
    %12 = arith.truncf %11 : vector<8x32xf32> to vector<8x32xbf16>
    %c0_7 = arith.constant 0 : index
    %c0_8 = arith.constant 0 : index
    %c0_9 = arith.constant 0 : index
    %c0_10 = arith.constant 0 : index
    %13 = vector.load %arg4[%c0_7, %c0_8, %c0_9, %c0_10] : memref<2x4x32x8xbf16, #tpu.memory_space<vmem>>, vector<1x1x32x8xbf16>
    %14 = vector.shape_cast %13 : vector<1x1x32x8xbf16> to vector<32x8xbf16>
    %cst_11 = arith.constant dense<0.000000e+00> : vector<8x8xf32>
    %15 = tpu.matmul %12, %14, %cst_11 {dimension_numbers = #tpu.dot_dimension_numbers<[1], [0], [0], [1], [0, 0, 1, 1], [], []>} : vector<8x32xbf16>, vector<32x8xbf16>, vector<8x8xf32> -> vector<8x8xf32>
    %c0_12 = arith.constant 0 : index
    %c0_13 = arith.constant 0 : index
    %c0_14 = arith.constant 0 : index
    %c0_15 = arith.constant 0 : index
    %16 = vector.load %arg5[%c0_12, %c0_13, %c0_14, %c0_15] : memref<2x4x1x8xf32, #tpu.memory_space<vmem>>, vector<1x1x1x8xf32>
    %17 = vector.shape_cast %16 : vector<1x1x1x8xf32> to vector<1x8xf32>
    %18 = vector.broadcast %17 : vector<1x8xf32> to vector<8x8xf32>
    %19 = arith.addf %15, %18 : vector<8x8xf32>
    %20 = vector.shape_cast %19 : vector<8x8xf32> to vector<1x8x8xf32>
    %c0_16 = arith.constant 0 : index
    %c0_17 = arith.constant 0 : index
    %c0_18 = arith.constant 0 : index
    %c0_19 = arith.constant 0 : index
    %21 = vector.load %arg6[%c0_16, %c0_17, %c0_18, %c0_19] : memref<2x4x32x8xbf16, #tpu.memory_space<vmem>>, vector<1x1x32x8xbf16>
    %22 = vector.shape_cast %21 : vector<1x1x32x8xbf16> to vector<32x8xbf16>
    %cst_20 = arith.constant dense<0.000000e+00> : vector<8x8xf32>
    %23 = tpu.matmul %12, %22, %cst_20 {dimension_numbers = #tpu.dot_dimension_numbers<[1], [0], [0], [1], [0, 0, 1, 1], [], []>} : vector<8x32xbf16>, vector<32x8xbf16>, vector<8x8xf32> -> vector<8x8xf32>
    %c0_21 = arith.constant 0 : index
    %c0_22 = arith.constant 0 : index
    %c0_23 = arith.constant 0 : index
    %c0_24 = arith.constant 0 : index
    %24 = vector.load %arg7[%c0_21, %c0_22, %c0_23, %c0_24] : memref<2x4x1x8xf32, #tpu.memory_space<vmem>>, vector<1x1x1x8xf32>
    %25 = vector.shape_cast %24 : vector<1x1x1x8xf32> to vector<1x8xf32>
    %26 = vector.broadcast %25 : vector<1x8xf32> to vector<8x8xf32>
    %27 = arith.addf %23, %26 : vector<8x8xf32>
    %28 = vector.shape_cast %27 : vector<8x8xf32> to vector<1x8x8xf32>
    %c0_25 = arith.constant 0 : index
    %c0_26 = arith.constant 0 : index
    %c0_27 = arith.constant 0 : index
    %c0_28 = arith.constant 0 : index
    %29 = vector.load %arg8[%c0_25, %c0_26, %c0_27, %c0_28] : memref<2x4x32x8xbf16, #tpu.memory_space<vmem>>, vector<1x1x32x8xbf16>
    %30 = vector.shape_cast %29 : vector<1x1x32x8xbf16> to vector<32x8xbf16>
    %cst_29 = arith.constant dense<0.000000e+00> : vector<8x8xf32>
    %31 = tpu.matmul %12, %30, %cst_29 {dimension_numbers = #tpu.dot_dimension_numbers<[1], [0], [0], [1], [0, 0, 1, 1], [], []>} : vector<8x32xbf16>, vector<32x8xbf16>, vector<8x8xf32> -> vector<8x8xf32>
    %c0_30 = arith.constant 0 : index
    %c0_31 = arith.constant 0 : index
    %c0_32 = arith.constant 0 : index
    %c0_33 = arith.constant 0 : index
    %32 = vector.load %arg9[%c0_30, %c0_31, %c0_32, %c0_33] : memref<2x4x1x8xf32, #tpu.memory_space<vmem>>, vector<1x1x1x8xf32>
    %33 = vector.shape_cast %32 : vector<1x1x1x8xf32> to vector<1x8xf32>
    %34 = vector.broadcast %33 : vector<1x8xf32> to vector<8x8xf32>
    %35 = arith.addf %31, %34 : vector<8x8xf32>
    %36 = vector.shape_cast %35 : vector<8x8xf32> to vector<1x8x8xf32>
    %37 = arith.truncf %20 : vector<1x8x8xf32> to vector<1x8x8xbf16>
    %38 = arith.truncf %28 : vector<1x8x8xf32> to vector<1x8x8xbf16>
    "tpu.trace_start"() <{level = 10 : i32, message = "bqe,bke->bqk"}> : () -> ()
    %cst_34 = arith.constant dense<0.000000e+00> : vector<1x8x8xf32>
    %39 = tpu.matmul %37, %38, %cst_34 {dimension_numbers = #tpu.dot_dimension_numbers<[2], [2], [1], [1], [0, 0, 0, 1, 1, 1], [0], [0]>} : vector<1x8x8xbf16>, vector<1x8x8xbf16>, vector<1x8x8xf32> -> vector<1x8x8xf32>
    "tpu.trace_stop"() : () -> ()
    %cst_35 = arith.constant dense<0xFF800000> : vector<1x8xf32>
    %40 = vector.multi_reduction <maximumf>, %39, %cst_35 [2] : vector<1x8x8xf32> to vector<1x8xf32>
    %41 = vector.shape_cast %40 : vector<1x8xf32> to vector<1x8x1xf32>
    %42 = vector.broadcast %41 : vector<1x8x1xf32> to vector<1x8x8xf32>
    %43 = arith.subf %39, %42 : vector<1x8x8xf32>
    %44 = math.exp %43 : vector<1x8x8xf32>
    %cst_36 = arith.constant dense<0.000000e+00> : vector<1x8xf32>
    %45 = vector.multi_reduction <add>, %44, %cst_36 [2] : vector<1x8x8xf32> to vector<1x8xf32>
    %46 = vector.shape_cast %45 : vector<1x8xf32> to vector<1x8x1xf32>
    %47 = tpu.reciprocal %46 {approx = true} : vector<1x8x1xf32> -> vector<1x8x1xf32>
    %48 = vector.broadcast %47 : vector<1x8x1xf32> to vector<1x8x8xf32>
    %49 = arith.mulf %44, %48 : vector<1x8x8xf32>
    %50 = arith.truncf %49 : vector<1x8x8xf32> to vector<1x8x8xbf16>
    %51 = arith.truncf %36 : vector<1x8x8xf32> to vector<1x8x8xbf16>
    "tpu.trace_start"() <{level = 10 : i32, message = "bqk,bke->bqe"}> : () -> ()
    %cst_37 = arith.constant dense<0.000000e+00> : vector<1x8x8xf32>
    %52 = tpu.matmul %50, %51, %cst_37 {dimension_numbers = #tpu.dot_dimension_numbers<[2], [1], [1], [2], [0, 0, 0, 1, 1, 2], [0], [0]>} : vector<1x8x8xbf16>, vector<1x8x8xbf16>, vector<1x8x8xf32> -> vector<1x8x8xf32>
    "tpu.trace_stop"() : () -> ()
    %53 = vector.shape_cast %52 : vector<1x8x8xf32> to vector<8x8xf32>
    %54 = arith.truncf %53 : vector<8x8xf32> to vector<8x8xbf16>
    %c0_38 = arith.constant 0 : index
    %c0_39 = arith.constant 0 : index
    %c0_40 = arith.constant 0 : index
    %c0_41 = arith.constant 0 : index
    %55 = vector.load %arg10[%c0_38, %c0_39, %c0_40, %c0_41] : memref<2x4x8x32xbf16, #tpu.memory_space<vmem>>, vector<1x1x8x32xbf16>
    %56 = vector.shape_cast %55 : vector<1x1x8x32xbf16> to vector<8x32xbf16>
    %cst_42 = arith.constant dense<0.000000e+00> : vector<8x32xf32>
    %57 = tpu.matmul %54, %56, %cst_42 {dimension_numbers = #tpu.dot_dimension_numbers<[1], [0], [0], [1], [0, 0, 1, 1], [], []>} : vector<8x8xbf16>, vector<8x32xbf16>, vector<8x32xf32> -> vector<8x32xf32>
    %c0_43 = arith.constant 0 : index
    %c1 = arith.constant 1 : index
    %c0_44 = arith.constant 0 : index
    %c0_45 = arith.constant 0 : index
    %58 = vector.load %arg4[%c0_43, %c1, %c0_44, %c0_45] : memref<2x4x32x8xbf16, #tpu.memory_space<vmem>>, vector<1x1x32x8xbf16>
    %59 = vector.shape_cast %58 : vector<1x1x32x8xbf16> to vector<32x8xbf16>
    %cst_46 = arith.constant dense<0.000000e+00> : vector<8x8xf32>
    %60 = tpu.matmul %12, %59, %cst_46 {dimension_numbers = #tpu.dot_dimension_numbers<[1], [0], [0], [1], [0, 0, 1, 1], [], []>} : vector<8x32xbf16>, vector<32x8xbf16>, vector<8x8xf32> -> vector<8x8xf32>
    %c0_47 = arith.constant 0 : index
    %c1_48 = arith.constant 1 : index
    %c0_49 = arith.constant 0 : index
    %c0_50 = arith.constant 0 : index
    %61 = vector.load %arg5[%c0_47, %c1_48, %c0_49, %c0_50] : memref<2x4x1x8xf32, #tpu.memory_space<vmem>>, vector<1x1x1x8xf32>
    %62 = vector.shape_cast %61 : vector<1x1x1x8xf32> to vector<1x8xf32>
    %63 = vector.broadcast %62 : vector<1x8xf32> to vector<8x8xf32>
    %64 = arith.addf %60, %63 : vector<8x8xf32>
    %65 = vector.shape_cast %64 : vector<8x8xf32> to vector<1x8x8xf32>
    %c0_51 = arith.constant 0 : index
    %c1_52 = arith.constant 1 : index
    %c0_53 = arith.constant 0 : index
    %c0_54 = arith.constant 0 : index
    %66 = vector.load %arg6[%c0_51, %c1_52, %c0_53, %c0_54] : memref<2x4x32x8xbf16, #tpu.memory_space<vmem>>, vector<1x1x32x8xbf16>
    %67 = vector.shape_cast %66 : vector<1x1x32x8xbf16> to vector<32x8xbf16>
    %cst_55 = arith.constant dense<0.000000e+00> : vector<8x8xf32>
    %68 = tpu.matmul %12, %67, %cst_55 {dimension_numbers = #tpu.dot_dimension_numbers<[1], [0], [0], [1], [0, 0, 1, 1], [], []>} : vector<8x32xbf16>, vector<32x8xbf16>, vector<8x8xf32> -> vector<8x8xf32>
    %c0_56 = arith.constant 0 : index
    %c1_57 = arith.constant 1 : index
    %c0_58 = arith.constant 0 : index
    %c0_59 = arith.constant 0 : index
    %69 = vector.load %arg7[%c0_56, %c1_57, %c0_58, %c0_59] : memref<2x4x1x8xf32, #tpu.memory_space<vmem>>, vector<1x1x1x8xf32>
    %70 = vector.shape_cast %69 : vector<1x1x1x8xf32> to vector<1x8xf32>
    %71 = vector.broadcast %70 : vector<1x8xf32> to vector<8x8xf32>
    %72 = arith.addf %68, %71 : vector<8x8xf32>
    %73 = vector.shape_cast %72 : vector<8x8xf32> to vector<1x8x8xf32>
    %c0_60 = arith.constant 0 : index
    %c1_61 = arith.constant 1 : index
    %c0_62 = arith.constant 0 : index
    %c0_63 = arith.constant 0 : index
    %74 = vector.load %arg8[%c0_60, %c1_61, %c0_62, %c0_63] : memref<2x4x32x8xbf16, #tpu.memory_space<vmem>>, vector<1x1x32x8xbf16>
    %75 = vector.shape_cast %74 : vector<1x1x32x8xbf16> to vector<32x8xbf16>
    %cst_64 = arith.constant dense<0.000000e+00> : vector<8x8xf32>
    %76 = tpu.matmul %12, %75, %cst_64 {dimension_numbers = #tpu.dot_dimension_numbers<[1], [0], [0], [1], [0, 0, 1, 1], [], []>} : vector<8x32xbf16>, vector<32x8xbf16>, vector<8x8xf32> -> vector<8x8xf32>
    %c0_65 = arith.constant 0 : index
    %c1_66 = arith.constant 1 : index
    %c0_67 = arith.constant 0 : index
    %c0_68 = arith.constant 0 : index
    %77 = vector.load %arg9[%c0_65, %c1_66, %c0_67, %c0_68] : memref<2x4x1x8xf32, #tpu.memory_space<vmem>>, vector<1x1x1x8xf32>
    %78 = vector.shape_cast %77 : vector<1x1x1x8xf32> to vector<1x8xf32>
    %79 = vector.broadcast %78 : vector<1x8xf32> to vector<8x8xf32>
    %80 = arith.addf %76, %79 : vector<8x8xf32>
    %81 = vector.shape_cast %80 : vector<8x8xf32> to vector<1x8x8xf32>
    %82 = arith.truncf %65 : vector<1x8x8xf32> to vector<1x8x8xbf16>
    %83 = arith.truncf %73 : vector<1x8x8xf32> to vector<1x8x8xbf16>
    "tpu.trace_start"() <{level = 10 : i32, message = "bqe,bke->bqk"}> : () -> ()
    %cst_69 = arith.constant dense<0.000000e+00> : vector<1x8x8xf32>
    %84 = tpu.matmul %82, %83, %cst_69 {dimension_numbers = #tpu.dot_dimension_numbers<[2], [2], [1], [1], [0, 0, 0, 1, 1, 1], [0], [0]>} : vector<1x8x8xbf16>, vector<1x8x8xbf16>, vector<1x8x8xf32> -> vector<1x8x8xf32>
    "tpu.trace_stop"() : () -> ()
    %cst_70 = arith.constant dense<0xFF800000> : vector<1x8xf32>
    %85 = vector.multi_reduction <maximumf>, %84, %cst_70 [2] : vector<1x8x8xf32> to vector<1x8xf32>
    %86 = vector.shape_cast %85 : vector<1x8xf32> to vector<1x8x1xf32>
    %87 = vector.broadcast %86 : vector<1x8x1xf32> to vector<1x8x8xf32>
    %88 = arith.subf %84, %87 : vector<1x8x8xf32>
    %89 = math.exp %88 : vector<1x8x8xf32>
    %cst_71 = arith.constant dense<0.000000e+00> : vector<1x8xf32>
    %90 = vector.multi_reduction <add>, %89, %cst_71 [2] : vector<1x8x8xf32> to vector<1x8xf32>
    %91 = vector.shape_cast %90 : vector<1x8xf32> to vector<1x8x1xf32>
    %92 = tpu.reciprocal %91 {approx = true} : vector<1x8x1xf32> -> vector<1x8x1xf32>
    %93 = vector.broadcast %92 : vector<1x8x1xf32> to vector<1x8x8xf32>
    %94 = arith.mulf %89, %93 : vector<1x8x8xf32>
    %95 = arith.truncf %94 : vector<1x8x8xf32> to vector<1x8x8xbf16>
    %96 = arith.truncf %81 : vector<1x8x8xf32> to vector<1x8x8xbf16>
    "tpu.trace_start"() <{level = 10 : i32, message = "bqk,bke->bqe"}> : () -> ()
    %cst_72 = arith.constant dense<0.000000e+00> : vector<1x8x8xf32>
    %97 = tpu.matmul %95, %96, %cst_72 {dimension_numbers = #tpu.dot_dimension_numbers<[2], [1], [1], [2], [0, 0, 0, 1, 1, 2], [0], [0]>} : vector<1x8x8xbf16>, vector<1x8x8xbf16>, vector<1x8x8xf32> -> vector<1x8x8xf32>
    "tpu.trace_stop"() : () -> ()
    %98 = vector.shape_cast %97 : vector<1x8x8xf32> to vector<8x8xf32>
    %99 = arith.truncf %98 : vector<8x8xf32> to vector<8x8xbf16>
    %c0_73 = arith.constant 0 : index
    %c1_74 = arith.constant 1 : index
    %c0_75 = arith.constant 0 : index
    %c0_76 = arith.constant 0 : index
    %100 = vector.load %arg10[%c0_73, %c1_74, %c0_75, %c0_76] : memref<2x4x8x32xbf16, #tpu.memory_space<vmem>>, vector<1x1x8x32xbf16>
    %101 = vector.shape_cast %100 : vector<1x1x8x32xbf16> to vector<8x32xbf16>
    %cst_77 = arith.constant dense<0.000000e+00> : vector<8x32xf32>
    %102 = tpu.matmul %99, %101, %cst_77 {dimension_numbers = #tpu.dot_dimension_numbers<[1], [0], [0], [1], [0, 0, 1, 1], [], []>} : vector<8x8xbf16>, vector<8x32xbf16>, vector<8x32xf32> -> vector<8x32xf32>
    %103 = arith.addf %57, %102 : vector<8x32xf32>
    %c0_78 = arith.constant 0 : index
    %c2 = arith.constant 2 : index
    %c0_79 = arith.constant 0 : index
    %c0_80 = arith.constant 0 : index
    %104 = vector.load %arg4[%c0_78, %c2, %c0_79, %c0_80] : memref<2x4x32x8xbf16, #tpu.memory_space<vmem>>, vector<1x1x32x8xbf16>
    %105 = vector.shape_cast %104 : vector<1x1x32x8xbf16> to vector<32x8xbf16>
    %cst_81 = arith.constant dense<0.000000e+00> : vector<8x8xf32>
    %106 = tpu.matmul %12, %105, %cst_81 {dimension_numbers = #tpu.dot_dimension_numbers<[1], [0], [0], [1], [0, 0, 1, 1], [], []>} : vector<8x32xbf16>, vector<32x8xbf16>, vector<8x8xf32> -> vector<8x8xf32>
    %c0_82 = arith.constant 0 : index
    %c2_83 = arith.constant 2 : index
    %c0_84 = arith.constant 0 : index
    %c0_85 = arith.constant 0 : index
    %107 = vector.load %arg5[%c0_82, %c2_83, %c0_84, %c0_85] : memref<2x4x1x8xf32, #tpu.memory_space<vmem>>, vector<1x1x1x8xf32>
    %108 = vector.shape_cast %107 : vector<1x1x1x8xf32> to vector<1x8xf32>
    %109 = vector.broadcast %108 : vector<1x8xf32> to vector<8x8xf32>
    %110 = arith.addf %106, %109 : vector<8x8xf32>
    %111 = vector.shape_cast %110 : vector<8x8xf32> to vector<1x8x8xf32>
    %c0_86 = arith.constant 0 : index
    %c2_87 = arith.constant 2 : index
    %c0_88 = arith.constant 0 : index
    %c0_89 = arith.constant 0 : index
    %112 = vector.load %arg6[%c0_86, %c2_87, %c0_88, %c0_89] : memref<2x4x32x8xbf16, #tpu.memory_space<vmem>>, vector<1x1x32x8xbf16>
    %113 = vector.shape_cast %112 : vector<1x1x32x8xbf16> to vector<32x8xbf16>
    %cst_90 = arith.constant dense<0.000000e+00> : vector<8x8xf32>
    %114 = tpu.matmul %12, %113, %cst_90 {dimension_numbers = #tpu.dot_dimension_numbers<[1], [0], [0], [1], [0, 0, 1, 1], [], []>} : vector<8x32xbf16>, vector<32x8xbf16>, vector<8x8xf32> -> vector<8x8xf32>
    %c0_91 = arith.constant 0 : index
    %c2_92 = arith.constant 2 : index
    %c0_93 = arith.constant 0 : index
    %c0_94 = arith.constant 0 : index
    %115 = vector.load %arg7[%c0_91, %c2_92, %c0_93, %c0_94] : memref<2x4x1x8xf32, #tpu.memory_space<vmem>>, vector<1x1x1x8xf32>
    %116 = vector.shape_cast %115 : vector<1x1x1x8xf32> to vector<1x8xf32>
    %117 = vector.broadcast %116 : vector<1x8xf32> to vector<8x8xf32>
    %118 = arith.addf %114, %117 : vector<8x8xf32>
    %119 = vector.shape_cast %118 : vector<8x8xf32> to vector<1x8x8xf32>
    %c0_95 = arith.constant 0 : index
    %c2_96 = arith.constant 2 : index
    %c0_97 = arith.constant 0 : index
    %c0_98 = arith.constant 0 : index
    %120 = vector.load %arg8[%c0_95, %c2_96, %c0_97, %c0_98] : memref<2x4x32x8xbf16, #tpu.memory_space<vmem>>, vector<1x1x32x8xbf16>
    %121 = vector.shape_cast %120 : vector<1x1x32x8xbf16> to vector<32x8xbf16>
    %cst_99 = arith.constant dense<0.000000e+00> : vector<8x8xf32>
    %122 = tpu.matmul %12, %121, %cst_99 {dimension_numbers = #tpu.dot_dimension_numbers<[1], [0], [0], [1], [0, 0, 1, 1], [], []>} : vector<8x32xbf16>, vector<32x8xbf16>, vector<8x8xf32> -> vector<8x8xf32>
    %c0_100 = arith.constant 0 : index
    %c2_101 = arith.constant 2 : index
    %c0_102 = arith.constant 0 : index
    %c0_103 = arith.constant 0 : index
    %123 = vector.load %arg9[%c0_100, %c2_101, %c0_102, %c0_103] : memref<2x4x1x8xf32, #tpu.memory_space<vmem>>, vector<1x1x1x8xf32>
    %124 = vector.shape_cast %123 : vector<1x1x1x8xf32> to vector<1x8xf32>
    %125 = vector.broadcast %124 : vector<1x8xf32> to vector<8x8xf32>
    %126 = arith.addf %122, %125 : vector<8x8xf32>
    %127 = vector.shape_cast %126 : vector<8x8xf32> to vector<1x8x8xf32>
    %128 = arith.truncf %111 : vector<1x8x8xf32> to vector<1x8x8xbf16>
    %129 = arith.truncf %119 : vector<1x8x8xf32> to vector<1x8x8xbf16>
    "tpu.trace_start"() <{level = 10 : i32, message = "bqe,bke->bqk"}> : () -> ()
    %cst_104 = arith.constant dense<0.000000e+00> : vector<1x8x8xf32>
    %130 = tpu.matmul %128, %129, %cst_104 {dimension_numbers = #tpu.dot_dimension_numbers<[2], [2], [1], [1], [0, 0, 0, 1, 1, 1], [0], [0]>} : vector<1x8x8xbf16>, vector<1x8x8xbf16>, vector<1x8x8xf32> -> vector<1x8x8xf32>
    "tpu.trace_stop"() : () -> ()
    %cst_105 = arith.constant dense<0xFF800000> : vector<1x8xf32>
    %131 = vector.multi_reduction <maximumf>, %130, %cst_105 [2] : vector<1x8x8xf32> to vector<1x8xf32>
    %132 = vector.shape_cast %131 : vector<1x8xf32> to vector<1x8x1xf32>
    %133 = vector.broadcast %132 : vector<1x8x1xf32> to vector<1x8x8xf32>
    %134 = arith.subf %130, %133 : vector<1x8x8xf32>
    %135 = math.exp %134 : vector<1x8x8xf32>
    %cst_106 = arith.constant dense<0.000000e+00> : vector<1x8xf32>
    %136 = vector.multi_reduction <add>, %135, %cst_106 [2] : vector<1x8x8xf32> to vector<1x8xf32>
    %137 = vector.shape_cast %136 : vector<1x8xf32> to vector<1x8x1xf32>
    %138 = tpu.reciprocal %137 {approx = true} : vector<1x8x1xf32> -> vector<1x8x1xf32>
    %139 = vector.broadcast %138 : vector<1x8x1xf32> to vector<1x8x8xf32>
    %140 = arith.mulf %135, %139 : vector<1x8x8xf32>
    %141 = arith.truncf %140 : vector<1x8x8xf32> to vector<1x8x8xbf16>
    %142 = arith.truncf %127 : vector<1x8x8xf32> to vector<1x8x8xbf16>
    "tpu.trace_start"() <{level = 10 : i32, message = "bqk,bke->bqe"}> : () -> ()
    %cst_107 = arith.constant dense<0.000000e+00> : vector<1x8x8xf32>
    %143 = tpu.matmul %141, %142, %cst_107 {dimension_numbers = #tpu.dot_dimension_numbers<[2], [1], [1], [2], [0, 0, 0, 1, 1, 2], [0], [0]>} : vector<1x8x8xbf16>, vector<1x8x8xbf16>, vector<1x8x8xf32> -> vector<1x8x8xf32>
    "tpu.trace_stop"() : () -> ()
    %144 = vector.shape_cast %143 : vector<1x8x8xf32> to vector<8x8xf32>
    %145 = arith.truncf %144 : vector<8x8xf32> to vector<8x8xbf16>
    %c0_108 = arith.constant 0 : index
    %c2_109 = arith.constant 2 : index
    %c0_110 = arith.constant 0 : index
    %c0_111 = arith.constant 0 : index
    %146 = vector.load %arg10[%c0_108, %c2_109, %c0_110, %c0_111] : memref<2x4x8x32xbf16, #tpu.memory_space<vmem>>, vector<1x1x8x32xbf16>
    %147 = vector.shape_cast %146 : vector<1x1x8x32xbf16> to vector<8x32xbf16>
    %cst_112 = arith.constant dense<0.000000e+00> : vector<8x32xf32>
    %148 = tpu.matmul %145, %147, %cst_112 {dimension_numbers = #tpu.dot_dimension_numbers<[1], [0], [0], [1], [0, 0, 1, 1], [], []>} : vector<8x8xbf16>, vector<8x32xbf16>, vector<8x32xf32> -> vector<8x32xf32>
    %149 = arith.addf %103, %148 : vector<8x32xf32>
    %c0_113 = arith.constant 0 : index
    %c3 = arith.constant 3 : index
    %c0_114 = arith.constant 0 : index
    %c0_115 = arith.constant 0 : index
    %150 = vector.load %arg4[%c0_113, %c3, %c0_114, %c0_115] : memref<2x4x32x8xbf16, #tpu.memory_space<vmem>>, vector<1x1x32x8xbf16>
    %151 = vector.shape_cast %150 : vector<1x1x32x8xbf16> to vector<32x8xbf16>
    %cst_116 = arith.constant dense<0.000000e+00> : vector<8x8xf32>
    %152 = tpu.matmul %12, %151, %cst_116 {dimension_numbers = #tpu.dot_dimension_numbers<[1], [0], [0], [1], [0, 0, 1, 1], [], []>} : vector<8x32xbf16>, vector<32x8xbf16>, vector<8x8xf32> -> vector<8x8xf32>
    %c0_117 = arith.constant 0 : index
    %c3_118 = arith.constant 3 : index
    %c0_119 = arith.constant 0 : index
    %c0_120 = arith.constant 0 : index
    %153 = vector.load %arg5[%c0_117, %c3_118, %c0_119, %c0_120] : memref<2x4x1x8xf32, #tpu.memory_space<vmem>>, vector<1x1x1x8xf32>
    %154 = vector.shape_cast %153 : vector<1x1x1x8xf32> to vector<1x8xf32>
    %155 = vector.broadcast %154 : vector<1x8xf32> to vector<8x8xf32>
    %156 = arith.addf %152, %155 : vector<8x8xf32>
    %157 = vector.shape_cast %156 : vector<8x8xf32> to vector<1x8x8xf32>
    %c0_121 = arith.constant 0 : index
    %c3_122 = arith.constant 3 : index
    %c0_123 = arith.constant 0 : index
    %c0_124 = arith.constant 0 : index
    %158 = vector.load %arg6[%c0_121, %c3_122, %c0_123, %c0_124] : memref<2x4x32x8xbf16, #tpu.memory_space<vmem>>, vector<1x1x32x8xbf16>
    %159 = vector.shape_cast %158 : vector<1x1x32x8xbf16> to vector<32x8xbf16>
    %cst_125 = arith.constant dense<0.000000e+00> : vector<8x8xf32>
    %160 = tpu.matmul %12, %159, %cst_125 {dimension_numbers = #tpu.dot_dimension_numbers<[1], [0], [0], [1], [0, 0, 1, 1], [], []>} : vector<8x32xbf16>, vector<32x8xbf16>, vector<8x8xf32> -> vector<8x8xf32>
    %c0_126 = arith.constant 0 : index
    %c3_127 = arith.constant 3 : index
    %c0_128 = arith.constant 0 : index
    %c0_129 = arith.constant 0 : index
    %161 = vector.load %arg7[%c0_126, %c3_127, %c0_128, %c0_129] : memref<2x4x1x8xf32, #tpu.memory_space<vmem>>, vector<1x1x1x8xf32>
    %162 = vector.shape_cast %161 : vector<1x1x1x8xf32> to vector<1x8xf32>
    %163 = vector.broadcast %162 : vector<1x8xf32> to vector<8x8xf32>
    %164 = arith.addf %160, %163 : vector<8x8xf32>
    %165 = vector.shape_cast %164 : vector<8x8xf32> to vector<1x8x8xf32>
    %c0_130 = arith.constant 0 : index
    %c3_131 = arith.constant 3 : index
    %c0_132 = arith.constant 0 : index
    %c0_133 = arith.constant 0 : index
    %166 = vector.load %arg8[%c0_130, %c3_131, %c0_132, %c0_133] : memref<2x4x32x8xbf16, #tpu.memory_space<vmem>>, vector<1x1x32x8xbf16>
    %167 = vector.shape_cast %166 : vector<1x1x32x8xbf16> to vector<32x8xbf16>
    %cst_134 = arith.constant dense<0.000000e+00> : vector<8x8xf32>
    %168 = tpu.matmul %12, %167, %cst_134 {dimension_numbers = #tpu.dot_dimension_numbers<[1], [0], [0], [1], [0, 0, 1, 1], [], []>} : vector<8x32xbf16>, vector<32x8xbf16>, vector<8x8xf32> -> vector<8x8xf32>
    %c0_135 = arith.constant 0 : index
    %c3_136 = arith.constant 3 : index
    %c0_137 = arith.constant 0 : index
    %c0_138 = arith.constant 0 : index
    %169 = vector.load %arg9[%c0_135, %c3_136, %c0_137, %c0_138] : memref<2x4x1x8xf32, #tpu.memory_space<vmem>>, vector<1x1x1x8xf32>
    %170 = vector.shape_cast %169 : vector<1x1x1x8xf32> to vector<1x8xf32>
    %171 = vector.broadcast %170 : vector<1x8xf32> to vector<8x8xf32>
    %172 = arith.addf %168, %171 : vector<8x8xf32>
    %173 = vector.shape_cast %172 : vector<8x8xf32> to vector<1x8x8xf32>
    %174 = arith.truncf %157 : vector<1x8x8xf32> to vector<1x8x8xbf16>
    %175 = arith.truncf %165 : vector<1x8x8xf32> to vector<1x8x8xbf16>
    "tpu.trace_start"() <{level = 10 : i32, message = "bqe,bke->bqk"}> : () -> ()
    %cst_139 = arith.constant dense<0.000000e+00> : vector<1x8x8xf32>
    %176 = tpu.matmul %174, %175, %cst_139 {dimension_numbers = #tpu.dot_dimension_numbers<[2], [2], [1], [1], [0, 0, 0, 1, 1, 1], [0], [0]>} : vector<1x8x8xbf16>, vector<1x8x8xbf16>, vector<1x8x8xf32> -> vector<1x8x8xf32>
    "tpu.trace_stop"() : () -> ()
    %cst_140 = arith.constant dense<0xFF800000> : vector<1x8xf32>
    %177 = vector.multi_reduction <maximumf>, %176, %cst_140 [2] : vector<1x8x8xf32> to vector<1x8xf32>
    %178 = vector.shape_cast %177 : vector<1x8xf32> to vector<1x8x1xf32>
    %179 = vector.broadcast %178 : vector<1x8x1xf32> to vector<1x8x8xf32>
    %180 = arith.subf %176, %179 : vector<1x8x8xf32>
    %181 = math.exp %180 : vector<1x8x8xf32>
    %cst_141 = arith.constant dense<0.000000e+00> : vector<1x8xf32>
    %182 = vector.multi_reduction <add>, %181, %cst_141 [2] : vector<1x8x8xf32> to vector<1x8xf32>
    %183 = vector.shape_cast %182 : vector<1x8xf32> to vector<1x8x1xf32>
    %184 = tpu.reciprocal %183 {approx = true} : vector<1x8x1xf32> -> vector<1x8x1xf32>
    %185 = vector.broadcast %184 : vector<1x8x1xf32> to vector<1x8x8xf32>
    %186 = arith.mulf %181, %185 : vector<1x8x8xf32>
    %187 = arith.truncf %186 : vector<1x8x8xf32> to vector<1x8x8xbf16>
    %188 = arith.truncf %173 : vector<1x8x8xf32> to vector<1x8x8xbf16>
    "tpu.trace_start"() <{level = 10 : i32, message = "bqk,bke->bqe"}> : () -> ()
    %cst_142 = arith.constant dense<0.000000e+00> : vector<1x8x8xf32>
    %189 = tpu.matmul %187, %188, %cst_142 {dimension_numbers = #tpu.dot_dimension_numbers<[2], [1], [1], [2], [0, 0, 0, 1, 1, 2], [0], [0]>} : vector<1x8x8xbf16>, vector<1x8x8xbf16>, vector<1x8x8xf32> -> vector<1x8x8xf32>
    "tpu.trace_stop"() : () -> ()
    %190 = vector.shape_cast %189 : vector<1x8x8xf32> to vector<8x8xf32>
    %191 = arith.truncf %190 : vector<8x8xf32> to vector<8x8xbf16>
    %c0_143 = arith.constant 0 : index
    %c3_144 = arith.constant 3 : index
    %c0_145 = arith.constant 0 : index
    %c0_146 = arith.constant 0 : index
    %192 = vector.load %arg10[%c0_143, %c3_144, %c0_145, %c0_146] : memref<2x4x8x32xbf16, #tpu.memory_space<vmem>>, vector<1x1x8x32xbf16>
    %193 = vector.shape_cast %192 : vector<1x1x8x32xbf16> to vector<8x32xbf16>
    %cst_147 = arith.constant dense<0.000000e+00> : vector<8x32xf32>
    %194 = tpu.matmul %191, %193, %cst_147 {dimension_numbers = #tpu.dot_dimension_numbers<[1], [0], [0], [1], [0, 0, 1, 1], [], []>} : vector<8x8xbf16>, vector<8x32xbf16>, vector<8x32xf32> -> vector<8x32xf32>
    %195 = arith.addf %149, %194 : vector<8x32xf32>
    %c0_148 = arith.constant 0 : index
    %c0_149 = arith.constant 0 : index
    %c0_150 = arith.constant 0 : index
    %196 = vector.load %arg11[%c0_148, %c0_149, %c0_150] : memref<2x1x32xf32, #tpu.memory_space<vmem>>, vector<1x1x32xf32>
    %197 = vector.shape_cast %196 : vector<1x1x32xf32> to vector<1x32xf32>
    %198 = vector.broadcast %197 : vector<1x32xf32> to vector<8x32xf32>
    %199 = arith.addf %195, %198 : vector<8x32xf32>
    %200 = arith.addf %11, %199 : vector<8x32xf32>
    %c0_151 = arith.constant 0 : index
    %c0_152 = arith.constant 0 : index
    %c0_153 = arith.constant 0 : index
    %201 = vector.load %arg12[%c0_151, %c0_152, %c0_153] : memref<2x1x32xf32, #tpu.memory_space<vmem>>, vector<1x1x32xf32>
    %202 = vector.shape_cast %201 : vector<1x1x32xf32> to vector<1x32xf32>
    %c0_154 = arith.constant 0 : index
    %c0_155 = arith.constant 0 : index
    %c0_156 = arith.constant 0 : index
    %203 = vector.load %arg13[%c0_154, %c0_155, %c0_156] : memref<2x1x32xf32, #tpu.memory_space<vmem>>, vector<1x1x32xf32>
    %204 = vector.shape_cast %203 : vector<1x1x32xf32> to vector<1x32xf32>
    %cst_157 = arith.constant dense<0.000000e+00> : vector<8xf32>
    %205 = vector.multi_reduction <add>, %200, %cst_157 [1] : vector<8x32xf32> to vector<8xf32>
    %206 = vector.shape_cast %205 : vector<8xf32> to vector<8x1xf32>
    %cst_158 = arith.constant 3.200000e+01 : f32
    %207 = vector.broadcast %cst_158 : f32 to vector<8x1xf32>
    %208 = arith.divf %206, %207 : vector<8x1xf32>
    %209 = vector.broadcast %208 : vector<8x1xf32> to vector<8x32xf32>
    %210 = arith.subf %200, %209 : vector<8x32xf32>
    %211 = arith.mulf %210, %210 : vector<8x32xf32>
    %cst_159 = arith.constant dense<0.000000e+00> : vector<8xf32>
    %212 = vector.multi_reduction <add>, %211, %cst_159 [1] : vector<8x32xf32> to vector<8xf32>
    %213 = vector.shape_cast %212 : vector<8xf32> to vector<8x1xf32>
    %cst_160 = arith.constant 3.200000e+01 : f32
    %214 = vector.broadcast %cst_160 : f32 to vector<8x1xf32>
    %215 = arith.divf %213, %214 : vector<8x1xf32>
    %216 = vector.broadcast %208 : vector<8x1xf32> to vector<8x32xf32>
    %217 = arith.subf %200, %216 : vector<8x32xf32>
    %cst_161 = arith.constant 9.99999974E-6 : f32
    %218 = vector.broadcast %cst_161 : f32 to vector<8x1xf32>
    %219 = arith.addf %215, %218 : vector<8x1xf32>
    %220 = math.rsqrt %219 : vector<8x1xf32>
    %221 = vector.broadcast %220 : vector<8x1xf32> to vector<8x32xf32>
    %222 = arith.mulf %217, %221 : vector<8x32xf32>
    %223 = vector.broadcast %202 : vector<1x32xf32> to vector<8x32xf32>
    %224 = arith.mulf %222, %223 : vector<8x32xf32>
    %225 = vector.broadcast %204 : vector<1x32xf32> to vector<8x32xf32>
    %226 = arith.addf %224, %225 : vector<8x32xf32>
    %227 = arith.truncf %226 : vector<8x32xf32> to vector<8x32xbf16>
    %c0_162 = arith.constant 0 : index
    %c0_163 = arith.constant 0 : index
    %c0_164 = arith.constant 0 : index
    %228 = vector.load %arg14[%c0_162, %c0_163, %c0_164] : memref<2x32x64xbf16, #tpu.memory_space<vmem>>, vector<1x32x64xbf16>
    %229 = vector.shape_cast %228 : vector<1x32x64xbf16> to vector<32x64xbf16>
    %cst_165 = arith.constant dense<0.000000e+00> : vector<8x64xf32>
    %230 = tpu.matmul %227, %229, %cst_165 {dimension_numbers = #tpu.dot_dimension_numbers<[1], [0], [0], [1], [0, 0, 1, 1], [], []>} : vector<8x32xbf16>, vector<32x64xbf16>, vector<8x64xf32> -> vector<8x64xf32>
    %c0_166 = arith.constant 0 : index
    %c0_167 = arith.constant 0 : index
    %c0_168 = arith.constant 0 : index
    %231 = vector.load %arg15[%c0_166, %c0_167, %c0_168] : memref<2x1x64xf32, #tpu.memory_space<vmem>>, vector<1x1x64xf32>
    %232 = vector.shape_cast %231 : vector<1x1x64xf32> to vector<1x64xf32>
    %233 = vector.broadcast %232 : vector<1x64xf32> to vector<8x64xf32>
    %234 = arith.addf %230, %233 : vector<8x64xf32>
    %cst_169 = arith.constant 0.000000e+00 : f32
    %235 = vector.broadcast %cst_169 : f32 to vector<8x64xf32>
    %236 = arith.maximumf %234, %235 : vector<8x64xf32>
    %237 = arith.truncf %236 : vector<8x64xf32> to vector<8x64xbf16>
    %c0_170 = arith.constant 0 : index
    %c0_171 = arith.constant 0 : index
    %c0_172 = arith.constant 0 : index
    %238 = vector.load %arg16[%c0_170, %c0_171, %c0_172] : memref<2x64x32xbf16, #tpu.memory_space<vmem>>, vector<1x64x32xbf16>
    %239 = vector.shape_cast %238 : vector<1x64x32xbf16> to vector<64x32xbf16>
    %cst_173 = arith.constant dense<0.000000e+00> : vector<8x32xf32>
    %240 = tpu.matmul %237, %239, %cst_173 {dimension_numbers = #tpu.dot_dimension_numbers<[1], [0], [0], [1], [0, 0, 1, 1], [], []>} : vector<8x64xbf16>, vector<64x32xbf16>, vector<8x32xf32> -> vector<8x32xf32>
    %c0_174 = arith.constant 0 : index
    %c0_175 = arith.constant 0 : index
    %c0_176 = arith.constant 0 : index
    %241 = vector.load %arg17[%c0_174, %c0_175, %c0_176] : memref<2x1x32xf32, #tpu.memory_space<vmem>>, vector<1x1x32xf32>
    %242 = vector.shape_cast %241 : vector<1x1x32xf32> to vector<1x32xf32>
    %243 = vector.broadcast %242 : vector<1x32xf32> to vector<8x32xf32>
    %244 = arith.addf %240, %243 : vector<8x32xf32>
    %245 = arith.addf %226, %244 : vector<8x32xf32>
    %c0_177 = arith.constant 0 : index
    %c0_178 = arith.constant 0 : index
    %c0_179 = arith.constant 0 : index
    %246 = vector.load %arg18[%c0_177, %c0_178, %c0_179] : memref<2x1x32xf32, #tpu.memory_space<vmem>>, vector<1x1x32xf32>
    %247 = vector.shape_cast %246 : vector<1x1x32xf32> to vector<1x32xf32>
    %c0_180 = arith.constant 0 : index
    %c0_181 = arith.constant 0 : index
    %c0_182 = arith.constant 0 : index
    %248 = vector.load %arg19[%c0_180, %c0_181, %c0_182] : memref<2x1x32xf32, #tpu.memory_space<vmem>>, vector<1x1x32xf32>
    %249 = vector.shape_cast %248 : vector<1x1x32xf32> to vector<1x32xf32>
    %cst_183 = arith.constant dense<0.000000e+00> : vector<8xf32>
    %250 = vector.multi_reduction <add>, %245, %cst_183 [1] : vector<8x32xf32> to vector<8xf32>
    %251 = vector.shape_cast %250 : vector<8xf32> to vector<8x1xf32>
    %cst_184 = arith.constant 3.200000e+01 : f32
    %252 = vector.broadcast %cst_184 : f32 to vector<8x1xf32>
    %253 = arith.divf %251, %252 : vector<8x1xf32>
    %254 = vector.broadcast %253 : vector<8x1xf32> to vector<8x32xf32>
    %255 = arith.subf %245, %254 : vector<8x32xf32>
    %256 = arith.mulf %255, %255 : vector<8x32xf32>
    %cst_185 = arith.constant dense<0.000000e+00> : vector<8xf32>
    %257 = vector.multi_reduction <add>, %256, %cst_185 [1] : vector<8x32xf32> to vector<8xf32>
    %258 = vector.shape_cast %257 : vector<8xf32> to vector<8x1xf32>
    %cst_186 = arith.constant 3.200000e+01 : f32
    %259 = vector.broadcast %cst_186 : f32 to vector<8x1xf32>
    %260 = arith.divf %258, %259 : vector<8x1xf32>
    %261 = vector.broadcast %253 : vector<8x1xf32> to vector<8x32xf32>
    %262 = arith.subf %245, %261 : vector<8x32xf32>
    %cst_187 = arith.constant 9.99999974E-6 : f32
    %263 = vector.broadcast %cst_187 : f32 to vector<8x1xf32>
    %264 = arith.addf %260, %263 : vector<8x1xf32>
    %265 = math.rsqrt %264 : vector<8x1xf32>
    %266 = vector.broadcast %265 : vector<8x1xf32> to vector<8x32xf32>
    %267 = arith.mulf %262, %266 : vector<8x32xf32>
    %268 = vector.broadcast %247 : vector<1x32xf32> to vector<8x32xf32>
    %269 = arith.mulf %267, %268 : vector<8x32xf32>
    %270 = vector.broadcast %249 : vector<1x32xf32> to vector<8x32xf32>
    %271 = arith.addf %269, %270 : vector<8x32xf32>
    %272 = arith.truncf %271 : vector<8x32xf32> to vector<8x32xbf16>
    %c1_188 = arith.constant 1 : index
    %c0_189 = arith.constant 0 : index
    %c0_190 = arith.constant 0 : index
    %c0_191 = arith.constant 0 : index
    %273 = vector.load %arg4[%c1_188, %c0_189, %c0_190, %c0_191] : memref<2x4x32x8xbf16, #tpu.memory_space<vmem>>, vector<1x1x32x8xbf16>
    %274 = vector.shape_cast %273 : vector<1x1x32x8xbf16> to vector<32x8xbf16>
    %cst_192 = arith.constant dense<0.000000e+00> : vector<8x8xf32>
    %275 = tpu.matmul %272, %274, %cst_192 {dimension_numbers = #tpu.dot_dimension_numbers<[1], [0], [0], [1], [0, 0, 1, 1], [], []>} : vector<8x32xbf16>, vector<32x8xbf16>, vector<8x8xf32> -> vector<8x8xf32>
    %c1_193 = arith.constant 1 : index
    %c0_194 = arith.constant 0 : index
    %c0_195 = arith.constant 0 : index
    %c0_196 = arith.constant 0 : index
    %276 = vector.load %arg5[%c1_193, %c0_194, %c0_195, %c0_196] : memref<2x4x1x8xf32, #tpu.memory_space<vmem>>, vector<1x1x1x8xf32>
    %277 = vector.shape_cast %276 : vector<1x1x1x8xf32> to vector<1x8xf32>
    %278 = vector.broadcast %277 : vector<1x8xf32> to vector<8x8xf32>
    %279 = arith.addf %275, %278 : vector<8x8xf32>
    %280 = vector.shape_cast %279 : vector<8x8xf32> to vector<1x8x8xf32>
    %c1_197 = arith.constant 1 : index
    %c0_198 = arith.constant 0 : index
    %c0_199 = arith.constant 0 : index
    %c0_200 = arith.constant 0 : index
    %281 = vector.load %arg6[%c1_197, %c0_198, %c0_199, %c0_200] : memref<2x4x32x8xbf16, #tpu.memory_space<vmem>>, vector<1x1x32x8xbf16>
    %282 = vector.shape_cast %281 : vector<1x1x32x8xbf16> to vector<32x8xbf16>
    %cst_201 = arith.constant dense<0.000000e+00> : vector<8x8xf32>
    %283 = tpu.matmul %272, %282, %cst_201 {dimension_numbers = #tpu.dot_dimension_numbers<[1], [0], [0], [1], [0, 0, 1, 1], [], []>} : vector<8x32xbf16>, vector<32x8xbf16>, vector<8x8xf32> -> vector<8x8xf32>
    %c1_202 = arith.constant 1 : index
    %c0_203 = arith.constant 0 : index
    %c0_204 = arith.constant 0 : index
    %c0_205 = arith.constant 0 : index
    %284 = vector.load %arg7[%c1_202, %c0_203, %c0_204, %c0_205] : memref<2x4x1x8xf32, #tpu.memory_space<vmem>>, vector<1x1x1x8xf32>
    %285 = vector.shape_cast %284 : vector<1x1x1x8xf32> to vector<1x8xf32>
    %286 = vector.broadcast %285 : vector<1x8xf32> to vector<8x8xf32>
    %287 = arith.addf %283, %286 : vector<8x8xf32>
    %288 = vector.shape_cast %287 : vector<8x8xf32> to vector<1x8x8xf32>
    %c1_206 = arith.constant 1 : index
    %c0_207 = arith.constant 0 : index
    %c0_208 = arith.constant 0 : index
    %c0_209 = arith.constant 0 : index
    %289 = vector.load %arg8[%c1_206, %c0_207, %c0_208, %c0_209] : memref<2x4x32x8xbf16, #tpu.memory_space<vmem>>, vector<1x1x32x8xbf16>
    %290 = vector.shape_cast %289 : vector<1x1x32x8xbf16> to vector<32x8xbf16>
    %cst_210 = arith.constant dense<0.000000e+00> : vector<8x8xf32>
    %291 = tpu.matmul %272, %290, %cst_210 {dimension_numbers = #tpu.dot_dimension_numbers<[1], [0], [0], [1], [0, 0, 1, 1], [], []>} : vector<8x32xbf16>, vector<32x8xbf16>, vector<8x8xf32> -> vector<8x8xf32>
    %c1_211 = arith.constant 1 : index
    %c0_212 = arith.constant 0 : index
    %c0_213 = arith.constant 0 : index
    %c0_214 = arith.constant 0 : index
    %292 = vector.load %arg9[%c1_211, %c0_212, %c0_213, %c0_214] : memref<2x4x1x8xf32, #tpu.memory_space<vmem>>, vector<1x1x1x8xf32>
    %293 = vector.shape_cast %292 : vector<1x1x1x8xf32> to vector<1x8xf32>
    %294 = vector.broadcast %293 : vector<1x8xf32> to vector<8x8xf32>
    %295 = arith.addf %291, %294 : vector<8x8xf32>
    %296 = vector.shape_cast %295 : vector<8x8xf32> to vector<1x8x8xf32>
    %297 = arith.truncf %280 : vector<1x8x8xf32> to vector<1x8x8xbf16>
    %298 = arith.truncf %288 : vector<1x8x8xf32> to vector<1x8x8xbf16>
    "tpu.trace_start"() <{level = 10 : i32, message = "bqe,bke->bqk"}> : () -> ()
    %cst_215 = arith.constant dense<0.000000e+00> : vector<1x8x8xf32>
    %299 = tpu.matmul %297, %298, %cst_215 {dimension_numbers = #tpu.dot_dimension_numbers<[2], [2], [1], [1], [0, 0, 0, 1, 1, 1], [0], [0]>} : vector<1x8x8xbf16>, vector<1x8x8xbf16>, vector<1x8x8xf32> -> vector<1x8x8xf32>
    "tpu.trace_stop"() : () -> ()
    %cst_216 = arith.constant dense<0xFF800000> : vector<1x8xf32>
    %300 = vector.multi_reduction <maximumf>, %299, %cst_216 [2] : vector<1x8x8xf32> to vector<1x8xf32>
    %301 = vector.shape_cast %300 : vector<1x8xf32> to vector<1x8x1xf32>
    %302 = vector.broadcast %301 : vector<1x8x1xf32> to vector<1x8x8xf32>
    %303 = arith.subf %299, %302 : vector<1x8x8xf32>
    %304 = math.exp %303 : vector<1x8x8xf32>
    %cst_217 = arith.constant dense<0.000000e+00> : vector<1x8xf32>
    %305 = vector.multi_reduction <add>, %304, %cst_217 [2] : vector<1x8x8xf32> to vector<1x8xf32>
    %306 = vector.shape_cast %305 : vector<1x8xf32> to vector<1x8x1xf32>
    %307 = tpu.reciprocal %306 {approx = true} : vector<1x8x1xf32> -> vector<1x8x1xf32>
    %308 = vector.broadcast %307 : vector<1x8x1xf32> to vector<1x8x8xf32>
    %309 = arith.mulf %304, %308 : vector<1x8x8xf32>
    %310 = arith.truncf %309 : vector<1x8x8xf32> to vector<1x8x8xbf16>
    %311 = arith.truncf %296 : vector<1x8x8xf32> to vector<1x8x8xbf16>
    "tpu.trace_start"() <{level = 10 : i32, message = "bqk,bke->bqe"}> : () -> ()
    %cst_218 = arith.constant dense<0.000000e+00> : vector<1x8x8xf32>
    %312 = tpu.matmul %310, %311, %cst_218 {dimension_numbers = #tpu.dot_dimension_numbers<[2], [1], [1], [2], [0, 0, 0, 1, 1, 2], [0], [0]>} : vector<1x8x8xbf16>, vector<1x8x8xbf16>, vector<1x8x8xf32> -> vector<1x8x8xf32>
    "tpu.trace_stop"() : () -> ()
    %313 = vector.shape_cast %312 : vector<1x8x8xf32> to vector<8x8xf32>
    %314 = arith.truncf %313 : vector<8x8xf32> to vector<8x8xbf16>
    %c1_219 = arith.constant 1 : index
    %c0_220 = arith.constant 0 : index
    %c0_221 = arith.constant 0 : index
    %c0_222 = arith.constant 0 : index
    %315 = vector.load %arg10[%c1_219, %c0_220, %c0_221, %c0_222] : memref<2x4x8x32xbf16, #tpu.memory_space<vmem>>, vector<1x1x8x32xbf16>
    %316 = vector.shape_cast %315 : vector<1x1x8x32xbf16> to vector<8x32xbf16>
    %cst_223 = arith.constant dense<0.000000e+00> : vector<8x32xf32>
    %317 = tpu.matmul %314, %316, %cst_223 {dimension_numbers = #tpu.dot_dimension_numbers<[1], [0], [0], [1], [0, 0, 1, 1], [], []>} : vector<8x8xbf16>, vector<8x32xbf16>, vector<8x32xf32> -> vector<8x32xf32>
    %c1_224 = arith.constant 1 : index
    %c1_225 = arith.constant 1 : index
    %c0_226 = arith.constant 0 : index
    %c0_227 = arith.constant 0 : index
    %318 = vector.load %arg4[%c1_224, %c1_225, %c0_226, %c0_227] : memref<2x4x32x8xbf16, #tpu.memory_space<vmem>>, vector<1x1x32x8xbf16>
    %319 = vector.shape_cast %318 : vector<1x1x32x8xbf16> to vector<32x8xbf16>
    %cst_228 = arith.constant dense<0.000000e+00> : vector<8x8xf32>
    %320 = tpu.matmul %272, %319, %cst_228 {dimension_numbers = #tpu.dot_dimension_numbers<[1], [0], [0], [1], [0, 0, 1, 1], [], []>} : vector<8x32xbf16>, vector<32x8xbf16>, vector<8x8xf32> -> vector<8x8xf32>
    %c1_229 = arith.constant 1 : index
    %c1_230 = arith.constant 1 : index
    %c0_231 = arith.constant 0 : index
    %c0_232 = arith.constant 0 : index
    %321 = vector.load %arg5[%c1_229, %c1_230, %c0_231, %c0_232] : memref<2x4x1x8xf32, #tpu.memory_space<vmem>>, vector<1x1x1x8xf32>
    %322 = vector.shape_cast %321 : vector<1x1x1x8xf32> to vector<1x8xf32>
    %323 = vector.broadcast %322 : vector<1x8xf32> to vector<8x8xf32>
    %324 = arith.addf %320, %323 : vector<8x8xf32>
    %325 = vector.shape_cast %324 : vector<8x8xf32> to vector<1x8x8xf32>
    %c1_233 = arith.constant 1 : index
    %c1_234 = arith.constant 1 : index
    %c0_235 = arith.constant 0 : index
    %c0_236 = arith.constant 0 : index
    %326 = vector.load %arg6[%c1_233, %c1_234, %c0_235, %c0_236] : memref<2x4x32x8xbf16, #tpu.memory_space<vmem>>, vector<1x1x32x8xbf16>
    %327 = vector.shape_cast %326 : vector<1x1x32x8xbf16> to vector<32x8xbf16>
    %cst_237 = arith.constant dense<0.000000e+00> : vector<8x8xf32>
    %328 = tpu.matmul %272, %327, %cst_237 {dimension_numbers = #tpu.dot_dimension_numbers<[1], [0], [0], [1], [0, 0, 1, 1], [], []>} : vector<8x32xbf16>, vector<32x8xbf16>, vector<8x8xf32> -> vector<8x8xf32>
    %c1_238 = arith.constant 1 : index
    %c1_239 = arith.constant 1 : index
    %c0_240 = arith.constant 0 : index
    %c0_241 = arith.constant 0 : index
    %329 = vector.load %arg7[%c1_238, %c1_239, %c0_240, %c0_241] : memref<2x4x1x8xf32, #tpu.memory_space<vmem>>, vector<1x1x1x8xf32>
    %330 = vector.shape_cast %329 : vector<1x1x1x8xf32> to vector<1x8xf32>
    %331 = vector.broadcast %330 : vector<1x8xf32> to vector<8x8xf32>
    %332 = arith.addf %328, %331 : vector<8x8xf32>
    %333 = vector.shape_cast %332 : vector<8x8xf32> to vector<1x8x8xf32>
    %c1_242 = arith.constant 1 : index
    %c1_243 = arith.constant 1 : index
    %c0_244 = arith.constant 0 : index
    %c0_245 = arith.constant 0 : index
    %334 = vector.load %arg8[%c1_242, %c1_243, %c0_244, %c0_245] : memref<2x4x32x8xbf16, #tpu.memory_space<vmem>>, vector<1x1x32x8xbf16>
    %335 = vector.shape_cast %334 : vector<1x1x32x8xbf16> to vector<32x8xbf16>
    %cst_246 = arith.constant dense<0.000000e+00> : vector<8x8xf32>
    %336 = tpu.matmul %272, %335, %cst_246 {dimension_numbers = #tpu.dot_dimension_numbers<[1], [0], [0], [1], [0, 0, 1, 1], [], []>} : vector<8x32xbf16>, vector<32x8xbf16>, vector<8x8xf32> -> vector<8x8xf32>
    %c1_247 = arith.constant 1 : index
    %c1_248 = arith.constant 1 : index
    %c0_249 = arith.constant 0 : index
    %c0_250 = arith.constant 0 : index
    %337 = vector.load %arg9[%c1_247, %c1_248, %c0_249, %c0_250] : memref<2x4x1x8xf32, #tpu.memory_space<vmem>>, vector<1x1x1x8xf32>
    %338 = vector.shape_cast %337 : vector<1x1x1x8xf32> to vector<1x8xf32>
    %339 = vector.broadcast %338 : vector<1x8xf32> to vector<8x8xf32>
    %340 = arith.addf %336, %339 : vector<8x8xf32>
    %341 = vector.shape_cast %340 : vector<8x8xf32> to vector<1x8x8xf32>
    %342 = arith.truncf %325 : vector<1x8x8xf32> to vector<1x8x8xbf16>
    %343 = arith.truncf %333 : vector<1x8x8xf32> to vector<1x8x8xbf16>
    "tpu.trace_start"() <{level = 10 : i32, message = "bqe,bke->bqk"}> : () -> ()
    %cst_251 = arith.constant dense<0.000000e+00> : vector<1x8x8xf32>
    %344 = tpu.matmul %342, %343, %cst_251 {dimension_numbers = #tpu.dot_dimension_numbers<[2], [2], [1], [1], [0, 0, 0, 1, 1, 1], [0], [0]>} : vector<1x8x8xbf16>, vector<1x8x8xbf16>, vector<1x8x8xf32> -> vector<1x8x8xf32>
    "tpu.trace_stop"() : () -> ()
    %cst_252 = arith.constant dense<0xFF800000> : vector<1x8xf32>
    %345 = vector.multi_reduction <maximumf>, %344, %cst_252 [2] : vector<1x8x8xf32> to vector<1x8xf32>
    %346 = vector.shape_cast %345 : vector<1x8xf32> to vector<1x8x1xf32>
    %347 = vector.broadcast %346 : vector<1x8x1xf32> to vector<1x8x8xf32>
    %348 = arith.subf %344, %347 : vector<1x8x8xf32>
    %349 = math.exp %348 : vector<1x8x8xf32>
    %cst_253 = arith.constant dense<0.000000e+00> : vector<1x8xf32>
    %350 = vector.multi_reduction <add>, %349, %cst_253 [2] : vector<1x8x8xf32> to vector<1x8xf32>
    %351 = vector.shape_cast %350 : vector<1x8xf32> to vector<1x8x1xf32>
    %352 = tpu.reciprocal %351 {approx = true} : vector<1x8x1xf32> -> vector<1x8x1xf32>
    %353 = vector.broadcast %352 : vector<1x8x1xf32> to vector<1x8x8xf32>
    %354 = arith.mulf %349, %353 : vector<1x8x8xf32>
    %355 = arith.truncf %354 : vector<1x8x8xf32> to vector<1x8x8xbf16>
    %356 = arith.truncf %341 : vector<1x8x8xf32> to vector<1x8x8xbf16>
    "tpu.trace_start"() <{level = 10 : i32, message = "bqk,bke->bqe"}> : () -> ()
    %cst_254 = arith.constant dense<0.000000e+00> : vector<1x8x8xf32>
    %357 = tpu.matmul %355, %356, %cst_254 {dimension_numbers = #tpu.dot_dimension_numbers<[2], [1], [1], [2], [0, 0, 0, 1, 1, 2], [0], [0]>} : vector<1x8x8xbf16>, vector<1x8x8xbf16>, vector<1x8x8xf32> -> vector<1x8x8xf32>
    "tpu.trace_stop"() : () -> ()
    %358 = vector.shape_cast %357 : vector<1x8x8xf32> to vector<8x8xf32>
    %359 = arith.truncf %358 : vector<8x8xf32> to vector<8x8xbf16>
    %c1_255 = arith.constant 1 : index
    %c1_256 = arith.constant 1 : index
    %c0_257 = arith.constant 0 : index
    %c0_258 = arith.constant 0 : index
    %360 = vector.load %arg10[%c1_255, %c1_256, %c0_257, %c0_258] : memref<2x4x8x32xbf16, #tpu.memory_space<vmem>>, vector<1x1x8x32xbf16>
    %361 = vector.shape_cast %360 : vector<1x1x8x32xbf16> to vector<8x32xbf16>
    %cst_259 = arith.constant dense<0.000000e+00> : vector<8x32xf32>
    %362 = tpu.matmul %359, %361, %cst_259 {dimension_numbers = #tpu.dot_dimension_numbers<[1], [0], [0], [1], [0, 0, 1, 1], [], []>} : vector<8x8xbf16>, vector<8x32xbf16>, vector<8x32xf32> -> vector<8x32xf32>
    %363 = arith.addf %317, %362 : vector<8x32xf32>
    %c1_260 = arith.constant 1 : index
    %c2_261 = arith.constant 2 : index
    %c0_262 = arith.constant 0 : index
    %c0_263 = arith.constant 0 : index
    %364 = vector.load %arg4[%c1_260, %c2_261, %c0_262, %c0_263] : memref<2x4x32x8xbf16, #tpu.memory_space<vmem>>, vector<1x1x32x8xbf16>
    %365 = vector.shape_cast %364 : vector<1x1x32x8xbf16> to vector<32x8xbf16>
    %cst_264 = arith.constant dense<0.000000e+00> : vector<8x8xf32>
    %366 = tpu.matmul %272, %365, %cst_264 {dimension_numbers = #tpu.dot_dimension_numbers<[1], [0], [0], [1], [0, 0, 1, 1], [], []>} : vector<8x32xbf16>, vector<32x8xbf16>, vector<8x8xf32> -> vector<8x8xf32>
    %c1_265 = arith.constant 1 : index
    %c2_266 = arith.constant 2 : index
    %c0_267 = arith.constant 0 : index
    %c0_268 = arith.constant 0 : index
    %367 = vector.load %arg5[%c1_265, %c2_266, %c0_267, %c0_268] : memref<2x4x1x8xf32, #tpu.memory_space<vmem>>, vector<1x1x1x8xf32>
    %368 = vector.shape_cast %367 : vector<1x1x1x8xf32> to vector<1x8xf32>
    %369 = vector.broadcast %368 : vector<1x8xf32> to vector<8x8xf32>
    %370 = arith.addf %366, %369 : vector<8x8xf32>
    %371 = vector.shape_cast %370 : vector<8x8xf32> to vector<1x8x8xf32>
    %c1_269 = arith.constant 1 : index
    %c2_270 = arith.constant 2 : index
    %c0_271 = arith.constant 0 : index
    %c0_272 = arith.constant 0 : index
    %372 = vector.load %arg6[%c1_269, %c2_270, %c0_271, %c0_272] : memref<2x4x32x8xbf16, #tpu.memory_space<vmem>>, vector<1x1x32x8xbf16>
    %373 = vector.shape_cast %372 : vector<1x1x32x8xbf16> to vector<32x8xbf16>
    %cst_273 = arith.constant dense<0.000000e+00> : vector<8x8xf32>
    %374 = tpu.matmul %272, %373, %cst_273 {dimension_numbers = #tpu.dot_dimension_numbers<[1], [0], [0], [1], [0, 0, 1, 1], [], []>} : vector<8x32xbf16>, vector<32x8xbf16>, vector<8x8xf32> -> vector<8x8xf32>
    %c1_274 = arith.constant 1 : index
    %c2_275 = arith.constant 2 : index
    %c0_276 = arith.constant 0 : index
    %c0_277 = arith.constant 0 : index
    %375 = vector.load %arg7[%c1_274, %c2_275, %c0_276, %c0_277] : memref<2x4x1x8xf32, #tpu.memory_space<vmem>>, vector<1x1x1x8xf32>
    %376 = vector.shape_cast %375 : vector<1x1x1x8xf32> to vector<1x8xf32>
    %377 = vector.broadcast %376 : vector<1x8xf32> to vector<8x8xf32>
    %378 = arith.addf %374, %377 : vector<8x8xf32>
    %379 = vector.shape_cast %378 : vector<8x8xf32> to vector<1x8x8xf32>
    %c1_278 = arith.constant 1 : index
    %c2_279 = arith.constant 2 : index
    %c0_280 = arith.constant 0 : index
    %c0_281 = arith.constant 0 : index
    %380 = vector.load %arg8[%c1_278, %c2_279, %c0_280, %c0_281] : memref<2x4x32x8xbf16, #tpu.memory_space<vmem>>, vector<1x1x32x8xbf16>
    %381 = vector.shape_cast %380 : vector<1x1x32x8xbf16> to vector<32x8xbf16>
    %cst_282 = arith.constant dense<0.000000e+00> : vector<8x8xf32>
    %382 = tpu.matmul %272, %381, %cst_282 {dimension_numbers = #tpu.dot_dimension_numbers<[1], [0], [0], [1], [0, 0, 1, 1], [], []>} : vector<8x32xbf16>, vector<32x8xbf16>, vector<8x8xf32> -> vector<8x8xf32>
    %c1_283 = arith.constant 1 : index
    %c2_284 = arith.constant 2 : index
    %c0_285 = arith.constant 0 : index
    %c0_286 = arith.constant 0 : index
    %383 = vector.load %arg9[%c1_283, %c2_284, %c0_285, %c0_286] : memref<2x4x1x8xf32, #tpu.memory_space<vmem>>, vector<1x1x1x8xf32>
    %384 = vector.shape_cast %383 : vector<1x1x1x8xf32> to vector<1x8xf32>
    %385 = vector.broadcast %384 : vector<1x8xf32> to vector<8x8xf32>
    %386 = arith.addf %382, %385 : vector<8x8xf32>
    %387 = vector.shape_cast %386 : vector<8x8xf32> to vector<1x8x8xf32>
    %388 = arith.truncf %371 : vector<1x8x8xf32> to vector<1x8x8xbf16>
    %389 = arith.truncf %379 : vector<1x8x8xf32> to vector<1x8x8xbf16>
    "tpu.trace_start"() <{level = 10 : i32, message = "bqe,bke->bqk"}> : () -> ()
    %cst_287 = arith.constant dense<0.000000e+00> : vector<1x8x8xf32>
    %390 = tpu.matmul %388, %389, %cst_287 {dimension_numbers = #tpu.dot_dimension_numbers<[2], [2], [1], [1], [0, 0, 0, 1, 1, 1], [0], [0]>} : vector<1x8x8xbf16>, vector<1x8x8xbf16>, vector<1x8x8xf32> -> vector<1x8x8xf32>
    "tpu.trace_stop"() : () -> ()
    %cst_288 = arith.constant dense<0xFF800000> : vector<1x8xf32>
    %391 = vector.multi_reduction <maximumf>, %390, %cst_288 [2] : vector<1x8x8xf32> to vector<1x8xf32>
    %392 = vector.shape_cast %391 : vector<1x8xf32> to vector<1x8x1xf32>
    %393 = vector.broadcast %392 : vector<1x8x1xf32> to vector<1x8x8xf32>
    %394 = arith.subf %390, %393 : vector<1x8x8xf32>
    %395 = math.exp %394 : vector<1x8x8xf32>
    %cst_289 = arith.constant dense<0.000000e+00> : vector<1x8xf32>
    %396 = vector.multi_reduction <add>, %395, %cst_289 [2] : vector<1x8x8xf32> to vector<1x8xf32>
    %397 = vector.shape_cast %396 : vector<1x8xf32> to vector<1x8x1xf32>
    %398 = tpu.reciprocal %397 {approx = true} : vector<1x8x1xf32> -> vector<1x8x1xf32>
    %399 = vector.broadcast %398 : vector<1x8x1xf32> to vector<1x8x8xf32>
    %400 = arith.mulf %395, %399 : vector<1x8x8xf32>
    %401 = arith.truncf %400 : vector<1x8x8xf32> to vector<1x8x8xbf16>
    %402 = arith.truncf %387 : vector<1x8x8xf32> to vector<1x8x8xbf16>
    "tpu.trace_start"() <{level = 10 : i32, message = "bqk,bke->bqe"}> : () -> ()
    %cst_290 = arith.constant dense<0.000000e+00> : vector<1x8x8xf32>
    %403 = tpu.matmul %401, %402, %cst_290 {dimension_numbers = #tpu.dot_dimension_numbers<[2], [1], [1], [2], [0, 0, 0, 1, 1, 2], [0], [0]>} : vector<1x8x8xbf16>, vector<1x8x8xbf16>, vector<1x8x8xf32> -> vector<1x8x8xf32>
    "tpu.trace_stop"() : () -> ()
    %404 = vector.shape_cast %403 : vector<1x8x8xf32> to vector<8x8xf32>
    %405 = arith.truncf %404 : vector<8x8xf32> to vector<8x8xbf16>
    %c1_291 = arith.constant 1 : index
    %c2_292 = arith.constant 2 : index
    %c0_293 = arith.constant 0 : index
    %c0_294 = arith.constant 0 : index
    %406 = vector.load %arg10[%c1_291, %c2_292, %c0_293, %c0_294] : memref<2x4x8x32xbf16, #tpu.memory_space<vmem>>, vector<1x1x8x32xbf16>
    %407 = vector.shape_cast %406 : vector<1x1x8x32xbf16> to vector<8x32xbf16>
    %cst_295 = arith.constant dense<0.000000e+00> : vector<8x32xf32>
    %408 = tpu.matmul %405, %407, %cst_295 {dimension_numbers = #tpu.dot_dimension_numbers<[1], [0], [0], [1], [0, 0, 1, 1], [], []>} : vector<8x8xbf16>, vector<8x32xbf16>, vector<8x32xf32> -> vector<8x32xf32>
    %409 = arith.addf %363, %408 : vector<8x32xf32>
    %c1_296 = arith.constant 1 : index
    %c3_297 = arith.constant 3 : index
    %c0_298 = arith.constant 0 : index
    %c0_299 = arith.constant 0 : index
    %410 = vector.load %arg4[%c1_296, %c3_297, %c0_298, %c0_299] : memref<2x4x32x8xbf16, #tpu.memory_space<vmem>>, vector<1x1x32x8xbf16>
    %411 = vector.shape_cast %410 : vector<1x1x32x8xbf16> to vector<32x8xbf16>
    %cst_300 = arith.constant dense<0.000000e+00> : vector<8x8xf32>
    %412 = tpu.matmul %272, %411, %cst_300 {dimension_numbers = #tpu.dot_dimension_numbers<[1], [0], [0], [1], [0, 0, 1, 1], [], []>} : vector<8x32xbf16>, vector<32x8xbf16>, vector<8x8xf32> -> vector<8x8xf32>
    %c1_301 = arith.constant 1 : index
    %c3_302 = arith.constant 3 : index
    %c0_303 = arith.constant 0 : index
    %c0_304 = arith.constant 0 : index
    %413 = vector.load %arg5[%c1_301, %c3_302, %c0_303, %c0_304] : memref<2x4x1x8xf32, #tpu.memory_space<vmem>>, vector<1x1x1x8xf32>
    %414 = vector.shape_cast %413 : vector<1x1x1x8xf32> to vector<1x8xf32>
    %415 = vector.broadcast %414 : vector<1x8xf32> to vector<8x8xf32>
    %416 = arith.addf %412, %415 : vector<8x8xf32>
    %417 = vector.shape_cast %416 : vector<8x8xf32> to vector<1x8x8xf32>
    %c1_305 = arith.constant 1 : index
    %c3_306 = arith.constant 3 : index
    %c0_307 = arith.constant 0 : index
    %c0_308 = arith.constant 0 : index
    %418 = vector.load %arg6[%c1_305, %c3_306, %c0_307, %c0_308] : memref<2x4x32x8xbf16, #tpu.memory_space<vmem>>, vector<1x1x32x8xbf16>
    %419 = vector.shape_cast %418 : vector<1x1x32x8xbf16> to vector<32x8xbf16>
    %cst_309 = arith.constant dense<0.000000e+00> : vector<8x8xf32>
    %420 = tpu.matmul %272, %419, %cst_309 {dimension_numbers = #tpu.dot_dimension_numbers<[1], [0], [0], [1], [0, 0, 1, 1], [], []>} : vector<8x32xbf16>, vector<32x8xbf16>, vector<8x8xf32> -> vector<8x8xf32>
    %c1_310 = arith.constant 1 : index
    %c3_311 = arith.constant 3 : index
    %c0_312 = arith.constant 0 : index
    %c0_313 = arith.constant 0 : index
    %421 = vector.load %arg7[%c1_310, %c3_311, %c0_312, %c0_313] : memref<2x4x1x8xf32, #tpu.memory_space<vmem>>, vector<1x1x1x8xf32>
    %422 = vector.shape_cast %421 : vector<1x1x1x8xf32> to vector<1x8xf32>
    %423 = vector.broadcast %422 : vector<1x8xf32> to vector<8x8xf32>
    %424 = arith.addf %420, %423 : vector<8x8xf32>
    %425 = vector.shape_cast %424 : vector<8x8xf32> to vector<1x8x8xf32>
    %c1_314 = arith.constant 1 : index
    %c3_315 = arith.constant 3 : index
    %c0_316 = arith.constant 0 : index
    %c0_317 = arith.constant 0 : index
    %426 = vector.load %arg8[%c1_314, %c3_315, %c0_316, %c0_317] : memref<2x4x32x8xbf16, #tpu.memory_space<vmem>>, vector<1x1x32x8xbf16>
    %427 = vector.shape_cast %426 : vector<1x1x32x8xbf16> to vector<32x8xbf16>
    %cst_318 = arith.constant dense<0.000000e+00> : vector<8x8xf32>
    %428 = tpu.matmul %272, %427, %cst_318 {dimension_numbers = #tpu.dot_dimension_numbers<[1], [0], [0], [1], [0, 0, 1, 1], [], []>} : vector<8x32xbf16>, vector<32x8xbf16>, vector<8x8xf32> -> vector<8x8xf32>
    %c1_319 = arith.constant 1 : index
    %c3_320 = arith.constant 3 : index
    %c0_321 = arith.constant 0 : index
    %c0_322 = arith.constant 0 : index
    %429 = vector.load %arg9[%c1_319, %c3_320, %c0_321, %c0_322] : memref<2x4x1x8xf32, #tpu.memory_space<vmem>>, vector<1x1x1x8xf32>
    %430 = vector.shape_cast %429 : vector<1x1x1x8xf32> to vector<1x8xf32>
    %431 = vector.broadcast %430 : vector<1x8xf32> to vector<8x8xf32>
    %432 = arith.addf %428, %431 : vector<8x8xf32>
    %433 = vector.shape_cast %432 : vector<8x8xf32> to vector<1x8x8xf32>
    %434 = arith.truncf %417 : vector<1x8x8xf32> to vector<1x8x8xbf16>
    %435 = arith.truncf %425 : vector<1x8x8xf32> to vector<1x8x8xbf16>
    "tpu.trace_start"() <{level = 10 : i32, message = "bqe,bke->bqk"}> : () -> ()
    %cst_323 = arith.constant dense<0.000000e+00> : vector<1x8x8xf32>
    %436 = tpu.matmul %434, %435, %cst_323 {dimension_numbers = #tpu.dot_dimension_numbers<[2], [2], [1], [1], [0, 0, 0, 1, 1, 1], [0], [0]>} : vector<1x8x8xbf16>, vector<1x8x8xbf16>, vector<1x8x8xf32> -> vector<1x8x8xf32>
    "tpu.trace_stop"() : () -> ()
    %cst_324 = arith.constant dense<0xFF800000> : vector<1x8xf32>
    %437 = vector.multi_reduction <maximumf>, %436, %cst_324 [2] : vector<1x8x8xf32> to vector<1x8xf32>
    %438 = vector.shape_cast %437 : vector<1x8xf32> to vector<1x8x1xf32>
    %439 = vector.broadcast %438 : vector<1x8x1xf32> to vector<1x8x8xf32>
    %440 = arith.subf %436, %439 : vector<1x8x8xf32>
    %441 = math.exp %440 : vector<1x8x8xf32>
    %cst_325 = arith.constant dense<0.000000e+00> : vector<1x8xf32>
    %442 = vector.multi_reduction <add>, %441, %cst_325 [2] : vector<1x8x8xf32> to vector<1x8xf32>
    %443 = vector.shape_cast %442 : vector<1x8xf32> to vector<1x8x1xf32>
    %444 = tpu.reciprocal %443 {approx = true} : vector<1x8x1xf32> -> vector<1x8x1xf32>
    %445 = vector.broadcast %444 : vector<1x8x1xf32> to vector<1x8x8xf32>
    %446 = arith.mulf %441, %445 : vector<1x8x8xf32>
    %447 = arith.truncf %446 : vector<1x8x8xf32> to vector<1x8x8xbf16>
    %448 = arith.truncf %433 : vector<1x8x8xf32> to vector<1x8x8xbf16>
    "tpu.trace_start"() <{level = 10 : i32, message = "bqk,bke->bqe"}> : () -> ()
    %cst_326 = arith.constant dense<0.000000e+00> : vector<1x8x8xf32>
    %449 = tpu.matmul %447, %448, %cst_326 {dimension_numbers = #tpu.dot_dimension_numbers<[2], [1], [1], [2], [0, 0, 0, 1, 1, 2], [0], [0]>} : vector<1x8x8xbf16>, vector<1x8x8xbf16>, vector<1x8x8xf32> -> vector<1x8x8xf32>
    "tpu.trace_stop"() : () -> ()
    %450 = vector.shape_cast %449 : vector<1x8x8xf32> to vector<8x8xf32>
    %451 = arith.truncf %450 : vector<8x8xf32> to vector<8x8xbf16>
    %c1_327 = arith.constant 1 : index
    %c3_328 = arith.constant 3 : index
    %c0_329 = arith.constant 0 : index
    %c0_330 = arith.constant 0 : index
    %452 = vector.load %arg10[%c1_327, %c3_328, %c0_329, %c0_330] : memref<2x4x8x32xbf16, #tpu.memory_space<vmem>>, vector<1x1x8x32xbf16>
    %453 = vector.shape_cast %452 : vector<1x1x8x32xbf16> to vector<8x32xbf16>
    %cst_331 = arith.constant dense<0.000000e+00> : vector<8x32xf32>
    %454 = tpu.matmul %451, %453, %cst_331 {dimension_numbers = #tpu.dot_dimension_numbers<[1], [0], [0], [1], [0, 0, 1, 1], [], []>} : vector<8x8xbf16>, vector<8x32xbf16>, vector<8x32xf32> -> vector<8x32xf32>
    %455 = arith.addf %409, %454 : vector<8x32xf32>
    %c1_332 = arith.constant 1 : index
    %c0_333 = arith.constant 0 : index
    %c0_334 = arith.constant 0 : index
    %456 = vector.load %arg11[%c1_332, %c0_333, %c0_334] : memref<2x1x32xf32, #tpu.memory_space<vmem>>, vector<1x1x32xf32>
    %457 = vector.shape_cast %456 : vector<1x1x32xf32> to vector<1x32xf32>
    %458 = vector.broadcast %457 : vector<1x32xf32> to vector<8x32xf32>
    %459 = arith.addf %455, %458 : vector<8x32xf32>
    %460 = arith.addf %271, %459 : vector<8x32xf32>
    %c1_335 = arith.constant 1 : index
    %c0_336 = arith.constant 0 : index
    %c0_337 = arith.constant 0 : index
    %461 = vector.load %arg12[%c1_335, %c0_336, %c0_337] : memref<2x1x32xf32, #tpu.memory_space<vmem>>, vector<1x1x32xf32>
    %462 = vector.shape_cast %461 : vector<1x1x32xf32> to vector<1x32xf32>
    %c1_338 = arith.constant 1 : index
    %c0_339 = arith.constant 0 : index
    %c0_340 = arith.constant 0 : index
    %463 = vector.load %arg13[%c1_338, %c0_339, %c0_340] : memref<2x1x32xf32, #tpu.memory_space<vmem>>, vector<1x1x32xf32>
    %464 = vector.shape_cast %463 : vector<1x1x32xf32> to vector<1x32xf32>
    %cst_341 = arith.constant dense<0.000000e+00> : vector<8xf32>
    %465 = vector.multi_reduction <add>, %460, %cst_341 [1] : vector<8x32xf32> to vector<8xf32>
    %466 = vector.shape_cast %465 : vector<8xf32> to vector<8x1xf32>
    %cst_342 = arith.constant 3.200000e+01 : f32
    %467 = vector.broadcast %cst_342 : f32 to vector<8x1xf32>
    %468 = arith.divf %466, %467 : vector<8x1xf32>
    %469 = vector.broadcast %468 : vector<8x1xf32> to vector<8x32xf32>
    %470 = arith.subf %460, %469 : vector<8x32xf32>
    %471 = arith.mulf %470, %470 : vector<8x32xf32>
    %cst_343 = arith.constant dense<0.000000e+00> : vector<8xf32>
    %472 = vector.multi_reduction <add>, %471, %cst_343 [1] : vector<8x32xf32> to vector<8xf32>
    %473 = vector.shape_cast %472 : vector<8xf32> to vector<8x1xf32>
    %cst_344 = arith.constant 3.200000e+01 : f32
    %474 = vector.broadcast %cst_344 : f32 to vector<8x1xf32>
    %475 = arith.divf %473, %474 : vector<8x1xf32>
    %476 = vector.broadcast %468 : vector<8x1xf32> to vector<8x32xf32>
    %477 = arith.subf %460, %476 : vector<8x32xf32>
    %cst_345 = arith.constant 9.99999974E-6 : f32
    %478 = vector.broadcast %cst_345 : f32 to vector<8x1xf32>
    %479 = arith.addf %475, %478 : vector<8x1xf32>
    %480 = math.rsqrt %479 : vector<8x1xf32>
    %481 = vector.broadcast %480 : vector<8x1xf32> to vector<8x32xf32>
    %482 = arith.mulf %477, %481 : vector<8x32xf32>
    %483 = vector.broadcast %462 : vector<1x32xf32> to vector<8x32xf32>
    %484 = arith.mulf %482, %483 : vector<8x32xf32>
    %485 = vector.broadcast %464 : vector<1x32xf32> to vector<8x32xf32>
    %486 = arith.addf %484, %485 : vector<8x32xf32>
    %487 = arith.truncf %486 : vector<8x32xf32> to vector<8x32xbf16>
    %c1_346 = arith.constant 1 : index
    %c0_347 = arith.constant 0 : index
    %c0_348 = arith.constant 0 : index
    %488 = vector.load %arg14[%c1_346, %c0_347, %c0_348] : memref<2x32x64xbf16, #tpu.memory_space<vmem>>, vector<1x32x64xbf16>
    %489 = vector.shape_cast %488 : vector<1x32x64xbf16> to vector<32x64xbf16>
    %cst_349 = arith.constant dense<0.000000e+00> : vector<8x64xf32>
    %490 = tpu.matmul %487, %489, %cst_349 {dimension_numbers = #tpu.dot_dimension_numbers<[1], [0], [0], [1], [0, 0, 1, 1], [], []>} : vector<8x32xbf16>, vector<32x64xbf16>, vector<8x64xf32> -> vector<8x64xf32>
    %c1_350 = arith.constant 1 : index
    %c0_351 = arith.constant 0 : index
    %c0_352 = arith.constant 0 : index
    %491 = vector.load %arg15[%c1_350, %c0_351, %c0_352] : memref<2x1x64xf32, #tpu.memory_space<vmem>>, vector<1x1x64xf32>
    %492 = vector.shape_cast %491 : vector<1x1x64xf32> to vector<1x64xf32>
    %493 = vector.broadcast %492 : vector<1x64xf32> to vector<8x64xf32>
    %494 = arith.addf %490, %493 : vector<8x64xf32>
    %cst_353 = arith.constant 0.000000e+00 : f32
    %495 = vector.broadcast %cst_353 : f32 to vector<8x64xf32>
    %496 = arith.maximumf %494, %495 : vector<8x64xf32>
    %497 = arith.truncf %496 : vector<8x64xf32> to vector<8x64xbf16>
    %c1_354 = arith.constant 1 : index
    %c0_355 = arith.constant 0 : index
    %c0_356 = arith.constant 0 : index
    %498 = vector.load %arg16[%c1_354, %c0_355, %c0_356] : memref<2x64x32xbf16, #tpu.memory_space<vmem>>, vector<1x64x32xbf16>
    %499 = vector.shape_cast %498 : vector<1x64x32xbf16> to vector<64x32xbf16>
    %cst_357 = arith.constant dense<0.000000e+00> : vector<8x32xf32>
    %500 = tpu.matmul %497, %499, %cst_357 {dimension_numbers = #tpu.dot_dimension_numbers<[1], [0], [0], [1], [0, 0, 1, 1], [], []>} : vector<8x64xbf16>, vector<64x32xbf16>, vector<8x32xf32> -> vector<8x32xf32>
    %c1_358 = arith.constant 1 : index
    %c0_359 = arith.constant 0 : index
    %c0_360 = arith.constant 0 : index
    %501 = vector.load %arg17[%c1_358, %c0_359, %c0_360] : memref<2x1x32xf32, #tpu.memory_space<vmem>>, vector<1x1x32xf32>
    %502 = vector.shape_cast %501 : vector<1x1x32xf32> to vector<1x32xf32>
    %503 = vector.broadcast %502 : vector<1x32xf32> to vector<8x32xf32>
    %504 = arith.addf %500, %503 : vector<8x32xf32>
    %505 = arith.addf %486, %504 : vector<8x32xf32>
    %c1_361 = arith.constant 1 : index
    %c0_362 = arith.constant 0 : index
    %c0_363 = arith.constant 0 : index
    %506 = vector.load %arg18[%c1_361, %c0_362, %c0_363] : memref<2x1x32xf32, #tpu.memory_space<vmem>>, vector<1x1x32xf32>
    %507 = vector.shape_cast %506 : vector<1x1x32xf32> to vector<1x32xf32>
    %c1_364 = arith.constant 1 : index
    %c0_365 = arith.constant 0 : index
    %c0_366 = arith.constant 0 : index
    %508 = vector.load %arg19[%c1_364, %c0_365, %c0_366] : memref<2x1x32xf32, #tpu.memory_space<vmem>>, vector<1x1x32xf32>
    %509 = vector.shape_cast %508 : vector<1x1x32xf32> to vector<1x32xf32>
    %cst_367 = arith.constant dense<0.000000e+00> : vector<8xf32>
    %510 = vector.multi_reduction <add>, %505, %cst_367 [1] : vector<8x32xf32> to vector<8xf32>
    %511 = vector.shape_cast %510 : vector<8xf32> to vector<8x1xf32>
    %cst_368 = arith.constant 3.200000e+01 : f32
    %512 = vector.broadcast %cst_368 : f32 to vector<8x1xf32>
    %513 = arith.divf %511, %512 : vector<8x1xf32>
    %514 = vector.broadcast %513 : vector<8x1xf32> to vector<8x32xf32>
    %515 = arith.subf %505, %514 : vector<8x32xf32>
    %516 = arith.mulf %515, %515 : vector<8x32xf32>
    %cst_369 = arith.constant dense<0.000000e+00> : vector<8xf32>
    %517 = vector.multi_reduction <add>, %516, %cst_369 [1] : vector<8x32xf32> to vector<8xf32>
    %518 = vector.shape_cast %517 : vector<8xf32> to vector<8x1xf32>
    %cst_370 = arith.constant 3.200000e+01 : f32
    %519 = vector.broadcast %cst_370 : f32 to vector<8x1xf32>
    %520 = arith.divf %518, %519 : vector<8x1xf32>
    %521 = vector.broadcast %513 : vector<8x1xf32> to vector<8x32xf32>
    %522 = arith.subf %505, %521 : vector<8x32xf32>
    %cst_371 = arith.constant 9.99999974E-6 : f32
    %523 = vector.broadcast %cst_371 : f32 to vector<8x1xf32>
    %524 = arith.addf %520, %523 : vector<8x1xf32>
    %525 = math.rsqrt %524 : vector<8x1xf32>
    %526 = vector.broadcast %525 : vector<8x1xf32> to vector<8x32xf32>
    %527 = arith.mulf %522, %526 : vector<8x32xf32>
    %528 = vector.broadcast %507 : vector<1x32xf32> to vector<8x32xf32>
    %529 = arith.mulf %527, %528 : vector<8x32xf32>
    %530 = vector.broadcast %509 : vector<1x32xf32> to vector<8x32xf32>
    %531 = arith.addf %529, %530 : vector<8x32xf32>
    %532 = vector.shape_cast %531 : vector<8x32xf32> to vector<1x8x32xf32>
    %533 = vector.extract_strided_slice %532 {offsets = [0, 7, 0], sizes = [1, 1, 32], strides = [1, 1, 1]} : vector<1x8x32xf32> to vector<1x1x32xf32>
    %534 = vector.shape_cast %533 : vector<1x1x32xf32> to vector<1x32xf32>
    %c0_372 = arith.constant 0 : index
    %c0_373 = arith.constant 0 : index
    %535 = vector.load %arg20[%c0_372, %c0_373] : memref<1x32xf32, #tpu.memory_space<vmem>>, vector<1x32xf32>
    %c0_374 = arith.constant 0 : index
    %c0_375 = arith.constant 0 : index
    %536 = vector.load %arg21[%c0_374, %c0_375] : memref<1x32xf32, #tpu.memory_space<vmem>>, vector<1x32xf32>
    %cst_376 = arith.constant dense<0.000000e+00> : vector<1xf32>
    %537 = vector.multi_reduction <add>, %534, %cst_376 [1] : vector<1x32xf32> to vector<1xf32>
    %538 = vector.shape_cast %537 : vector<1xf32> to vector<1x1xf32>
    %cst_377 = arith.constant 3.200000e+01 : f32
    %539 = vector.broadcast %cst_377 : f32 to vector<1x1xf32>
    %540 = arith.divf %538, %539 : vector<1x1xf32>
    %541 = vector.broadcast %540 : vector<1x1xf32> to vector<1x32xf32>
    %542 = arith.subf %534, %541 : vector<1x32xf32>
    %543 = arith.mulf %542, %542 : vector<1x32xf32>
    %cst_378 = arith.constant dense<0.000000e+00> : vector<1xf32>
    %544 = vector.multi_reduction <add>, %543, %cst_378 [1] : vector<1x32xf32> to vector<1xf32>
    %545 = vector.shape_cast %544 : vector<1xf32> to vector<1x1xf32>
    %cst_379 = arith.constant 3.200000e+01 : f32
    %546 = vector.broadcast %cst_379 : f32 to vector<1x1xf32>
    %547 = arith.divf %545, %546 : vector<1x1xf32>
    %548 = vector.broadcast %540 : vector<1x1xf32> to vector<1x32xf32>
    %549 = arith.subf %534, %548 : vector<1x32xf32>
    %cst_380 = arith.constant 9.99999974E-6 : f32
    %550 = vector.broadcast %cst_380 : f32 to vector<1x1xf32>
    %551 = arith.addf %547, %550 : vector<1x1xf32>
    %552 = math.rsqrt %551 : vector<1x1xf32>
    %553 = vector.broadcast %552 : vector<1x1xf32> to vector<1x32xf32>
    %554 = arith.mulf %549, %553 : vector<1x32xf32>
    %555 = arith.mulf %554, %535 : vector<1x32xf32>
    %556 = arith.addf %555, %536 : vector<1x32xf32>
    %557 = arith.truncf %556 : vector<1x32xf32> to vector<1x32xbf16>
    %c0_381 = arith.constant 0 : index
    %c0_382 = arith.constant 0 : index
    %558 = vector.load %arg22[%c0_381, %c0_382] : memref<32x16xbf16, #tpu.memory_space<vmem>>, vector<32x16xbf16>
    %cst_383 = arith.constant dense<0.000000e+00> : vector<1x16xf32>
    %559 = tpu.matmul %557, %558, %cst_383 {dimension_numbers = #tpu.dot_dimension_numbers<[1], [0], [0], [1], [0, 0, 1, 1], [], []>} : vector<1x32xbf16>, vector<32x16xbf16>, vector<1x16xf32> -> vector<1x16xf32>
    %cst_384 = arith.constant 0.000000e+00 : f32
    %560 = vector.broadcast %cst_384 : f32 to vector<1x16xf32>
    %561 = arith.maximumf %559, %560 : vector<1x16xf32>
    %c0_385 = arith.constant 0 : index
    %c0_386 = arith.constant 0 : index
    %562 = vector.load %arg23[%c0_385, %c0_386] : memref<1x16xf32, #tpu.memory_space<vmem>>, vector<1x16xf32>
    %563 = arith.mulf %561, %562 : vector<1x16xf32>
    %cst_387 = arith.constant dense<0.000000e+00> : vector<1xf32>
    %564 = vector.multi_reduction <add>, %563, %cst_387 [1] : vector<1x16xf32> to vector<1xf32>
    %565 = vector.shape_cast %564 : vector<1xf32> to vector<1x1xf32>
    %566 = vector.shape_cast %565 : vector<1x1xf32> to vector<1x1x1xf32>
    %c0_388 = arith.constant 0 : index
    %c0_389 = arith.constant 0 : index
    %c0_390 = arith.constant 0 : index
    %567 = vector.load %arg24[%c0_388, %c0_389, %c0_390] : memref<1x1x1xf32, #tpu.memory_space<vmem>>, vector<1x1x1xf32>
    tpu.vector_store %arg24[%c0_388, %c0_389, %c0_390], %566 {strides = array<i32>} : memref<1x1x1xf32, #tpu.memory_space<vmem>>, vector<1x1x1xf32>,
    return
  }
  func.func @transform_0(%arg0: i32) -> (i32, i32, i32) {
    %c0_i32 = arith.constant 0 : i32
    %c0_i32_0 = arith.constant 0 : i32
    %c0_i32_1 = arith.constant 0 : i32
    return %arg0, %c0_i32, %c0_i32_0 : i32, i32, i32
  }
  func.func @transform_1(%arg0: i32) -> (i32, i32) {
    %c0_i32 = arith.constant 0 : i32
    %c0_i32_0 = arith.constant 0 : i32
    %c0_i32_1 = arith.constant 0 : i32
    return %c0_i32, %c0_i32_0 : i32, i32
  }
  func.func @transform_2(%arg0: i32) -> (i32, i32) {
    %c0_i32 = arith.constant 0 : i32
    %c0_i32_0 = arith.constant 0 : i32
    %c0_i32_1 = arith.constant 0 : i32
    return %c0_i32, %c0_i32_0 : i32, i32
  }
  func.func @transform_3(%arg0: i32) -> (i32, i32, i32, i32) {
    %c0_i32 = arith.constant 0 : i32
    %c0_i32_0 = arith.constant 0 : i32
    %c0_i32_1 = arith.constant 0 : i32
    %c0_i32_2 = arith.constant 0 : i32
    %c0_i32_3 = arith.constant 0 : i32
    return %c0_i32, %c0_i32_0, %c0_i32_1, %c0_i32_2 : i32, i32, i32, i32
  }
  func.func @transform_4(%arg0: i32) -> (i32, i32, i32, i32) {
    %c0_i32 = arith.constant 0 : i32
    %c0_i32_0 = arith.constant 0 : i32
    %c0_i32_1 = arith.constant 0 : i32
    %c0_i32_2 = arith.constant 0 : i32
    %c0_i32_3 = arith.constant 0 : i32
    return %c0_i32, %c0_i32_0, %c0_i32_1, %c0_i32_2 : i32, i32, i32, i32
  }
  func.func @transform_5(%arg0: i32) -> (i32, i32, i32, i32) {
    %c0_i32 = arith.constant 0 : i32
    %c0_i32_0 = arith.constant 0 : i32
    %c0_i32_1 = arith.constant 0 : i32
    %c0_i32_2 = arith.constant 0 : i32
    %c0_i32_3 = arith.constant 0 : i32
    return %c0_i32, %c0_i32_0, %c0_i32_1, %c0_i32_2 : i32, i32, i32, i32
  }
  func.func @transform_6(%arg0: i32) -> (i32, i32, i32, i32) {
    %c0_i32 = arith.constant 0 : i32
    %c0_i32_0 = arith.constant 0 : i32
    %c0_i32_1 = arith.constant 0 : i32
    %c0_i32_2 = arith.constant 0 : i32
    %c0_i32_3 = arith.constant 0 : i32
    return %c0_i32, %c0_i32_0, %c0_i32_1, %c0_i32_2 : i32, i32, i32, i32
  }
  func.func @transform_7(%arg0: i32) -> (i32, i32, i32, i32) {
    %c0_i32 = arith.constant 0 : i32
    %c0_i32_0 = arith.constant 0 : i32
    %c0_i32_1 = arith.constant 0 : i32
    %c0_i32_2 = arith.constant 0 : i32
    %c0_i32_3 = arith.constant 0 : i32
    return %c0_i32, %c0_i32_0, %c0_i32_1, %c0_i32_2 : i32, i32, i32, i32
  }
  func.func @transform_8(%arg0: i32) -> (i32, i32, i32, i32) {
    %c0_i32 = arith.constant 0 : i32
    %c0_i32_0 = arith.constant 0 : i32
    %c0_i32_1 = arith.constant 0 : i32
    %c0_i32_2 = arith.constant 0 : i32
    %c0_i32_3 = arith.constant 0 : i32
    return %c0_i32, %c0_i32_0, %c0_i32_1, %c0_i32_2 : i32, i32, i32, i32
  }
  func.func @transform_9(%arg0: i32) -> (i32, i32, i32, i32) {
    %c0_i32 = arith.constant 0 : i32
    %c0_i32_0 = arith.constant 0 : i32
    %c0_i32_1 = arith.constant 0 : i32
    %c0_i32_2 = arith.constant 0 : i32
    %c0_i32_3 = arith.constant 0 : i32
    return %c0_i32, %c0_i32_0, %c0_i32_1, %c0_i32_2 : i32, i32, i32, i32
  }
  func.func @transform_10(%arg0: i32) -> (i32, i32, i32) {
    %c0_i32 = arith.constant 0 : i32
    %c0_i32_0 = arith.constant 0 : i32
    %c0_i32_1 = arith.constant 0 : i32
    %c0_i32_2 = arith.constant 0 : i32
    return %c0_i32, %c0_i32_0, %c0_i32_1 : i32, i32, i32
  }
  func.func @transform_11(%arg0: i32) -> (i32, i32, i32) {
    %c0_i32 = arith.constant 0 : i32
    %c0_i32_0 = arith.constant 0 : i32
    %c0_i32_1 = arith.constant 0 : i32
    %c0_i32_2 = arith.constant 0 : i32
    return %c0_i32, %c0_i32_0, %c0_i32_1 : i32, i32, i32
  }
  func.func @transform_12(%arg0: i32) -> (i32, i32, i32) {
    %c0_i32 = arith.constant 0 : i32
    %c0_i32_0 = arith.constant 0 : i32
    %c0_i32_1 = arith.constant 0 : i32
    %c0_i32_2 = arith.constant 0 : i32
    return %c0_i32, %c0_i32_0, %c0_i32_1 : i32, i32, i32
  }
  func.func @transform_13(%arg0: i32) -> (i32, i32, i32) {
    %c0_i32 = arith.constant 0 : i32
    %c0_i32_0 = arith.constant 0 : i32
    %c0_i32_1 = arith.constant 0 : i32
    %c0_i32_2 = arith.constant 0 : i32
    return %c0_i32, %c0_i32_0, %c0_i32_1 : i32, i32, i32
  }
  func.func @transform_14(%arg0: i32) -> (i32, i32, i32) {
    %c0_i32 = arith.constant 0 : i32
    %c0_i32_0 = arith.constant 0 : i32
    %c0_i32_1 = arith.constant 0 : i32
    %c0_i32_2 = arith.constant 0 : i32
    return %c0_i32, %c0_i32_0, %c0_i32_1 : i32, i32, i32
  }
  func.func @transform_15(%arg0: i32) -> (i32, i32, i32) {
    %c0_i32 = arith.constant 0 : i32
    %c0_i32_0 = arith.constant 0 : i32
    %c0_i32_1 = arith.constant 0 : i32
    %c0_i32_2 = arith.constant 0 : i32
    return %c0_i32, %c0_i32_0, %c0_i32_1 : i32, i32, i32
  }
  func.func @transform_16(%arg0: i32) -> (i32, i32, i32) {
    %c0_i32 = arith.constant 0 : i32
    %c0_i32_0 = arith.constant 0 : i32
    %c0_i32_1 = arith.constant 0 : i32
    %c0_i32_2 = arith.constant 0 : i32
    return %c0_i32, %c0_i32_0, %c0_i32_1 : i32, i32, i32
  }
  func.func @transform_17(%arg0: i32) -> (i32, i32, i32) {
    %c0_i32 = arith.constant 0 : i32
    %c0_i32_0 = arith.constant 0 : i32
    %c0_i32_1 = arith.constant 0 : i32
    %c0_i32_2 = arith.constant 0 : i32
    return %c0_i32, %c0_i32_0, %c0_i32_1 : i32, i32, i32
  }
  func.func @transform_18(%arg0: i32) -> (i32, i32, i32) {
    %c0_i32 = arith.constant 0 : i32
    %c0_i32_0 = arith.constant 0 : i32
    %c0_i32_1 = arith.constant 0 : i32
    %c0_i32_2 = arith.constant 0 : i32
    return %c0_i32, %c0_i32_0, %c0_i32_1 : i32, i32, i32
  }
  func.func @transform_19(%arg0: i32) -> (i32, i32) {
    %c0_i32 = arith.constant 0 : i32
    %c0_i32_0 = arith.constant 0 : i32
    %c0_i32_1 = arith.constant 0 : i32
    return %c0_i32, %c0_i32_0 : i32, i32
  }
  func.func @transform_20(%arg0: i32) -> (i32, i32) {
    %c0_i32 = arith.constant 0 : i32
    %c0_i32_0 = arith.constant 0 : i32
    %c0_i32_1 = arith.constant 0 : i32
    return %c0_i32, %c0_i32_0 : i32, i32
  }
  func.func @transform_21(%arg0: i32) -> (i32, i32) {
    %c0_i32 = arith.constant 0 : i32
    %c0_i32_0 = arith.constant 0 : i32
    %c0_i32_1 = arith.constant 0 : i32
    return %c0_i32, %c0_i32_0 : i32, i32
  }
  func.func @transform_22(%arg0: i32) -> (i32, i32) {
    %c0_i32 = arith.constant 0 : i32
    %c0_i32_0 = arith.constant 0 : i32
    %c0_i32_1 = arith.constant 0 : i32
    return %c0_i32, %c0_i32_0 : i32, i32
  }
  func.func @transform_23(%arg0: i32) -> (i32, i32, i32) {
    %c0_i32 = arith.constant 0 : i32
    %c0_i32_0 = arith.constant 0 : i32
    %c0_i32_1 = arith.constant 0 : i32
    return %arg0, %c0_i32, %c0_i32_0 : i32, i32, i32
  }
}

</mosaic_0001>

<bundles_post_ra>
// kernel: trans_forward.1
= control target key start
LH: loop header
LB: loop body
LE: loop exit
PB: predicated region body
PF: predicated region fallthrough
CT: control target
= control target key end

     0   :  { %s5949_s0 = inlined_call_operand.vmem [shape: f32[2,8,16], index: 0, kind: input, shape index: {}]   ;;  %s5950_s1 = inlined_call_operand.vmem [shape: f32[8,32], index: 1, kind: input, shape index: {}]   ;;  %s5951_s2 = inlined_call_operand.vmem [shape: bf16[16,32], index: 2, kind: input, shape index: {}]   ;;  %s5952_s3 = inlined_call_operand.vmem [shape: bf16[2,4,32,8], index: 3, kind: input, shape index: {}]   ;;  %s5953_s4 = inlined_call_operand.vmem [shape: f32[2,4,1,8], index: 4, kind: input, shape index: {}]   ;;  %s5954_s5 = inlined_call_operand.vmem [shape: bf16[2,4,32,8], index: 5, kind: input, shape index: {}]   ;;  %s5955_s6 = inlined_call_operand.vmem [shape: f32[2,4,1,8], index: 6, kind: input, shape index: {}]   ;;  %s5956_s7 = inlined_call_operand.vmem [shape: bf16[2,4,32,8], index: 7, kind: input, shape index: {}]   ;;  %s5957_s8 = inlined_call_operand.vmem [shape: f32[2,4,1,8], index: 8, kind: input, shape index: {}]   ;;  %s5958_s9 = inlined_call_operand.vmem [shape: bf16[2,4,8,32], index: 9, kind: input, shape index: {}]   ;;  %s5959_s10 = inlined_call_operand.vmem [shape: f32[2,1,32], index: 10, kind: input, shape index: {}]   ;;  %s5960_s11 = inlined_call_operand.vmem [shape: f32[2,1,32], index: 11, kind: input, shape index: {}]   ;;  %s5961_s12 = inlined_call_operand.vmem [shape: f32[2,1,32], index: 12, kind: input, shape index: {}]   ;;  %s5962_s13 = inlined_call_operand.vmem [shape: bf16[2,32,64], index: 13, kind: input, shape index: {}]   ;;  %s5963_s14 = inlined_call_operand.vmem [shape: f32[2,1,64], index: 14, kind: input, shape index: {}]   ;;  %s5964_s15 = inlined_call_operand.vmem [shape: bf16[2,64,32], index: 15, kind: input, shape index: {}]   ;;  %s5965_s16 = inlined_call_operand.vmem [shape: f32[2,1,32], index: 16, kind: input, shape index: {}]   ;;  %s5966_s17 = inlined_call_operand.vmem [shape: f32[2,1,32], index: 17, kind: input, shape index: {}]   ;;  %s5967_s18 = inlined_call_operand.vmem [shape: f32[2,1,32], index: 18, kind: input, shape index: {}]   ;;  %s5968_s19 = inlined_call_operand.vmem [shape: f32[1,32], index: 19, kind: input, shape index: {}]   ;;  %s5969_s20 = inlined_call_operand.vmem [shape: f32[1,32], index: 20, kind: input, shape index: {}]   ;;  %s5970_s21 = inlined_call_operand.vmem [shape: bf16[32,16], index: 21, kind: input, shape index: {}]   ;;  %s5971_s22 = inlined_call_operand.vmem [shape: f32[1,16], index: 22, kind: input, shape index: {}]   ;;  %s5972_s23 = inlined_call_operand.vmem [shape: f32[2,1,1], index: 23, kind: output, shape index: {}]  }
   0x1   :  { %5978 = sst [smem:[#allocation2_spill]] %s5949_s0 }
   0x2   :  { %5979 = sst [smem:[#allocation3_spill]] %s5950_s1 }
   0x3   :  { %5980 = sst [smem:[#allocation4_spill]] %s5951_s2 }
   0x4   :  { %5981 = sst [smem:[#allocation5_spill]] %s5952_s3 }
   0x5   :  { %5982 = sst [smem:[#allocation6_spill]] %s5953_s4  ;;  %s5249_s4 = smov 0  }
   0x6   :  { %5983 = sst [smem:[#allocation7_spill]] %s5954_s5 }
   0x7   :  { %5984 = sst [smem:[#allocation8_spill]] %s5955_s6 }
   0x8   :  { %5985 = sst [smem:[#allocation9_spill]] %s5956_s7 }
   0x9 LB: > { %s4177_s30 = sadd.s32 4294967295, %s5125_s4   ;;  %p4181_p0 = scmp.ge.s32.totalorder %s5125_s4, 1  ;;  %s5125_s4 = sphi %s5249_s4, %s33_s4  }
   0xa   : > { %p636_p1 = scmp.lt.s32.totalorder %s5125_s4, 3 }
   0xc   : > { %p637_p2 = pnand %p4181_p0, %p636_p1 }
   0xd   : > { %s5986_s5 = sld [smem:[#allocation4_spill]] (!%p637_p2)  ;;  %v5127_v1 = vmov (!%p637_p2), 0.0   ;;  %p697_p3 = scmp.lt.s32.totalorder (!%p637_p2), %s4177_s30, 1  ;;  %vm5128_vm0 = vmmov (!%p637_p2), 0   ;;  %vm715_vm1 = vcmask (!%p637_p2), 130048   ;;  %vm786_vm2 = vcmask (!%p637_p2), 261120  }
   0xe   : > { %640 = sbr.rel (%p637_p2) target bundleno = 10826 (0x2a4a), region = 112  ;;  %4614 = vmatprep.subr.bf16.mxu0 (!%p637_p2), %v5127_v1  ;;  %4620 = vmatprep.subr.bf16.mxu1 (!%p637_p2), %v5127_v1  ;;  %s5987_s6 = sld [smem:[#allocation2_spill]] (!%p637_p2)  ;;  %vm958_vm3 = vcmask (!%p637_p2), 64512   ;;  %v4193_v31 = vld [vmem:[%s5957_s8] ss:$0 sm:$0xff] (!%p637_p2)  ;;  %vm1021_vm4 = vcmask (!%p637_p2), 1043456  }
   0xf   : > { %4616 = vmatprep.mubr.msk.bf16.mxu0 (!%p637_p2), %vm5128_vm0, %v5127_v1  ;;  %4624 = vmatprep.mubr.msk.bf16.mxu1 (!%p637_p2), %vm5128_vm0, %v5127_v1  ;;  %s5988_s29 = sld [smem:[#allocation5_spill]] (!%p637_p2)  ;;  %s5989_s24 = sld [smem:[#allocation7_spill]] (!%p637_p2)  ;;  %v4222_v54 = vld [vmem:[%s5957_s8 + $0x1] ss:$0 sm:$0xff] (!%p637_p2)  ;;  %vm2315_vm5 = vcmask (!%p637_p2), 523264   ;;  %vm4029_vm6 = vcmask (!%p637_p2), 261127  }
  0x10   : > { %s5991_s3 = sld [smem:[#allocation9_spill]] (!%p637_p2)  ;;  %s5992_s26 = sld [smem:[#allocation8_spill]] (!%p637_p2)  ;;  %vm4124_vm7 = vcmask (!%p637_p2), 122880   ;;  %vm4128_vm8 = vcmask (!%p637_p2), 0  }
  0x13   : > { %v5014_v0 = vld [vmem:[%s5986_s5] sm:$0xff] (!%p637_p2)  }
  0x14   : > { %4615 = vmatpush3.bf16.msra.mxu0 (!%p637_p2), %v5014_v0 }
  0x15   : > { %s5995_s30 = smov (!%p697_p3, %s4177_s30), 1  ;;  %4628 = vmatprep.subr.bf16.mxu0 %v5127_v1  ;;  %v5015_v4 = vld [vmem:[%s5988_s29] sm:$0xff]   ;;  %v5017_v6 = vld [vmem:[%s5988_s29 + $0x8] sm:$0xff]   ;;  %v5021_v37 = vld [vmem:[%s5988_s29 + $0x10] sm:$0xff]  }
  0x16   : > { %s4182_s1 = sshll.u32 %s5995_s30, 3  ;;  %v5016_v5 = vld [vmem:[%s5989_s24] sm:$0xff]   ;;  %4621 = vmatpush3.bf16.msra.mxu1 %v5015_v4  ;;  %v5018_v7 = vld [vmem:[%s5989_s24 + $0x8] sm:$0xff]   ;;  %v5022_v42 = vld [vmem:[%s5988_s29 + $0x18] sm:$0xff]   ;;  %s703_s7 = scalar_lea.vmem %s5972_s23, %s5995_s30 }
  0x17   : > { %s700_s27 = scalar_lea.vmem %s5987_s6, %s4182_s1  ;;  %4622 = vmatprep.subr.bf16.mxu1 %v5127_v1  ;;  %v5019_v15 = vld [vmem:[%s5991_s3] sm:$0xff]   ;;  %v5020_v17 = vld [vmem:[%s5991_s3 + $0x8] sm:$0xff]   ;;  %v5023_v43 = vld [vmem:[%s5991_s3 + $0x10] sm:$0xff]  }
  0x18   : > { %v705_v2 = vld [vmem:[%s700_s27] sm:$0xff]  ;;  %s5990_s27 = sld [smem:[#allocation3_spill]]  ;;  %v5024_v44 = vld [vmem:[%s5991_s3 + $0x18] sm:$0xff]  }
  0x19   : > { %v706_v3 = vpack.c.bf16 %v705_v2, %v705_v2  ;;  %v4189_v18 = vld [vmem:[%s5992_s26] ss:$0 sm:$0xff] }
  0x1a   : > { %4623 = vmatpush3.bf16.msra.mxu1 %v5017_v6 }
  0x1b   : > { %4617 = vmatmul.mubr.msk.bf16.vlgmr.msra.gmra.mrb[0].mxu0 %vm715_vm1, %v706_v3  ;;  %4636 = vmatprep.subr.bf16.mxu1 %v5127_v1 }
  0x1c   : > { %4632 = vmatprep.mubr.msk.bf16.mxu0 %vm5128_vm0, %v5127_v1  ;;  %4629 = vmatpush3.bf16.msra.mxu0 %v5016_v5 }
  0x1d   : > { %4630 = vmatprep.subr.bf16.mxu0 %v5127_v1 }
  0x1e   : > { %v760_v9 = vld [vmem:[%s5990_s27] sm:$0xff]  ;;  %s5993_s27 = sld [smem:[#allocation6_spill]] }
  0x20   : > { %4631 = vmatpush3.bf16.msra.mxu0 %v5018_v7  ;;  %v5025_v7 = vld [vmem:[%s5989_s24 + $0x10] sm:$0xff]  }
  0x21   : > { %4644 = vmatprep.subr.bf16.mxu0 %v5127_v1 }
  0x24   : > { %v4185_v29 = vld [vmem:[%s5993_s27] ss:$0 sm:$0xff] }
  0xee   : > { %v753_v8 = vpop.f32.mrb[0].mxu0 }
  0xef   : > { %v759_v10 = vmax.f32 %v753_v8, 0.0  ;;  %v4618_v11 = vpop.f32.mrb[1].mxu0 }
  0xf0   : > { %v756_v12 = vpop.f32.mrb[2].mxu0 }
  0xf1   : > { %v5294_v13 = vadd.f32 %v760_v9, %v759_v10  ;;  %v4619_v14 = vpop.f32.mrb[3].mxu0  ;;  %v5026_v9 = vld [vmem:[%s5989_s24 + $0x18] sm:$0xff]  }
  0xf3   : > { %v5301_v16 = vpack.c.bf16 %v5294_v13, %v5294_v13 }
  0xf5   : > { %4625 = vmatmul.mubr.msk.bf16.vlgmr.msra.gmra.mrb[0].mxu1 %vm786_vm2, %v5301_v16  ;;  %4633 = vmatmul.mubr.msk.bf16.vlgmr.msra.gmra.mrb[4].mxu0 %vm786_vm2, %v5301_v16 }
  0xf6   : > { %4637 = vmatpush3.bf16.msra.mxu1 %v5019_v15  ;;  %4640 = vmatprep.mubr.msk.bf16.mxu1 %vm5128_vm0, %v5127_v1  ;;  %v4213_v15 = vld [vmem:[%s5992_s26 + $0x1] ss:$0 sm:$0xff] }
  0xf7   : > { %4638 = vmatprep.subr.bf16.mxu1 %v5127_v1  ;;  %4646 = vmatprep.mubr.msk.bf16.mxu0 %vm5128_vm0, %v5127_v1 }
  0xfa   : > { %4639 = vmatpush3.bf16.msra.mxu1 %v5020_v17 }
  0xfb   : > { %4650 = vmatprep.subr.bf16.mxu1 %v5127_v1 }
  0xfd   : > { %4641 = vmatmul.mubr.msk.bf16.vlgmr.msra.gmra.mrb[4].mxu1 %vm786_vm2, %v5301_v16 }
  0xfe   : > { %4652 = vmatprep.mubr.msk.bf16.mxu1 %vm5128_vm0, %v5127_v1 }
 0x1c8   : > { %v824_v19 = vpop.f32.mrb[0].mxu1  ;;  %v887_v20 = vpop.f32.mrb[4].mxu0 }
 0x1c9   : > { %v888_v21 = vadd.f32 %v4189_v18, %v887_v20  ;;  %v4626_v22 = vpop.f32.mrb[1].mxu1  ;;  %v4634_v23 = vpop.f32.mrb[5].mxu0  ;;  %v825_v32 = vadd.f32 %v4185_v29, %v824_v19 }
 0x1ca   : > { %v827_v24 = vpop.f32.mrb[2].mxu1  ;;  %v890_v25 = vpop.f32.mrb[6].mxu0  ;;  %v4204_v23 = vld [vmem:[%s5993_s27 + $0x1] ss:$0 sm:$0xff] }
 0x1cb   : > { %v957_v26 = vpack.c.bf16 %v888_v21, %v888_v21  ;;  %v4627_v27 = vpop.f32.mrb[3].mxu1  ;;  %v4635_v28 = vpop.f32.mrb[7].mxu0  ;;  %v956_v38 = vpack.c.bf16 %v825_v32, %v825_v32 }
 0x1cd   : > { %v963_v30 = vsel %vm958_vm3, %v957_v26, 0 }
 0x1ce   : > { %4645 = vmatpush3.bf16.xpose.msra.mxu0 %v963_v30 }
 0x1cf   : > { %4656 = vmatprep.subr.bf16.mxu0 %v5127_v1 }
 0x1d0   : > { %v950_v33 = vpop.f32.mrb[4].mxu1 }
 0x1d1   : > { %v951_v34 = vadd.f32 %v4193_v31, %v950_v33  ;;  %v4642_v35 = vpop.f32.mrb[5].mxu1 }
 0x1d2   : > { %v953_v36 = vpop.f32.mrb[6].mxu1 }
 0x1d3   : > { %v1017_v39 = vpack.c.bf16 %v951_v34, %v951_v34  ;;  %v4643_v40 = vpop.f32.mrb[7].mxu1 }
 0x1d5   : > { %v1023_v41 = vsel %vm1021_vm4, %v1017_v39, 0  ;;  %4647 = vmatmul.mubr.msk.bf16.vlgmr.msra.gmra.mrb[8].mxu0 %vm958_vm3, %v956_v38 }
 0x1d6   : > { %4651 = vmatpush3.bf16.msra.mxu1 %v1023_v41  ;;  %4657 = vmatpush3.bf16.msra.mxu0 %v5021_v37  ;;  %v4228_v37 = vld [vmem:[%s5958_s9 + $0x4] sm:$0xf]  ;;  %v1066_v41 = vld [vmem:[%s5958_s9] sm:$0xf] }
 0x1d7   : > { %4658 = vmatprep.subr.bf16.mxu0 %v5127_v1  ;;  %4660 = vmatprep.mubr.msk.bf16.mxu0 %vm5128_vm0, %v5127_v1  ;;  %v1376_v38 = vsel %vm1021_vm4, %v4228_v37, 0 }
 0x1d8   : > { %4664 = vmatprep.subr.bf16.mxu1 %v5127_v1 }
 0x1da   : > { %4659 = vmatpush3.bf16.msra.mxu0 %v5022_v42 }
 0x1db   : > { %4672 = vmatprep.subr.bf16.mxu0 %v5127_v1 }
 0x1dd   : > { %4661 = vmatmul.mubr.msk.bf16.vlgmr.msra.gmra.mrb[12].mxu0 %vm786_vm2, %v5301_v16 }
 0x1de   : > { %4673 = vmatpush3.bf16.msra.mxu0 %v5023_v43  ;;  %4676 = vmatprep.mubr.msk.bf16.mxu0 %vm5128_vm0, %v5127_v1 }
 0x1df   : > { %4674 = vmatprep.subr.bf16.mxu0 %v5127_v1 }
 0x1e2   : > { %4675 = vmatpush3.bf16.msra.mxu0 %v5024_v44  ;;  %v1422_v44 = vsel %vm1021_vm4, %v1066_v41, 0 }
 0x1e3   : > { %4686 = vmatprep.subr.bf16.mxu0 %v5127_v1 }
 0x1e5   : > { %4677 = vmatmul.mubr.msk.bf16.vlgmr.msra.gmra.mrb[16].mxu0 %vm786_vm2, %v5301_v16 }
 0x1e6   : > { %4688 = vmatprep.mubr.msk.bf16.mxu0 %vm5128_vm0, %v5127_v1 }
 0x2a8   : > { %v999_v45 = vpop.f32.mrb[8].mxu0 }
 0x2a9   : > { %v4648_v46 = vpop.f32.mrb[9].mxu0  ;;  %v1005_v47 = vsel %vm958_vm3, %v999_v45, -inf }
 0x2aa   : > { %1006 = vmax.xlane.f32.xlu0 %v1005_v47  ;;  %v1002_v48 = vpop.f32.mrb[10].mxu0  ;;  %v5028_v47 = vld [vmem:[%s5989_s24 + $0x28] sm:$0xff]  }
 0x2ab   : > { %v4649_v49 = vpop.f32.mrb[11].mxu0 }
 0x2ac   : > { %v5029_v49 = vld [vmem:[%s5988_s29 + $0x20] sm:$0xff]  }
 0x2b0   : > { %v1126_v50 = vpop.f32.mrb[12].mxu0 }
 0x2b1   : > { %v4662_v51 = vpop.f32.mrb[13].mxu0  ;;  %v1127_v25 = vadd.f32 %v4204_v23, %v1126_v50 }
 0x2b2   : > { %v1129_v52 = vpop.f32.mrb[14].mxu0 }
 0x2b3   : > { %v4663_v53 = vpop.f32.mrb[15].mxu0  ;;  %v1262_v26 = vpack.c.bf16 %v1127_v25, %v1127_v25 }
 0x2b8   : > { %v1256_v55 = vpop.f32.mrb[16].mxu0 }
 0x2b9   : > { %v1257_v56 = vadd.f32 %v4222_v54, %v1256_v55  ;;  %v4678_v57 = vpop.f32.mrb[17].mxu0  ;;  %v5030_v54 = vld [vmem:[%s5988_s29 + $0x28] sm:$0xff]  }
 0x2ba   : > { %v1259_v58 = vpop.f32.mrb[18].mxu0 }
 0x2bb   : > { %v1322_v59 = vpack.c.bf16 %v1257_v56, %v1257_v56  ;;  %v4679_v60 = vpop.f32.mrb[19].mxu0  ;;  %v5031_v56 = vld [vmem:[%s5991_s3 + $0x20] sm:$0xff]  }
 0x2bc   : > { %v5032_v60 = vld [vmem:[%s5991_s3 + $0x28] sm:$0xff]  }
 0x2bd   : > { %v1327_v61 = vsel %vm1021_vm4, %v1322_v59, 0 }
 0x2be   : > { %4687 = vmatpush3.bf16.msra.mxu0 %v1327_v61  ;;  %v4245_v61 = vld [vmem:[%s5992_s26 + $0x2] ss:$0 sm:$0xff] }
 0x2bf   : > { %4698 = vmatprep.subr.bf16.mxu0 %v5127_v1 }
 0x337   : > { %v1007_v62 = vpop.xlane.xlu0 %1006 }
 0x338   : > { %v1008_v63 = vsub.f32 %v999_v45, %v1007_v62  ;;  %v5027_v45 = vld [vmem:[%s5989_s24 + $0x20] sm:$0xff]  }
 0x33a   : > { %v1009_v0 = vmul.f32 1.442695, %v1008_v63 }
 0x33c   : > { %5077 = vpow2.f32 %v1009_v0 }
 0x346   : > { %v5078_v2 = vpop.eup %5077 }
 0x347   : > { %v1011_v3 = vsel %vm958_vm3, %v5078_v2, 0.0 }
 0x348   : > { %1012 = vadd.xlane.f32.xlu0 %v1011_v3 }
 0x3d5   : > { %v1013_v4 = vpop.xlane.xlu0 %1012 }
 0x3d6   : > { %5079 = vrcp.f32 %v1013_v4 }
 0x3e0   : > { %v5080_v5 = vpop.eup %5079 }
 0x3e1   : > { %v1015_v6 = vmul.f32 %v5080_v5, %v5078_v2 }
 0x3e3   : > { %v1016_v8 = vpack.c.bf16 %v1015_v6, %v1015_v6 }
 0x3e5   : > { %4653 = vmatmul.mubr.msk.bf16.vlgmr.msra.gmra.mrb[8].mxu1 %vm958_vm3, %v1016_v8 }
 0x3e6   : > { %4665 = vmatpush3.bf16.msra.mxu1 %v5025_v7  ;;  %4668 = vmatprep.mubr.msk.bf16.mxu1 %vm5128_vm0, %v5127_v1 }
 0x3e7   : > { %4666 = vmatprep.subr.bf16.mxu1 %v5127_v1 }
 0x3ea   : > { %4667 = vmatpush3.bf16.msra.mxu1 %v5026_v9 }
 0x3eb   : > { %4680 = vmatprep.subr.bf16.mxu1 %v5127_v1 }
 0x3ed   : > { %4669 = vmatmul.mubr.msk.bf16.vlgmr.msra.gmra.mrb[12].mxu1 %vm786_vm2, %v5301_v16 }
 0x3ee   : > { %4682 = vmatprep.mubr.msk.bf16.mxu1 %vm5128_vm0, %v5127_v1 }
 0x4b8   : > { %v1059_v10 = vpop.f32.mrb[8].mxu1 }
 0x4b9   : > { %v4654_v11 = vpop.f32.mrb[9].mxu1  ;;  %v1065_v46 = vpack.c.bf16 %v1059_v10, %v1059_v10 }
 0x4ba   : > { %v1062_v12 = vpop.f32.mrb[10].mxu1  ;;  %v4236_v11 = vld [vmem:[%s5993_s27 + $0x2] ss:$0 sm:$0xff] }
 0x4bb   : > { %v4655_v14 = vpop.f32.mrb[11].mxu1 }
 0x4c0   : > { %v1191_v17 = vpop.f32.mrb[12].mxu1 }
 0x4c1   : > { %v1192_v18 = vadd.f32 %v4213_v15, %v1191_v17  ;;  %v4670_v19 = vpop.f32.mrb[13].mxu1 }
 0x4c2   : > { %v1194_v20 = vpop.f32.mrb[14].mxu1 }
 0x4c3   : > { %v1263_v21 = vpack.c.bf16 %v1192_v18, %v1192_v18  ;;  %v4671_v22 = vpop.f32.mrb[15].mxu1  ;;  %v4254_v20 = vld [vmem:[%s5957_s8 + $0x2] ss:$0 sm:$0xff] }
 0x4c5   : > { %v1268_v24 = vsel %vm958_vm3, %v1263_v21, 0 }
 0x4c6   : > { %4681 = vmatpush3.bf16.xpose.msra.mxu1 %v1268_v24 }
 0x4c7   : > { %4692 = vmatprep.subr.bf16.mxu1 %v5127_v1 }
 0x4cd   : > { %4683 = vmatmul.mubr.msk.bf16.vlgmr.msra.gmra.mrb[16].mxu1 %vm958_vm3, %v1262_v26 }
 0x4ce   : > { %4694 = vmatprep.mubr.msk.bf16.mxu1 %vm5128_vm0, %v5127_v1  ;;  %4693 = vmatpush3.bf16.msra.mxu1 %v1376_v38  ;;  %v4260_v38 = vld [vmem:[%s5958_s9 + $0x8] sm:$0xf] }
 0x4cf   : > { %4704 = vmatprep.subr.bf16.mxu1 %v5127_v1 }
 0x5a0   : > { %v1304_v27 = vpop.f32.mrb[16].mxu1 }
 0x5a1   : > { %v4684_v28 = vpop.f32.mrb[17].mxu1  ;;  %v1310_v29 = vsel %vm958_vm3, %v1304_v27, -inf }
 0x5a2   : > { %1311 = vmax.xlane.f32.xlu1 %v1310_v29  ;;  %v1307_v30 = vpop.f32.mrb[18].mxu1 }
 0x5a3   : > { %v4685_v31 = vpop.f32.mrb[19].mxu1 }
 0x62f   : > { %v1312_v32 = vpop.xlane.xlu1 %1311 }
 0x630   : > { %v1313_v33 = vsub.f32 %v1304_v27, %v1312_v32 }
 0x632   : > { %v1314_v34 = vmul.f32 1.442695, %v1313_v33 }
 0x634   : > { %5081 = vpow2.f32 %v1314_v34 }
 0x63e   : > { %v5082_v35 = vpop.eup %5081 }
 0x63f   : > { %v1316_v36 = vsel %vm958_vm3, %v5082_v35, 0.0 }
 0x640   : > { %1317 = vadd.xlane.f32.xlu1 %v1316_v36 }
 0x6cd   : > { %v1318_v39 = vpop.xlane.xlu1 %1317 }
 0x6ce   : > { %5083 = vrcp.f32 %v1318_v39  ;;  %v1773_v39 = vsel %vm1021_vm4, %v4260_v38, 0 }
 0x6d8   : > { %v5084_v40 = vpop.eup %5083 }
 0x6d9   : > { %v1320_v42 = vmul.f32 %v5084_v40, %v5082_v35 }
 0x6db   : > { %v1321_v43 = vpack.c.bf16 %v1320_v42, %v1320_v42 }
 0x6dd   : > { %4689 = vmatmul.mubr.msk.bf16.vlgmr.msra.gmra.mrb[20].mxu0 %vm958_vm3, %v1321_v43  ;;  %v5033_v43 = vld [vmem:[%s5988_s29 + $0x30] sm:$0xff]  }
 0x6de   : > { %4699 = vmatpush3.bf16.msra.mxu0 %v1422_v44  ;;  %4700 = vmatprep.mubr.msk.bf16.mxu0 %vm5128_vm0, %v5127_v1 }
 0x6df   : > { %4712 = vmatprep.subr.bf16.mxu0 %v5127_v1 }
 0x6e5   : > { %4701 = vmatmul.mubr.msk.bf16.vlgmr.msra.gmra.mrb[24].mxu0 %vm958_vm3, %v1065_v46  ;;  %v5035_v46 = vld [vmem:[%s5991_s3 + $0x30] sm:$0xff]  }
 0x6e6   : > { %4713 = vmatpush3.bf16.msra.mxu0 %v5027_v45  ;;  %4716 = vmatprep.mubr.msk.bf16.mxu0 %vm5128_vm0, %v5127_v1  ;;  %v5034_v45 = vld [vmem:[%s5988_s29 + $0x38] sm:$0xff]  }
 0x6e7   : > { %4714 = vmatprep.subr.bf16.mxu0 %v5127_v1 }
 0x6ea   : > { %4715 = vmatpush3.bf16.msra.mxu0 %v5028_v47  ;;  %v5036_v47 = vld [vmem:[%s5991_s3 + $0x38] sm:$0xff]  }
 0x6eb   : > { %4728 = vmatprep.subr.bf16.mxu0 %v5127_v1 }
 0x6ed   : > { %4717 = vmatmul.mubr.msk.bf16.vlgmr.msra.gmra.mrb[28].mxu0 %vm786_vm2, %v5301_v16 }
 0x6ee   : > { %4730 = vmatprep.mubr.msk.bf16.mxu0 %vm5128_vm0, %v5127_v1 }
 0x7b0   : > { %v1363_v48 = vpop.f32.mrb[20].mxu0 }
 0x7b1   : > { %v1369_v50 = vpack.c.bf16 %v1363_v48, %v1363_v48  ;;  %v4690_v51 = vpop.f32.mrb[21].mxu0 }
 0x7b2   : > { %v1366_v52 = vpop.f32.mrb[22].mxu0 }
 0x7b3   : > { %v4691_v53 = vpop.f32.mrb[23].mxu0  ;;  %4695 = vmatmul.mubr.msk.bf16.vlgmr.msra.gmra.mrb[20].mxu1 %vm958_vm3, %v1369_v50 }
 0x7b4   : > { %4705 = vmatpush3.bf16.msra.mxu1 %v5029_v49  ;;  %4708 = vmatprep.mubr.msk.bf16.mxu1 %vm5128_vm0, %v5127_v1  ;;  %v5037_v49 = vld [vmem:[%s5989_s24 + $0x30] sm:$0xff]  }
 0x7b5   : > { %4706 = vmatprep.subr.bf16.mxu1 %v5127_v1 }
 0x7b8   : > { %v1458_v55 = vpop.f32.mrb[24].mxu0  ;;  %4707 = vmatpush3.bf16.msra.mxu1 %v5030_v54  ;;  %v5038_v54 = vld [vmem:[%s5989_s24 + $0x38] sm:$0xff]  }
 0x7b9   : > { %v4702_v57 = vpop.f32.mrb[25].mxu0  ;;  %4720 = vmatprep.subr.bf16.mxu1 %v5127_v1 }
 0x7ba   : > { %v1461_v58 = vpop.f32.mrb[26].mxu0 }
 0x7bb   : > { %v4703_v59 = vpop.f32.mrb[27].mxu0  ;;  %4709 = vmatmul.mubr.msk.bf16.vlgmr.msra.gmra.mrb[24].mxu1 %vm786_vm2, %v5301_v16 }
 0x7bc   : > { %4721 = vmatpush3.bf16.msra.mxu1 %v5031_v56  ;;  %4724 = vmatprep.mubr.msk.bf16.mxu1 %vm5128_vm0, %v5127_v1  ;;  %v4285_v59 = vld [vmem:[%s5957_s8 + $0x3] ss:$0 sm:$0xff] }
 0x7bd   : > { %4722 = vmatprep.subr.bf16.mxu1 %v5127_v1 }
 0x7c0   : > { %v1588_v62 = vpop.f32.mrb[28].mxu0  ;;  %4723 = vmatpush3.bf16.msra.mxu1 %v5032_v60 }
 0x7c1   : > { %v1589_v63 = vadd.f32 %v4245_v61, %v1588_v62  ;;  %v4718_v0 = vpop.f32.mrb[29].mxu0  ;;  %4734 = vmatprep.subr.bf16.mxu1 %v5127_v1 }
 0x7c2   : > { %v1591_v2 = vpop.f32.mrb[30].mxu0 }
 0x7c3   : > { %v1660_v3 = vpack.c.bf16 %v1589_v63, %v1589_v63  ;;  %v4719_v4 = vpop.f32.mrb[31].mxu0  ;;  %4725 = vmatmul.mubr.msk.bf16.vlgmr.msra.gmra.mrb[28].mxu1 %vm786_vm2, %v5301_v16 }
 0x7c4   : > { %4736 = vmatprep.mubr.msk.bf16.mxu1 %vm5128_vm0, %v5127_v1 }
 0x7c5   : > { %v1665_v5 = vsel %vm958_vm3, %v1660_v3, 0 }
 0x7c6   : > { %4729 = vmatpush3.bf16.xpose.msra.mxu0 %v1665_v5 }
 0x7c7   : > { %4740 = vmatprep.subr.bf16.mxu0 %v5127_v1 }
 0x886   : > { %v1412_v6 = vpop.f32.mrb[20].mxu1 }
 0x887   : > { %v5455_v7 = vadd.f32 %v1458_v55, %v1412_v6  ;;  %v4696_v8 = vpop.f32.mrb[21].mxu1 }
 0x888   : > { %v1415_v9 = vpop.f32.mrb[22].mxu1 }
 0x889   : > { %v4697_v10 = vpop.f32.mrb[23].mxu1  ;;  %v4276_v9 = vld [vmem:[%s5992_s26 + $0x3] ss:$0 sm:$0xff] }
 0x88e   : > { %v1523_v12 = vpop.f32.mrb[24].mxu1 }
 0x88f   : > { %v1524_v14 = vadd.f32 %v4236_v11, %v1523_v12  ;;  %v4710_v15 = vpop.f32.mrb[25].mxu1 }
 0x890   : > { %v1526_v17 = vpop.f32.mrb[26].mxu1 }
 0x891   : > { %v1659_v18 = vpack.c.bf16 %v1524_v14, %v1524_v14  ;;  %v4711_v19 = vpop.f32.mrb[27].mxu1 }
 0x893   : > { %4731 = vmatmul.mubr.msk.bf16.vlgmr.msra.gmra.mrb[32].mxu0 %vm958_vm3, %v1659_v18  ;;  %v4267_v18 = vld [vmem:[%s5993_s27 + $0x3] ss:$0 sm:$0xff] }
 0x894   : > { %4742 = vmatprep.mubr.msk.bf16.mxu0 %vm5128_vm0, %v5127_v1  ;;  %4741 = vmatpush3.bf16.msra.mxu0 %v1773_v39 }
 0x895   : > { %4754 = vmatprep.subr.bf16.mxu0 %v5127_v1 }
 0x896   : > { %v1653_v21 = vpop.f32.mrb[28].mxu1 }
 0x897   : > { %v1654_v22 = vadd.f32 %v4254_v20, %v1653_v21  ;;  %v4726_v23 = vpop.f32.mrb[29].mxu1 }
 0x898   : > { %v1656_v24 = vpop.f32.mrb[30].mxu1 }
 0x899   : > { %v1719_v25 = vpack.c.bf16 %v1654_v22, %v1654_v22  ;;  %v4727_v26 = vpop.f32.mrb[31].mxu1 }
 0x89b   : > { %v1724_v27 = vsel %vm1021_vm4, %v1719_v25, 0 }
 0x89c   : > { %4735 = vmatpush3.bf16.msra.mxu1 %v1724_v27 }
 0x89d   : > { %4746 = vmatprep.subr.bf16.mxu1 %v5127_v1 }
 0x966   : > { %v1701_v28 = vpop.f32.mrb[32].mxu0 }
 0x967   : > { %v4732_v29 = vpop.f32.mrb[33].mxu0  ;;  %v1707_v30 = vsel %vm958_vm3, %v1701_v28, -inf }
 0x968   : > { %1708 = vmax.xlane.f32.xlu0 %v1707_v30  ;;  %v1704_v31 = vpop.f32.mrb[34].mxu0 }
 0x969   : > { %v4733_v32 = vpop.f32.mrb[35].mxu0  ;;  %v4291_v31 = vld [vmem:[%s5958_s9 + $0xc] sm:$0xf] }
 0x96a   : > { %v2125_v32 = vsel %vm1021_vm4, %v4291_v31, 0  ;;  %v5046_v31 = vld [vmem:[%s5991_s3 + $0x40] sm:$0xff]  }
 0x9f5   : > { %v1709_v33 = vpop.xlane.xlu0 %1708 }
 0x9f6   : > { %v1710_v34 = vsub.f32 %v1701_v28, %v1709_v33 }
 0x9f8   : > { %v1711_v35 = vmul.f32 1.442695, %v1710_v34 }
 0x9fa   : > { %5085 = vpow2.f32 %v1711_v35 }
 0xa04   : > { %v5086_v36 = vpop.eup %5085 }
 0xa05   : > { %v1713_v37 = vsel %vm958_vm3, %v5086_v36, 0.0 }
 0xa06   : > { %1714 = vadd.xlane.f32.xlu1 %v1713_v37 }
 0xa93   : > { %v1715_v40 = vpop.xlane.xlu1 %1714 }
 0xa94   : > { %5087 = vrcp.f32 %v1715_v40 }
 0xa9e   : > { %v5088_v41 = vpop.eup %5087 }
 0xa9f   : > { %v1717_v42 = vmul.f32 %v5088_v41, %v5086_v36 }
 0xaa1   : > { %v1718_v44 = vpack.c.bf16 %v1717_v42, %v1717_v42 }
 0xaa3   : > { %4737 = vmatmul.mubr.msk.bf16.vlgmr.msra.gmra.mrb[32].mxu1 %vm958_vm3, %v1718_v44 }
 0xaa4   : > { %4747 = vmatpush3.bf16.msra.mxu1 %v5033_v43  ;;  %4750 = vmatprep.mubr.msk.bf16.mxu1 %vm5128_vm0, %v5127_v1  ;;  %v4293_v43 = vld [vmem:[%s5959_s10] ss:$0 sm:$0xff] }
 0xaa5   : > { %4748 = vmatprep.subr.bf16.mxu1 %v5127_v1 }
 0xaa8   : > { %4749 = vmatpush3.bf16.msra.mxu1 %v5034_v45 }
 0xaa9   : > { %4762 = vmatprep.subr.bf16.mxu1 %v5127_v1 }
 0xaab   : > { %4751 = vmatmul.mubr.msk.bf16.vlgmr.msra.gmra.mrb[36].mxu1 %vm786_vm2, %v5301_v16 }
 0xaac   : > { %4763 = vmatpush3.bf16.msra.mxu1 %v5035_v46  ;;  %4766 = vmatprep.mubr.msk.bf16.mxu1 %vm5128_vm0, %v5127_v1 }
 0xaad   : > { %4764 = vmatprep.subr.bf16.mxu1 %v5127_v1 }
 0xab0   : > { %4765 = vmatpush3.bf16.msra.mxu1 %v5036_v47 }
 0xab1   : > { %4776 = vmatprep.subr.bf16.mxu1 %v5127_v1 }
 0xab3   : > { %4767 = vmatmul.mubr.msk.bf16.vlgmr.msra.gmra.mrb[40].mxu1 %vm786_vm2, %v5301_v16 }
 0xab4   : > { %4778 = vmatprep.mubr.msk.bf16.mxu1 %vm5128_vm0, %v5127_v1 }
 0xb76   : > { %v1760_v48 = vpop.f32.mrb[32].mxu1 }
 0xb77   : > { %v1766_v50 = vpack.c.bf16 %v1760_v48, %v1760_v48  ;;  %v4738_v51 = vpop.f32.mrb[33].mxu1 }
 0xb78   : > { %v1763_v52 = vpop.f32.mrb[34].mxu1 }
 0xb79   : > { %v4739_v53 = vpop.f32.mrb[35].mxu1  ;;  %4743 = vmatmul.mubr.msk.bf16.vlgmr.msra.gmra.mrb[36].mxu0 %vm958_vm3, %v1766_v50 }
 0xb7a   : > { %4755 = vmatpush3.bf16.msra.mxu0 %v5037_v49  ;;  %4758 = vmatprep.mubr.msk.bf16.mxu0 %vm5128_vm0, %v5127_v1 }
 0xb7b   : > { %4756 = vmatprep.subr.bf16.mxu0 %v5127_v1 }
 0xb7e   : > { %v1875_v55 = vpop.f32.mrb[36].mxu1  ;;  %4757 = vmatpush3.bf16.msra.mxu0 %v5038_v54 }
 0xb7f   : > { %v4752_v56 = vpop.f32.mrb[37].mxu1  ;;  %4770 = vmatprep.subr.bf16.mxu0 %v5127_v1 }
 0xb80   : > { %v1878_v57 = vpop.f32.mrb[38].mxu1  ;;  %v5039_v56 = vld [vmem:[%s5962_s13] sm:$0xff]  }
 0xb81   : > { %v4753_v58 = vpop.f32.mrb[39].mxu1  ;;  %4759 = vmatmul.mubr.msk.bf16.vlgmr.msra.gmra.mrb[40].mxu0 %vm786_vm2, %v5301_v16  ;;  %v5041_v57 = vld [vmem:[%s5964_s15] sm:$0xff]  }
 0xb82   : > { %4772 = vmatprep.mubr.msk.bf16.mxu0 %vm5128_vm0, %v5127_v1  ;;  %v5042_v58 = vld [vmem:[%s5964_s15 + $0x8] sm:$0xff]  }
 0xb86   : > { %v2005_v60 = vpop.f32.mrb[40].mxu1 }
 0xb87   : > { %v2006_v61 = vadd.f32 %v4285_v59, %v2005_v60  ;;  %v4768_v62 = vpop.f32.mrb[41].mxu1 }
 0xb88   : > { %v2008_v63 = vpop.f32.mrb[42].mxu1 }
 0xb89   : > { %v2071_v0 = vpack.c.bf16 %v2006_v61, %v2006_v61  ;;  %v4769_v2 = vpop.f32.mrb[43].mxu1  ;;  %v4294_v63 = vld [vmem:[%s5960_s11] ss:$0 sm:$0xff] }
 0xb8a   : > { %v4295_v2 = vld [vmem:[%s5961_s12] ss:$0 sm:$0xff] }
 0xb8b   : > { %v2076_v3 = vsel %vm1021_vm4, %v2071_v0, 0 }
 0xb8c   : > { %4777 = vmatpush3.bf16.msra.mxu1 %v2076_v3 }
 0xb8d   : > { %4788 = vmatprep.subr.bf16.mxu1 %v5127_v1 }
 0xc4c   : > { %v1809_v4 = vpop.f32.mrb[36].mxu0 }
 0xc4d   : > { %v1815_v16 = vadd.f32 %v1809_v4, %v5455_v7  ;;  %v4744_v5 = vpop.f32.mrb[37].mxu0  ;;  %v1876_v7 = vadd.f32 %v4267_v18, %v1875_v55  ;;  %v4300_v18 = vld [vmem:[%s5965_s16] ss:$0 sm:$0xff] }
 0xc4e   : > { %v1812_v6 = vpop.f32.mrb[38].mxu0  ;;  %v5043_v5 = vld [vmem:[%s5964_s15 + $0x10] sm:$0xff]  }
 0xc4f   : > { %v4745_v8 = vpop.f32.mrb[39].mxu0  ;;  %v2011_v20 = vpack.c.bf16 %v1876_v7, %v1876_v7  ;;  %v5044_v6 = vld [vmem:[%s5964_s15 + $0x18] sm:$0xff]  }
 0xc50   : > { %v4296_v8 = vld [vmem:[%s5963_s14] ss:$0 sm:$0xff] }
 0xc54   : > { %v1940_v10 = vpop.f32.mrb[40].mxu0 }
 0xc55   : > { %v1941_v11 = vadd.f32 %v4276_v9, %v1940_v10  ;;  %v4760_v12 = vpop.f32.mrb[41].mxu0 }
 0xc56   : > { %v1943_v14 = vpop.f32.mrb[42].mxu0 }
 0xc57   : > { %v2012_v15 = vpack.c.bf16 %v1941_v11, %v1941_v11  ;;  %v4761_v17 = vpop.f32.mrb[43].mxu0 }
 0xc59   : > { %v2017_v19 = vsel %vm958_vm3, %v2012_v15, 0 }
 0xc5a   : > { %4771 = vmatpush3.bf16.xpose.msra.mxu0 %v2017_v19 }
 0xc5b   : > { %4782 = vmatprep.subr.bf16.mxu0 %v5127_v1 }
 0xc61   : > { %4773 = vmatmul.mubr.msk.bf16.vlgmr.msra.gmra.mrb[44].mxu0 %vm958_vm3, %v2011_v20 }
 0xc62   : > { %4784 = vmatprep.mubr.msk.bf16.mxu0 %vm5128_vm0, %v5127_v1  ;;  %4783 = vmatpush3.bf16.msra.mxu0 %v2125_v32  ;;  %v5047_v32 = vld [vmem:[%s5988_s29 + $0x48] sm:$0xff]  }
 0xc63   : > { %4796 = vmatprep.subr.bf16.mxu0 %v5127_v1 }
 0xd34   : > { %v2053_v21 = vpop.f32.mrb[44].mxu0 }
 0xd35   : > { %v4774_v22 = vpop.f32.mrb[45].mxu0  ;;  %v2059_v23 = vsel %vm958_vm3, %v2053_v21, -inf }
 0xd36   : > { %2060 = vmax.xlane.f32.xlu0 %v2059_v23  ;;  %v2056_v24 = vpop.f32.mrb[46].mxu0 }
 0xd37   : > { %v4775_v25 = vpop.f32.mrb[47].mxu0 }
 0xdc3   : > { %v2061_v26 = vpop.xlane.xlu0 %2060 }
 0xdc4   : > { %v2062_v27 = vsub.f32 %v2053_v21, %v2061_v26 }
 0xdc6   : > { %v2063_v28 = vmul.f32 1.442695, %v2062_v27 }
 0xdc8   : > { %5089 = vpow2.f32 %v2063_v28 }
 0xdd2   : > { %v5090_v29 = vpop.eup %5089 }
 0xdd3   : > { %v2065_v30 = vsel %vm958_vm3, %v5090_v29, 0.0 }
 0xdd4   : > { %2066 = vadd.xlane.f32.xlu1 %v2065_v30  ;;  %v5045_v30 = vld [vmem:[%s5988_s29 + $0x40] sm:$0xff]  }
 0xe61   : > { %v2067_v33 = vpop.xlane.xlu1 %2066 }
 0xe62   : > { %5091 = vrcp.f32 %v2067_v33  ;;  %v5048_v33 = vld [vmem:[%s5991_s3 + $0x48] sm:$0xff]  }
 0xe6c   : > { %v5092_v34 = vpop.eup %5091 }
 0xe6d   : > { %v2069_v35 = vmul.f32 %v5092_v34, %v5090_v29 }
 0xe6f   : > { %v2070_v36 = vpack.c.bf16 %v2069_v35, %v2069_v35 }
 0xe71   : > { %4779 = vmatmul.mubr.msk.bf16.vlgmr.msra.gmra.mrb[44].mxu1 %vm958_vm3, %v2070_v36 }
 0xe72   : > { %4792 = vmatprep.mubr.msk.bf16.mxu1 %vm5128_vm0, %v5127_v1  ;;  %4789 = vmatpush3.bf16.msra.mxu1 %v5039_v56 }
 0xe73   : > { %4790 = vmatprep.subr.bf16.mxu1 %v5127_v1 }
 0xf44   : > { %v2112_v37 = vpop.f32.mrb[44].mxu1 }
 0xf45   : > { %v2118_v38 = vpack.c.bf16 %v2112_v37, %v2112_v37  ;;  %v4780_v39 = vpop.f32.mrb[45].mxu1 }
 0xf46   : > { %v2115_v40 = vpop.f32.mrb[46].mxu1 }
 0xf47   : > { %v4781_v41 = vpop.f32.mrb[47].mxu1  ;;  %4785 = vmatmul.mubr.msk.bf16.vlgmr.msra.gmra.mrb[48].mxu0 %vm958_vm3, %v2118_v38  ;;  %v4306_v38 = vld [vmem:[%s5966_s17] ss:$0 sm:$0xff] }
 0xf48   : > { %4804 = vmatprep.mubr.msk.bf16.mxu0 %vm5128_vm0, %v5127_v1  ;;  %4797 = vmatpush3.bf16.msra.mxu0 %v5041_v57  ;;  %v4307_v40 = vld [vmem:[%s5967_s18] ss:$0 sm:$0xff]  ;;  %v4322_v57 = vld [vmem:[%s5992_s26 + $0x4] ss:$0 sm:$0xff] }
 0xf49   : > { %4798 = vmatprep.subr.bf16.mxu0 %v5127_v1 }
 0xf4c   : > { %4799 = vmatpush3.bf16.msra.mxu0 %v5042_v58 }
 0xf4d   : > { %4800 = vmatprep.subr.bf16.mxu0 %v5127_v1 }
 0xf50   : > { %4801 = vmatpush3.bf16.msra.mxu0 %v5043_v5  ;;  %v5052_v5 = vld [vmem:[%s5988_s29 + $0x58] sm:$0xff]  }
 0xf51   : > { %4802 = vmatprep.subr.bf16.mxu0 %v5127_v1 }
 0xf54   : > { %4803 = vmatpush3.bf16.msra.mxu0 %v5044_v6  ;;  %v5053_v6 = vld [vmem:[%s5991_s3 + $0x50] sm:$0xff]  }
 0xf55   : > { %4824 = vmatprep.subr.bf16.mxu0 %v5127_v1 }
0x101a   : > { %v2161_v42 = vpop.f32.mrb[48].mxu0 }
0x101b   : > { %v2167_v44 = vadd.f32 %v2161_v42, %v1815_v16  ;;  %v4786_v45 = vpop.f32.mrb[49].mxu0 }
0x101c   : > { %v2164_v46 = vpop.f32.mrb[50].mxu0  ;;  %v5050_v45 = vld [vmem:[%s5989_s24 + $0x48] sm:$0xff]  }
0x101d   : > { %v2175_v47 = vadd.f32 %v4293_v43, %v2167_v44  ;;  %v4787_v48 = vpop.f32.mrb[51].mxu0  ;;  %v5049_v43 = vld [vmem:[%s5989_s24 + $0x40] sm:$0xff]  }
0x101e   : > { %v4331_v46 = vld [vmem:[%s5957_s8 + $0x4] ss:$0 sm:$0xff] }
0x101f   : > { %v2176_v49 = vadd.f32 %v2175_v47, %v5294_v13  ;;  %v5040_v13 = vld [vmem:[%s5962_s13 + $0x8] sm:$0xff]  }
0x1020   : > { %4791 = vmatpush3.bf16.msra.mxu1 %v5040_v13 }
0x1021   : > { %v2179_v50 = vsel %vm786_vm2, %v2176_v49, 0.0  ;;  %4808 = vmatprep.subr.bf16.mxu1 %v5127_v1 }
0x1022   : > { %2180 = vadd.xlane.f32.xlu0 %v2179_v50 }
0x10af   : > { %v2181_v51 = vpop.xlane.xlu0 %2180 }
0x10b0   : > { %v2183_v52 = vmul.f32 0.03125, %v2181_v51 }
0x10b2   : > { %v2184_v53 = vsub.f32 %v2176_v49, %v2183_v52 }
0x10b4   : > { %v2185_v54 = vmul.f32 %v2184_v53, %v2184_v53 }
0x10b6   : > { %v2186_v55 = vsel %vm786_vm2, %v2185_v54, 0.0 }
0x10b7   : > { %2187 = vadd.xlane.f32.xlu1 %v2186_v55 }
0x1144   : > { %v2188_v59 = vpop.xlane.xlu1 %2187 }
0x1145   : > { %v2189_v60 = vmul.f32 0.03125, %v2188_v59 }
0x1147   : > { %v2190_v61 = vadd.f32 1e-05, %v2189_v60 }
0x1149   : > { %5093 = vrsqrt.f32 %v2190_v61 }
0x1153   : > { %v5094_v62 = vpop.eup %5093 }
0x1154   : > { %v2192_v0 = vmul.f32 %v5094_v62, %v2184_v53 }
0x1156   : > { %v2199_v3 = vmul.f32 %v4294_v63, %v2192_v0  ;;  %v4313_v0 = vld [vmem:[%s5993_s27 + $0x4] ss:$0 sm:$0xff] }
0x1158   : > { %v2206_v4 = vadd.f32 %v4295_v2, %v2199_v3 }
0x115a   : > { %v2207_v16 = vpack.c.bf16 %v2206_v4, %v2206_v4 }
0x115c   : > { %4793 = vmatmul.mubr.msk.bf16.vlgmr.msra.gmra.mrb[48].mxu1 %vm786_vm2, %v2207_v16 }
0x115d   : > { %4812 = vmatprep.mubr.msk.bf16.mxu1 %vm5128_vm0, %v5127_v1  ;;  %4809 = vmatpush3.bf16.msra.mxu1 %v5045_v30 }
0x115e   : > { %4810 = vmatprep.subr.bf16.mxu1 %v5127_v1 }
0x1161   : > { %4811 = vmatpush3.bf16.msra.mxu1 %v5047_v32 }
0x1162   : > { %4816 = vmatprep.subr.bf16.mxu1 %v5127_v1 }
0x122f   : > { %v2268_v9 = vpop.f32.mrb[48].mxu1 }
0x1230   : > { %v2269_v10 = vadd.f32 %v4296_v8, %v2268_v9  ;;  %v4794_v11 = vpop.f32.mrb[49].mxu1  ;;  %v5054_v8 = vld [vmem:[%s5991_s3 + $0x58] sm:$0xff]  }
0x1231   : > { %v2271_v12 = vpop.f32.mrb[50].mxu1 }
0x1232   : > { %v2274_v14 = vmax.f32 %v2269_v10, 0.0  ;;  %v4795_v15 = vpop.f32.mrb[51].mxu1 }
0x1234   : > { %v2275_v17 = vpack.c.bf16 %v2274_v14, %v2274_v14 }
0x1236   : > { %4805 = vmatmul.mubr.msk.bf16.vlgmr.msra.gmra.mrb[52].mxu0 %vm2315_vm5, %v2275_v17 }
0x1237   : > { %4828 = vmatprep.mubr.msk.bf16.mxu0 %vm5128_vm0, %v5127_v1  ;;  %4825 = vmatpush3.bf16.msra.mxu0 %v5046_v31 }
0x1238   : > { %4826 = vmatprep.subr.bf16.mxu0 %v5127_v1 }
0x123b   : > { %4827 = vmatpush3.bf16.msra.mxu0 %v5048_v33 }
0x123c   : > { %4838 = vmatprep.subr.bf16.mxu0 %v5127_v1 }
0x1309   : > { %v2353_v19 = vpop.f32.mrb[52].mxu0 }
0x130a   : > { %v2354_v7 = vadd.f32 %v4300_v18, %v2353_v19  ;;  %v4806_v20 = vpop.f32.mrb[53].mxu0 }
0x130b   : > { %v2356_v21 = vpop.f32.mrb[54].mxu0 }
0x130c   : > { %v4807_v22 = vpop.f32.mrb[55].mxu0  ;;  %v2359_v23 = vadd.f32 %v2354_v7, %v2206_v4  ;;  %v5051_v4 = vld [vmem:[%s5988_s29 + $0x50] sm:$0xff]   ;;  %v4361_v7 = vld [vmem:[%s5957_s8 + $0x5] ss:$0 sm:$0xff] }
0x130e   : > { %v2362_v24 = vsel %vm786_vm2, %v2359_v23, 0.0 }
0x130f   : > { %2363 = vadd.xlane.f32.xlu0 %v2362_v24 }
0x139c   : > { %v2364_v25 = vpop.xlane.xlu0 %2363 }
0x139d   : > { %v2365_v26 = vmul.f32 0.03125, %v2364_v25 }
0x139f   : > { %v2366_v27 = vsub.f32 %v2359_v23, %v2365_v26 }
0x13a1   : > { %v2367_v28 = vmul.f32 %v2366_v27, %v2366_v27 }
0x13a3   : > { %v2368_v29 = vsel %vm786_vm2, %v2367_v28, 0.0 }
0x13a4   : > { %2369 = vadd.xlane.f32.xlu1 %v2368_v29 }
0x1431   : > { %v2370_v34 = vpop.xlane.xlu1 %2369 }
0x1432   : > { %v2371_v35 = vmul.f32 0.03125, %v2370_v34 }
0x1434   : > { %v2372_v36 = vadd.f32 1e-05, %v2371_v35  ;;  %v5055_v35 = vld [vmem:[%s5989_s24 + $0x50] sm:$0xff]  }
0x1436   : > { %5095 = vrsqrt.f32 %v2372_v36 }
0x1440   : > { %v5096_v37 = vpop.eup %5095 }
0x1441   : > { %v2374_v39 = vmul.f32 %v5096_v37, %v2366_v27  ;;  %v5056_v37 = vld [vmem:[%s5989_s24 + $0x58] sm:$0xff]  }
0x1443   : > { %v2381_v41 = vmul.f32 %v4306_v38, %v2374_v39 }
0x1445   : > { %v5619_v42 = vadd.f32 %v4307_v40, %v2381_v41 }
0x1447   : > { %v5626_v44 = vpack.c.bf16 %v5619_v42, %v5619_v42 }
0x1449   : > { %4813 = vmatmul.mubr.msk.bf16.vlgmr.msra.gmra.mrb[52].mxu1 %vm786_vm2, %v5626_v44  ;;  %4829 = vmatmul.mubr.msk.bf16.vlgmr.msra.gmra.mrb[56].mxu0 %vm786_vm2, %v5626_v44 }
0x144a   : > { %4817 = vmatpush3.bf16.msra.mxu1 %v5049_v43  ;;  %4820 = vmatprep.mubr.msk.bf16.mxu1 %vm5128_vm0, %v5127_v1  ;;  %v4352_v43 = vld [vmem:[%s5992_s26 + $0x5] ss:$0 sm:$0xff] }
0x144b   : > { %4818 = vmatprep.subr.bf16.mxu1 %v5127_v1  ;;  %4840 = vmatprep.mubr.msk.bf16.mxu0 %vm5128_vm0, %v5127_v1 }
0x144e   : > { %4819 = vmatpush3.bf16.msra.mxu1 %v5050_v45 }
0x144f   : > { %4832 = vmatprep.subr.bf16.mxu1 %v5127_v1 }
0x1451   : > { %4821 = vmatmul.mubr.msk.bf16.vlgmr.msra.gmra.mrb[56].mxu1 %vm786_vm2, %v5626_v44 }
0x1452   : > { %4834 = vmatprep.mubr.msk.bf16.mxu1 %vm5128_vm0, %v5127_v1 }
0x151c   : > { %v2452_v47 = vpop.f32.mrb[52].mxu1  ;;  %v2582_v48 = vpop.f32.mrb[56].mxu0 }
0x151d   : > { %v2583_v49 = vadd.f32 %v4331_v46, %v2582_v48  ;;  %v4814_v50 = vpop.f32.mrb[53].mxu1  ;;  %v4830_v51 = vpop.f32.mrb[57].mxu0  ;;  %v2453_v3 = vadd.f32 %v4313_v0, %v2452_v47  ;;  %v4367_v0 = vld [vmem:[%s5958_s9 + $0x14] sm:$0xf] }
0x151e   : > { %v2455_v52 = vpop.f32.mrb[54].mxu1  ;;  %v2585_v53 = vpop.f32.mrb[58].mxu0  ;;  %v4343_v51 = vld [vmem:[%s5993_s27 + $0x5] ss:$0 sm:$0xff] }
0x151f   : > { %v2648_v54 = vpack.c.bf16 %v2583_v49, %v2583_v49  ;;  %v4815_v55 = vpop.f32.mrb[55].mxu1  ;;  %v4831_v56 = vpop.f32.mrb[59].mxu0  ;;  %v2588_v16 = vpack.c.bf16 %v2453_v3, %v2453_v3 }
0x1521   : > { %v2653_v13 = vsel %vm1021_vm4, %v2648_v54, 0 }
0x1522   : > { %4839 = vmatpush3.bf16.msra.mxu0 %v2653_v13 }
0x1523   : > { %4852 = vmatprep.subr.bf16.mxu0 %v5127_v1 }
0x1524   : > { %v2517_v58 = vpop.f32.mrb[56].mxu1 }
0x1525   : > { %v2518_v59 = vadd.f32 %v4322_v57, %v2517_v58  ;;  %v4822_v60 = vpop.f32.mrb[57].mxu1 }
0x1526   : > { %v2520_v61 = vpop.f32.mrb[58].mxu1 }
0x1527   : > { %v2589_v62 = vpack.c.bf16 %v2518_v59, %v2518_v59  ;;  %v4823_v63 = vpop.f32.mrb[59].mxu1 }
0x1529   : > { %v2594_v2 = vsel %vm958_vm3, %v2589_v62, 0 }
0x152a   : > { %4833 = vmatpush3.bf16.xpose.msra.mxu1 %v2594_v2  ;;  %v3007_v2 = vsel %vm1021_vm4, %v4367_v0, 0 }
0x152b   : > { %4844 = vmatprep.subr.bf16.mxu1 %v5127_v1 }
0x1531   : > { %4835 = vmatmul.mubr.msk.bf16.vlgmr.msra.gmra.mrb[60].mxu1 %vm958_vm3, %v2588_v16  ;;  %v4337_v16 = vld [vmem:[%s5958_s9 + $0x10] sm:$0xf] }
0x1532   : > { %4845 = vmatpush3.bf16.msra.mxu1 %v5051_v4  ;;  %4848 = vmatprep.mubr.msk.bf16.mxu1 %vm5128_vm0, %v5127_v1 }
0x1533   : > { %4846 = vmatprep.subr.bf16.mxu1 %v5127_v1 }
0x1536   : > { %4847 = vmatpush3.bf16.msra.mxu1 %v5052_v5 }
0x1537   : > { %4860 = vmatprep.subr.bf16.mxu1 %v5127_v1 }
0x1539   : > { %4849 = vmatmul.mubr.msk.bf16.vlgmr.msra.gmra.mrb[64].mxu1 %vm786_vm2, %v5626_v44 }
0x153a   : > { %4861 = vmatpush3.bf16.msra.mxu1 %v5053_v6  ;;  %4864 = vmatprep.mubr.msk.bf16.mxu1 %vm5128_vm0, %v5127_v1 }
0x153b   : > { %4862 = vmatprep.subr.bf16.mxu1 %v5127_v1 }
0x153e   : > { %4863 = vmatpush3.bf16.msra.mxu1 %v5054_v8  ;;  %v3053_v8 = vsel %vm1021_vm4, %v4337_v16, 0 }
0x153f   : > { %4874 = vmatprep.subr.bf16.mxu1 %v5127_v1 }
0x1541   : > { %4865 = vmatmul.mubr.msk.bf16.vlgmr.msra.gmra.mrb[68].mxu1 %vm786_vm2, %v5626_v44 }
0x1542   : > { %4876 = vmatprep.mubr.msk.bf16.mxu1 %vm5128_vm0, %v5127_v1 }
0x1604   : > { %v2630_v9 = vpop.f32.mrb[60].mxu1 }
0x1605   : > { %v4836_v10 = vpop.f32.mrb[61].mxu1  ;;  %v2636_v11 = vsel %vm958_vm3, %v2630_v9, -inf }
0x1606   : > { %2637 = vmax.xlane.f32.xlu0 %v2636_v11  ;;  %v2633_v12 = vpop.f32.mrb[62].mxu1  ;;  %v5058_v11 = vld [vmem:[%s5989_s24 + $0x68] sm:$0xff]  }
0x1607   : > { %v4837_v14 = vpop.f32.mrb[63].mxu1 }
0x1608   : > { %v5059_v14 = vld [vmem:[%s5988_s29 + $0x60] sm:$0xff]  }
0x160c   : > { %v2757_v15 = vpop.f32.mrb[64].mxu1 }
0x160d   : > { %v4850_v17 = vpop.f32.mrb[65].mxu1  ;;  %v2758_v53 = vadd.f32 %v4343_v51, %v2757_v15 }
0x160e   : > { %v2760_v18 = vpop.f32.mrb[66].mxu1 }
0x160f   : > { %v4851_v19 = vpop.f32.mrb[67].mxu1  ;;  %v2893_v54 = vpack.c.bf16 %v2758_v53, %v2758_v53 }
0x1614   : > { %v2887_v20 = vpop.f32.mrb[68].mxu1 }
0x1615   : > { %v2888_v21 = vadd.f32 %v4361_v7, %v2887_v20  ;;  %v4866_v22 = vpop.f32.mrb[69].mxu1  ;;  %v5060_v7 = vld [vmem:[%s5988_s29 + $0x68] sm:$0xff]  }
0x1616   : > { %v2890_v23 = vpop.f32.mrb[70].mxu1 }
0x1617   : > { %v2953_v24 = vpack.c.bf16 %v2888_v21, %v2888_v21  ;;  %v4867_v25 = vpop.f32.mrb[71].mxu1  ;;  %v5061_v21 = vld [vmem:[%s5991_s3 + $0x60] sm:$0xff]  }
0x1618   : > { %v5062_v25 = vld [vmem:[%s5991_s3 + $0x68] sm:$0xff]  }
0x1619   : > { %v2958_v26 = vsel %vm1021_vm4, %v2953_v24, 0 }
0x161a   : > { %4875 = vmatpush3.bf16.msra.mxu1 %v2958_v26  ;;  %v4384_v26 = vld [vmem:[%s5992_s26 + $0x6] ss:$0 sm:$0xff] }
0x161b   : > { %4886 = vmatprep.subr.bf16.mxu1 %v5127_v1 }
0x1693   : > { %v2638_v27 = vpop.xlane.xlu0 %2637 }
0x1694   : > { %v2639_v28 = vsub.f32 %v2630_v9, %v2638_v27  ;;  %v5057_v9 = vld [vmem:[%s5989_s24 + $0x60] sm:$0xff]  }
0x1696   : > { %v2640_v29 = vmul.f32 1.442695, %v2639_v28 }
0x1698   : > { %5097 = vpow2.f32 %v2640_v29 }
0x16a2   : > { %v5098_v30 = vpop.eup %5097 }
0x16a3   : > { %v2642_v31 = vsel %vm958_vm3, %v5098_v30, 0.0 }
0x16a4   : > { %2643 = vadd.xlane.f32.xlu1 %v2642_v31 }
0x1731   : > { %v2644_v32 = vpop.xlane.xlu1 %2643 }
0x1732   : > { %5099 = vrcp.f32 %v2644_v32 }
0x173c   : > { %v5100_v33 = vpop.eup %5099 }
0x173d   : > { %v2646_v34 = vmul.f32 %v5100_v33, %v5098_v30 }
0x173f   : > { %v2647_v36 = vpack.c.bf16 %v2646_v34, %v2646_v34 }
0x1741   : > { %4841 = vmatmul.mubr.msk.bf16.vlgmr.msra.gmra.mrb[60].mxu0 %vm958_vm3, %v2647_v36 }
0x1742   : > { %4853 = vmatpush3.bf16.msra.mxu0 %v5055_v35  ;;  %4856 = vmatprep.mubr.msk.bf16.mxu0 %vm5128_vm0, %v5127_v1 }
0x1743   : > { %4854 = vmatprep.subr.bf16.mxu0 %v5127_v1 }
0x1746   : > { %4855 = vmatpush3.bf16.msra.mxu0 %v5056_v37 }
0x1747   : > { %4868 = vmatprep.subr.bf16.mxu0 %v5127_v1 }
0x1749   : > { %4857 = vmatmul.mubr.msk.bf16.vlgmr.msra.gmra.mrb[64].mxu0 %vm786_vm2, %v5626_v44 }
0x174a   : > { %4870 = vmatprep.mubr.msk.bf16.mxu0 %vm5128_vm0, %v5127_v1 }
0x1814   : > { %v2689_v38 = vpop.f32.mrb[60].mxu0 }
0x1815   : > { %v4842_v39 = vpop.f32.mrb[61].mxu0  ;;  %v2695_v10 = vpack.c.bf16 %v2689_v38, %v2689_v38 }
0x1816   : > { %v2692_v40 = vpop.f32.mrb[62].mxu0  ;;  %v4375_v39 = vld [vmem:[%s5993_s27 + $0x6] ss:$0 sm:$0xff] }
0x1817   : > { %v4843_v41 = vpop.f32.mrb[63].mxu0 }
0x181c   : > { %v2822_v45 = vpop.f32.mrb[64].mxu0 }
0x181d   : > { %v2823_v46 = vadd.f32 %v4352_v43, %v2822_v45  ;;  %v4858_v47 = vpop.f32.mrb[65].mxu0 }
0x181e   : > { %v2825_v48 = vpop.f32.mrb[66].mxu0 }
0x181f   : > { %v2894_v49 = vpack.c.bf16 %v2823_v46, %v2823_v46  ;;  %v4859_v50 = vpop.f32.mrb[67].mxu0  ;;  %v4393_v48 = vld [vmem:[%s5957_s8 + $0x6] ss:$0 sm:$0xff] }
0x1821   : > { %v2899_v52 = vsel %vm958_vm3, %v2894_v49, 0 }
0x1822   : > { %4869 = vmatpush3.bf16.xpose.msra.mxu0 %v2899_v52 }
0x1823   : > { %4880 = vmatprep.subr.bf16.mxu0 %v5127_v1 }
0x1829   : > { %4871 = vmatmul.mubr.msk.bf16.vlgmr.msra.gmra.mrb[68].mxu0 %vm958_vm3, %v2893_v54 }
0x182a   : > { %4882 = vmatprep.mubr.msk.bf16.mxu0 %vm5128_vm0, %v5127_v1  ;;  %4881 = vmatpush3.bf16.msra.mxu0 %v3007_v2  ;;  %v4399_v2 = vld [vmem:[%s5958_s9 + $0x18] sm:$0xf] }
0x182b   : > { %4892 = vmatprep.subr.bf16.mxu0 %v5127_v1 }
0x18fc   : > { %v2935_v55 = vpop.f32.mrb[68].mxu0 }
0x18fd   : > { %v4872_v56 = vpop.f32.mrb[69].mxu0  ;;  %v2941_v13 = vsel %vm958_vm3, %v2935_v55, -inf }
0x18fe   : > { %2942 = vmax.xlane.f32.xlu0 %v2941_v13  ;;  %v2938_v57 = vpop.f32.mrb[70].mxu0 }
0x18ff   : > { %v4873_v58 = vpop.f32.mrb[71].mxu0 }
0x198b   : > { %v2943_v59 = vpop.xlane.xlu0 %2942 }
0x198c   : > { %v2944_v60 = vsub.f32 %v2935_v55, %v2943_v59 }
0x198e   : > { %v2945_v61 = vmul.f32 1.442695, %v2944_v60 }
0x1990   : > { %5101 = vpow2.f32 %v2945_v61 }
0x199a   : > { %v5102_v62 = vpop.eup %5101 }
0x199b   : > { %v2947_v63 = vsel %vm958_vm3, %v5102_v62, 0.0 }
0x199c   : > { %2948 = vadd.xlane.f32.xlu1 %v2947_v63 }
0x1a29   : > { %v2949_v3 = vpop.xlane.xlu1 %2948 }
0x1a2a   : > { %5103 = vrcp.f32 %v2949_v3  ;;  %v3404_v3 = vsel %vm1021_vm4, %v4399_v2, 0 }
0x1a34   : > { %v5104_v4 = vpop.eup %5103 }
0x1a35   : > { %v2951_v5 = vmul.f32 %v5104_v4, %v5102_v62 }
0x1a37   : > { %v2952_v6 = vpack.c.bf16 %v2951_v5, %v2951_v5 }
0x1a39   : > { %4877 = vmatmul.mubr.msk.bf16.vlgmr.msra.gmra.mrb[72].mxu1 %vm958_vm3, %v2952_v6  ;;  %v5063_v6 = vld [vmem:[%s5988_s29 + $0x70] sm:$0xff]  }
0x1a3a   : > { %4887 = vmatpush3.bf16.msra.mxu1 %v3053_v8  ;;  %4888 = vmatprep.mubr.msk.bf16.mxu1 %vm5128_vm0, %v5127_v1 }
0x1a3b   : > { %4900 = vmatprep.subr.bf16.mxu1 %v5127_v1 }
0x1a41   : > { %4889 = vmatmul.mubr.msk.bf16.vlgmr.msra.gmra.mrb[76].mxu1 %vm958_vm3, %v2695_v10  ;;  %v5065_v10 = vld [vmem:[%s5991_s3 + $0x70] sm:$0xff]  }
0x1a42   : > { %4901 = vmatpush3.bf16.msra.mxu1 %v5057_v9  ;;  %4904 = vmatprep.mubr.msk.bf16.mxu1 %vm5128_vm0, %v5127_v1  ;;  %v5064_v9 = vld [vmem:[%s5988_s29 + $0x78] sm:$0xff]  }
0x1a43   : > { %4902 = vmatprep.subr.bf16.mxu1 %v5127_v1 }
0x1a46   : > { %4903 = vmatpush3.bf16.msra.mxu1 %v5058_v11  ;;  %v5066_v11 = vld [vmem:[%s5991_s3 + $0x78] sm:$0xff]  }
0x1a47   : > { %4916 = vmatprep.subr.bf16.mxu1 %v5127_v1 }
0x1a49   : > { %4905 = vmatmul.mubr.msk.bf16.vlgmr.msra.gmra.mrb[80].mxu1 %vm786_vm2, %v5626_v44 }
0x1a4a   : > { %4918 = vmatprep.mubr.msk.bf16.mxu1 %vm5128_vm0, %v5127_v1 }
0x1b0c   : > { %v2994_v12 = vpop.f32.mrb[72].mxu1 }
0x1b0d   : > { %v3000_v15 = vpack.c.bf16 %v2994_v12, %v2994_v12  ;;  %v4878_v17 = vpop.f32.mrb[73].mxu1 }
0x1b0e   : > { %v2997_v18 = vpop.f32.mrb[74].mxu1 }
0x1b0f   : > { %v4879_v19 = vpop.f32.mrb[75].mxu1  ;;  %4883 = vmatmul.mubr.msk.bf16.vlgmr.msra.gmra.mrb[72].mxu0 %vm958_vm3, %v3000_v15 }
0x1b10   : > { %4893 = vmatpush3.bf16.msra.mxu0 %v5059_v14  ;;  %4896 = vmatprep.mubr.msk.bf16.mxu0 %vm5128_vm0, %v5127_v1  ;;  %v5067_v14 = vld [vmem:[%s5989_s24 + $0x70] sm:$0xff]  }
0x1b11   : > { %4894 = vmatprep.subr.bf16.mxu0 %v5127_v1 }
0x1b14   : > { %v3089_v20 = vpop.f32.mrb[76].mxu1  ;;  %4895 = vmatpush3.bf16.msra.mxu0 %v5060_v7  ;;  %v5068_v7 = vld [vmem:[%s5989_s24 + $0x78] sm:$0xff]  }
0x1b15   : > { %v4890_v22 = vpop.f32.mrb[77].mxu1  ;;  %4908 = vmatprep.subr.bf16.mxu0 %v5127_v1 }
0x1b16   : > { %v3092_v23 = vpop.f32.mrb[78].mxu1 }
0x1b17   : > { %v4891_v24 = vpop.f32.mrb[79].mxu1  ;;  %4897 = vmatmul.mubr.msk.bf16.vlgmr.msra.gmra.mrb[76].mxu0 %vm786_vm2, %v5626_v44 }
0x1b18   : > { %4909 = vmatpush3.bf16.msra.mxu0 %v5061_v21  ;;  %4912 = vmatprep.mubr.msk.bf16.mxu0 %vm5128_vm0, %v5127_v1  ;;  %v4424_v24 = vld [vmem:[%s5957_s8 + $0x7] ss:$0 sm:$0xff] }
0x1b19   : > { %4910 = vmatprep.subr.bf16.mxu0 %v5127_v1 }
0x1b1c   : > { %v3219_v27 = vpop.f32.mrb[80].mxu1  ;;  %4911 = vmatpush3.bf16.msra.mxu0 %v5062_v25 }
0x1b1d   : > { %v3220_v28 = vadd.f32 %v4384_v26, %v3219_v27  ;;  %v4906_v29 = vpop.f32.mrb[81].mxu1  ;;  %4922 = vmatprep.subr.bf16.mxu0 %v5127_v1 }
0x1b1e   : > { %v3222_v30 = vpop.f32.mrb[82].mxu1 }
0x1b1f   : > { %v3291_v31 = vpack.c.bf16 %v3220_v28, %v3220_v28  ;;  %v4907_v32 = vpop.f32.mrb[83].mxu1  ;;  %4913 = vmatmul.mubr.msk.bf16.vlgmr.msra.gmra.mrb[80].mxu0 %vm786_vm2, %v5626_v44 }
0x1b20   : > { %4924 = vmatprep.mubr.msk.bf16.mxu0 %vm5128_vm0, %v5127_v1 }
0x1b21   : > { %v3296_v33 = vsel %vm958_vm3, %v3291_v31, 0 }
0x1b22   : > { %4917 = vmatpush3.bf16.xpose.msra.mxu1 %v3296_v33 }
0x1b23   : > { %4928 = vmatprep.subr.bf16.mxu1 %v5127_v1 }
0x1be2   : > { %v3043_v34 = vpop.f32.mrb[72].mxu0 }
0x1be3   : > { %v5780_v35 = vadd.f32 %v3089_v20, %v3043_v34  ;;  %v4884_v36 = vpop.f32.mrb[73].mxu0 }
0x1be4   : > { %v3046_v37 = vpop.f32.mrb[74].mxu0 }
0x1be5   : > { %v4885_v38 = vpop.f32.mrb[75].mxu0  ;;  %v4415_v37 = vld [vmem:[%s5992_s26 + $0x7] ss:$0 sm:$0xff] }
0x1bea   : > { %v3154_v40 = vpop.f32.mrb[76].mxu0 }
0x1beb   : > { %v3155_v41 = vadd.f32 %v4375_v39, %v3154_v40  ;;  %v4898_v43 = vpop.f32.mrb[77].mxu0 }
0x1bec   : > { %v3157_v45 = vpop.f32.mrb[78].mxu0 }
0x1bed   : > { %v3290_v46 = vpack.c.bf16 %v3155_v41, %v3155_v41  ;;  %v4899_v47 = vpop.f32.mrb[79].mxu0 }
0x1bef   : > { %4919 = vmatmul.mubr.msk.bf16.vlgmr.msra.gmra.mrb[84].mxu1 %vm958_vm3, %v3290_v46  ;;  %v4406_v46 = vld [vmem:[%s5993_s27 + $0x7] ss:$0 sm:$0xff] }
0x1bf0   : > { %4930 = vmatprep.mubr.msk.bf16.mxu1 %vm5128_vm0, %v5127_v1  ;;  %4929 = vmatpush3.bf16.msra.mxu1 %v3404_v3 }
0x1bf1   : > { %4942 = vmatprep.subr.bf16.mxu1 %v5127_v1 }
0x1bf2   : > { %v3284_v49 = vpop.f32.mrb[80].mxu0 }
0x1bf3   : > { %v3285_v50 = vadd.f32 %v4393_v48, %v3284_v49  ;;  %v4914_v51 = vpop.f32.mrb[81].mxu0 }
0x1bf4   : > { %v3287_v52 = vpop.f32.mrb[82].mxu0 }
0x1bf5   : > { %v3350_v53 = vpack.c.bf16 %v3285_v50, %v3285_v50  ;;  %v4915_v54 = vpop.f32.mrb[83].mxu0 }
0x1bf7   : > { %v3355_v55 = vsel %vm1021_vm4, %v3350_v53, 0 }
0x1bf8   : > { %4923 = vmatpush3.bf16.msra.mxu0 %v3355_v55 }
0x1bf9   : > { %4934 = vmatprep.subr.bf16.mxu0 %v5127_v1 }
0x1cc2   : > { %v3332_v56 = vpop.f32.mrb[84].mxu1 }
0x1cc3   : > { %v4920_v13 = vpop.f32.mrb[85].mxu1  ;;  %v3338_v57 = vsel %vm958_vm3, %v3332_v56, -inf }
0x1cc4   : > { %3339 = vmax.xlane.f32.xlu0 %v3338_v57  ;;  %v3335_v58 = vpop.f32.mrb[86].mxu1 }
0x1cc5   : > { %v4921_v59 = vpop.f32.mrb[87].mxu1  ;;  %v4430_v58 = vld [vmem:[%s5958_s9 + $0x1c] sm:$0xf] }
0x1cc6   : > { %v3756_v59 = vsel %vm1021_vm4, %v4430_v58, 0 }
0x1d51   : > { %v3340_v60 = vpop.xlane.xlu0 %3339 }
0x1d52   : > { %v3341_v61 = vsub.f32 %v3332_v56, %v3340_v60 }
0x1d54   : > { %v3342_v62 = vmul.f32 1.442695, %v3341_v61 }
0x1d56   : > { %5105 = vpow2.f32 %v3342_v62 }
0x1d60   : > { %v5106_v63 = vpop.eup %5105 }
0x1d61   : > { %v3344_v0 = vsel %vm958_vm3, %v5106_v63, 0.0 }
0x1d62   : > { %3345 = vadd.xlane.f32.xlu1 %v3344_v0 }
0x1def   : > { %v3346_v4 = vpop.xlane.xlu1 %3345 }
0x1df0   : > { %5107 = vrcp.f32 %v3346_v4 }
0x1dfa   : > { %v5108_v16 = vpop.eup %5107 }
0x1dfb   : > { %v3348_v5 = vmul.f32 %v5108_v16, %v5106_v63 }
0x1dfd   : > { %v3349_v8 = vpack.c.bf16 %v3348_v5, %v3348_v5 }
0x1dff   : > { %4925 = vmatmul.mubr.msk.bf16.vlgmr.msra.gmra.mrb[84].mxu0 %vm958_vm3, %v3349_v8 }
0x1e00   : > { %4935 = vmatpush3.bf16.msra.mxu0 %v5063_v6  ;;  %4938 = vmatprep.mubr.msk.bf16.mxu0 %vm5128_vm0, %v5127_v1  ;;  %v4433_v6 = vld [vmem:[%s5959_s10 + $0x1] ss:$0 sm:$0xff] }
0x1e01   : > { %4936 = vmatprep.subr.bf16.mxu0 %v5127_v1 }
0x1e04   : > { %4937 = vmatpush3.bf16.msra.mxu0 %v5064_v9 }
0x1e05   : > { %4950 = vmatprep.subr.bf16.mxu0 %v5127_v1 }
0x1e07   : > { %4939 = vmatmul.mubr.msk.bf16.vlgmr.msra.gmra.mrb[88].mxu0 %vm786_vm2, %v5626_v44 }
0x1e08   : > { %4951 = vmatpush3.bf16.msra.mxu0 %v5065_v10  ;;  %4954 = vmatprep.mubr.msk.bf16.mxu0 %vm5128_vm0, %v5127_v1 }
0x1e09   : > { %4952 = vmatprep.subr.bf16.mxu0 %v5127_v1 }
0x1e0c   : > { %4953 = vmatpush3.bf16.msra.mxu0 %v5066_v11 }
0x1e0d   : > { %4964 = vmatprep.subr.bf16.mxu0 %v5127_v1 }
0x1e0f   : > { %4955 = vmatmul.mubr.msk.bf16.vlgmr.msra.gmra.mrb[92].mxu0 %vm786_vm2, %v5626_v44 }
0x1e10   : > { %4966 = vmatprep.mubr.msk.bf16.mxu0 %vm5128_vm0, %v5127_v1 }
0x1ed2   : > { %v3391_v12 = vpop.f32.mrb[84].mxu0 }
0x1ed3   : > { %v3397_v15 = vpack.c.bf16 %v3391_v12, %v3391_v12  ;;  %v4926_v17 = vpop.f32.mrb[85].mxu0 }
0x1ed4   : > { %v3394_v18 = vpop.f32.mrb[86].mxu0 }
0x1ed5   : > { %v4927_v19 = vpop.f32.mrb[87].mxu0  ;;  %4931 = vmatmul.mubr.msk.bf16.vlgmr.msra.gmra.mrb[88].mxu1 %vm958_vm3, %v3397_v15 }
0x1ed6   : > { %4943 = vmatpush3.bf16.msra.mxu1 %v5067_v14  ;;  %4946 = vmatprep.mubr.msk.bf16.mxu1 %vm5128_vm0, %v5127_v1 }
0x1ed7   : > { %4944 = vmatprep.subr.bf16.mxu1 %v5127_v1 }
0x1eda   : > { %v3506_v20 = vpop.f32.mrb[88].mxu0  ;;  %4945 = vmatpush3.bf16.msra.mxu1 %v5068_v7 }
0x1edb   : > { %v4940_v21 = vpop.f32.mrb[89].mxu0  ;;  %4958 = vmatprep.subr.bf16.mxu1 %v5127_v1 }
0x1edc   : > { %v3509_v22 = vpop.f32.mrb[90].mxu0  ;;  %v5069_v21 = vld [vmem:[%s5962_s13 + $0x10] sm:$0xff]  }
0x1edd   : > { %v4941_v23 = vpop.f32.mrb[91].mxu0  ;;  %4947 = vmatmul.mubr.msk.bf16.vlgmr.msra.gmra.mrb[92].mxu1 %vm786_vm2, %v5626_v44  ;;  %v5071_v22 = vld [vmem:[%s5964_s15 + $0x20] sm:$0xff]  }
0x1ede   : > { %4960 = vmatprep.mubr.msk.bf16.mxu1 %vm5128_vm0, %v5127_v1  ;;  %v5072_v23 = vld [vmem:[%s5964_s15 + $0x28] sm:$0xff]  }
0x1ee2   : > { %v3636_v25 = vpop.f32.mrb[92].mxu0 }
0x1ee3   : > { %v3637_v26 = vadd.f32 %v4424_v24, %v3636_v25  ;;  %v4956_v27 = vpop.f32.mrb[93].mxu0 }
0x1ee4   : > { %v3639_v28 = vpop.f32.mrb[94].mxu0 }
0x1ee5   : > { %v3702_v29 = vpack.c.bf16 %v3637_v26, %v3637_v26  ;;  %v4957_v30 = vpop.f32.mrb[95].mxu0  ;;  %v4436_v28 = vld [vmem:[%s5960_s11 + $0x1] ss:$0 sm:$0xff] }
0x1ee6   : > { %v4437_v30 = vld [vmem:[%s5961_s12 + $0x1] ss:$0 sm:$0xff] }
0x1ee7   : > { %v3707_v31 = vsel %vm1021_vm4, %v3702_v29, 0 }
0x1ee8   : > { %4965 = vmatpush3.bf16.msra.mxu0 %v3707_v31 }
0x1ee9   : > { %4976 = vmatprep.subr.bf16.mxu0 %v5127_v1 }
0x1fa8   : > { %v3440_v32 = vpop.f32.mrb[88].mxu1 }
0x1fa9   : > { %v3446_v44 = vadd.f32 %v3440_v32, %v5780_v35  ;;  %v4932_v33 = vpop.f32.mrb[89].mxu1  ;;  %v3507_v35 = vadd.f32 %v4406_v46, %v3506_v20  ;;  %v4456_v46 = vld [vmem:[%s5965_s16 + $0x1] ss:$0 sm:$0xff] }
0x1faa   : > { %v3443_v34 = vpop.f32.mrb[90].mxu1  ;;  %v5073_v33 = vld [vmem:[%s5964_s15 + $0x30] sm:$0xff]  }
0x1fab   : > { %v4933_v36 = vpop.f32.mrb[91].mxu1  ;;  %v3642_v48 = vpack.c.bf16 %v3507_v35, %v3507_v35  ;;  %v5074_v34 = vld [vmem:[%s5964_s15 + $0x38] sm:$0xff]  }
0x1fac   : > { %v4443_v36 = vld [vmem:[%s5963_s14 + $0x1] ss:$0 sm:$0xff] }
0x1fb0   : > { %v3571_v38 = vpop.f32.mrb[92].mxu1 }
0x1fb1   : > { %v3572_v39 = vadd.f32 %v4415_v37, %v3571_v38  ;;  %v4948_v40 = vpop.f32.mrb[93].mxu1 }
0x1fb2   : > { %v3574_v41 = vpop.f32.mrb[94].mxu1 }
0x1fb3   : > { %v3643_v43 = vpack.c.bf16 %v3572_v39, %v3572_v39  ;;  %v4949_v45 = vpop.f32.mrb[95].mxu1 }
0x1fb5   : > { %v3648_v47 = vsel %vm958_vm3, %v3643_v43, 0 }
0x1fb6   : > { %4959 = vmatpush3.bf16.xpose.msra.mxu1 %v3648_v47 }
0x1fb7   : > { %4970 = vmatprep.subr.bf16.mxu1 %v5127_v1 }
0x1fbd   : > { %4961 = vmatmul.mubr.msk.bf16.vlgmr.msra.gmra.mrb[96].mxu1 %vm958_vm3, %v3642_v48 }
0x1fbe   : > { %4972 = vmatprep.mubr.msk.bf16.mxu1 %vm5128_vm0, %v5127_v1  ;;  %4971 = vmatpush3.bf16.msra.mxu1 %v3756_v59 }
0x1fbf   : > { %4984 = vmatprep.subr.bf16.mxu1 %v5127_v1 }
0x2090   : > { %v3684_v49 = vpop.f32.mrb[96].mxu1 }
0x2091   : > { %v4962_v50 = vpop.f32.mrb[97].mxu1  ;;  %v3690_v51 = vsel %vm958_vm3, %v3684_v49, -inf }
0x2092   : > { %3691 = vmax.xlane.f32.xlu0 %v3690_v51  ;;  %v3687_v52 = vpop.f32.mrb[98].mxu1 }
0x2093   : > { %v4963_v53 = vpop.f32.mrb[99].mxu1 }
0x211f   : > { %v3692_v54 = vpop.xlane.xlu0 %3691 }
0x2120   : > { %v3693_v55 = vsub.f32 %v3684_v49, %v3692_v54 }
0x2122   : > { %v3694_v56 = vmul.f32 1.442695, %v3693_v55 }
0x2124   : > { %5109 = vpow2.f32 %v3694_v56 }
0x212e   : > { %v5110_v13 = vpop.eup %5109 }
0x212f   : > { %v3696_v57 = vsel %vm958_vm3, %v5110_v13, 0.0 }
0x2130   : > { %3697 = vadd.xlane.f32.xlu1 %v3696_v57 }
0x21bd   : > { %v3698_v60 = vpop.xlane.xlu1 %3697 }
0x21be   : > { %5111 = vrcp.f32 %v3698_v60 }
0x21c8   : > { %v5112_v61 = vpop.eup %5111 }
0x21c9   : > { %v3700_v62 = vmul.f32 %v5112_v61, %v5110_v13  ;;  %v4464_v61 = vld [vmem:[%s5966_s17 + $0x1] ss:$0 sm:$0xff] }
0x21cb   : > { %v3701_v63 = vpack.c.bf16 %v3700_v62, %v3700_v62 }
0x21cd   : > { %4967 = vmatmul.mubr.msk.bf16.vlgmr.msra.gmra.mrb[96].mxu0 %vm958_vm3, %v3701_v63  ;;  %v4465_v63 = vld [vmem:[%s5967_s18 + $0x1] ss:$0 sm:$0xff] }
0x21ce   : > { %4980 = vmatprep.mubr.msk.bf16.mxu0 %vm5128_vm0, %v5127_v1  ;;  %4977 = vmatpush3.bf16.msra.mxu0 %v5069_v21 }
0x21cf   : > { %4978 = vmatprep.subr.bf16.mxu0 %v5127_v1 }
0x22a0   : > { %v3743_v0 = vpop.f32.mrb[96].mxu0 }
0x22a1   : > { %v3749_v2 = vpack.c.bf16 %v3743_v0, %v3743_v0  ;;  %v4968_v3 = vpop.f32.mrb[97].mxu0 }
0x22a2   : > { %v3746_v4 = vpop.f32.mrb[98].mxu0 }
0x22a3   : > { %v4969_v16 = vpop.f32.mrb[99].mxu0  ;;  %4973 = vmatmul.mubr.msk.bf16.vlgmr.msra.gmra.mrb[100].mxu1 %vm958_vm3, %v3749_v2 }
0x22a4   : > { %4992 = vmatprep.mubr.msk.bf16.mxu1 %vm5128_vm0, %v5127_v1  ;;  %4985 = vmatpush3.bf16.msra.mxu1 %v5071_v22 }
0x22a5   : > { %4986 = vmatprep.subr.bf16.mxu1 %v5127_v1 }
0x22a8   : > { %4987 = vmatpush3.bf16.msra.mxu1 %v5072_v23  ;;  %v4122_v23 = vld [vmem:[%s5971_s22] sm:$0x1] }
0x22a9   : > { %4988 = vmatprep.subr.bf16.mxu1 %v5127_v1 }
0x22ac   : > { %4989 = vmatpush3.bf16.msra.mxu1 %v5073_v33 }
0x22ad   : > { %4990 = vmatprep.subr.bf16.mxu1 %v5127_v1 }
0x22b0   : > { %4991 = vmatpush3.bf16.msra.mxu1 %v5074_v34 }
0x2376   : > { %v3792_v5 = vpop.f32.mrb[100].mxu1 }
0x2377   : > { %v3798_v8 = vadd.f32 %v3792_v5, %v3446_v44  ;;  %v4974_v9 = vpop.f32.mrb[101].mxu1 }
0x2378   : > { %v3795_v10 = vpop.f32.mrb[102].mxu1  ;;  %v5075_v9 = vld [vmem:[%s5970_s21] sm:$0xff]  }
0x2379   : > { %v3807_v11 = vadd.f32 %v4433_v6, %v3798_v8  ;;  %v4975_v12 = vpop.f32.mrb[103].mxu1  ;;  %v5076_v10 = vld [vmem:[%s5970_s21 + $0x8] sm:$0xff]  }
0x237b   : > { %v3808_v14 = vadd.f32 %v3807_v11, %v5619_v42  ;;  %v5070_v42 = vld [vmem:[%s5962_s13 + $0x18] sm:$0xff]  }
0x237c   : > { %4979 = vmatpush3.bf16.msra.mxu0 %v5070_v42 }
0x237d   : > { %v3813_v15 = vsel %vm786_vm2, %v3808_v14, 0.0  ;;  %4996 = vmatprep.subr.bf16.mxu0 %v5127_v1 }
0x237e   : > { %3814 = vadd.xlane.f32.xlu0 %v3813_v15 }
0x240b   : > { %v3815_v17 = vpop.xlane.xlu0 %3814 }
0x240c   : > { %v3816_v18 = vmul.f32 0.03125, %v3815_v17  ;;  %v4466_v17 = vld [vmem:[%s5968_s19] ss:$0 sm:$0xff] }
0x240e   : > { %v3817_v19 = vsub.f32 %v3808_v14, %v3816_v18 }
0x2410   : > { %v3818_v7 = vmul.f32 %v3817_v19, %v3817_v19 }
0x2412   : > { %v3819_v20 = vsel %vm786_vm2, %v3818_v7, 0.0 }
0x2413   : > { %3820 = vadd.xlane.f32.xlu1 %v3819_v20 }
0x24a0   : > { %v3821_v24 = vpop.xlane.xlu1 %3820 }
0x24a1   : > { %v3822_v25 = vmul.f32 0.03125, %v3821_v24 }
0x24a3   : > { %v3823_v26 = vadd.f32 1e-05, %v3822_v25 }
0x24a5   : > { %5113 = vrsqrt.f32 %v3823_v26 }
0x24af   : > { %v5114_v27 = vpop.eup %5113 }
0x24b0   : > { %v3825_v29 = vmul.f32 %v5114_v27, %v3817_v19  ;;  %v4467_v19 = vld [vmem:[%s5969_s20] ss:$0 sm:$0xff] }
0x24b2   : > { %v3832_v31 = vmul.f32 %v4436_v28, %v3825_v29 }
0x24b4   : > { %v3839_v32 = vadd.f32 %v4437_v30, %v3832_v31 }
0x24b6   : > { %v3840_v44 = vpack.c.bf16 %v3839_v32, %v3839_v32 }
0x24b8   : > { %4981 = vmatmul.mubr.msk.bf16.vlgmr.msra.gmra.mrb[100].mxu0 %vm786_vm2, %v3840_v44 }
0x24b9   : > { %5000 = vmatprep.mubr.msk.bf16.mxu0 %vm5128_vm0, %v5127_v1  ;;  %4997 = vmatpush3.bf16.msra.mxu0 %v5075_v9 }
0x24ba   : > { %4998 = vmatprep.subr.bf16.mxu0 %v5127_v1 }
0x24bd   : > { %4999 = vmatpush3.bf16.msra.mxu0 %v5076_v10 }
0x258b   : > { %v3903_v37 = vpop.f32.mrb[100].mxu0 }
0x258c   : > { %v3904_v38 = vadd.f32 %v4443_v36, %v3903_v37  ;;  %v4982_v39 = vpop.f32.mrb[101].mxu0 }
0x258d   : > { %v3906_v40 = vpop.f32.mrb[102].mxu0 }
0x258e   : > { %v3909_v41 = vmax.f32 %v3904_v38, 0.0  ;;  %v4983_v43 = vpop.f32.mrb[103].mxu0 }
0x2590   : > { %v3910_v45 = vpack.c.bf16 %v3909_v41, %v3909_v41 }
0x2592   : > { %4993 = vmatmul.mubr.msk.bf16.vlgmr.msra.gmra.mrb[104].mxu1 %vm2315_vm5, %v3910_v45 }
0x2665   : > { %v3989_v47 = vpop.f32.mrb[104].mxu1 }
0x2666   : > { %v3990_v35 = vadd.f32 %v4456_v46, %v3989_v47  ;;  %v4994_v48 = vpop.f32.mrb[105].mxu1 }
0x2667   : > { %v3992_v49 = vpop.f32.mrb[106].mxu1 }
0x2668   : > { %v4995_v50 = vpop.f32.mrb[107].mxu1  ;;  %v3995_v51 = vadd.f32 %v3990_v35, %v3839_v32 }
0x266a   : > { %v4000_v52 = vsel %vm786_vm2, %v3995_v51, 0.0 }
0x266b   : > { %4001 = vadd.xlane.f32.xlu0 %v4000_v52 }
0x26f8   : > { %v4002_v53 = vpop.xlane.xlu0 %4001 }
0x26f9   : > { %v4003_v54 = vmul.f32 0.03125, %v4002_v53 }
0x26fb   : > { %v4004_v55 = vsub.f32 %v3995_v51, %v4003_v54 }
0x26fd   : > { %v4005_v56 = vmul.f32 %v4004_v55, %v4004_v55 }
0x26ff   : > { %v4006_v13 = vsel %vm786_vm2, %v4005_v56, 0.0 }
0x2700   : > { %4007 = vadd.xlane.f32.xlu1 %v4006_v13 }
0x278d   : > { %v4008_v57 = vpop.xlane.xlu1 %4007 }
0x278e   : > { %v4009_v58 = vmul.f32 0.03125, %v4008_v57 }
0x2790   : > { %v4010_v59 = vadd.f32 1e-05, %v4009_v58 }
0x2792   : > { %5115 = vrsqrt.f32 %v4010_v59 }
0x279c   : > { %v5116_v60 = vpop.eup %5115 }
0x279d   : > { %v4012_v62 = vmul.f32 %v5116_v60, %v4004_v55 }
0x279f   : > { %v4019_v0 = vmul.f32 %v4464_v61, %v4012_v62 }
0x27a1   : > { %v4026_v2 = vadd.f32 %v4465_v63, %v4019_v0 }
0x27a3   : > { %v4030_v3 = vsel %vm4029_vm6, %v4026_v2, 0.0 }
0x27a4   : > { %4031 = vadd.xlane.f32.xlu0 %v4030_v3 }
0x2831   : > { %v4032_v4 = vpop.xlane.xlu0 %4031 }
0x2832   : > { %v4033_v16 = vmul.f32 0.03125, %v4032_v4 }
0x2834   : > { %v4034_v5 = vsub.f32 %v4026_v2, %v4033_v16 }
0x2836   : > { %v4035_v6 = vmul.f32 %v4034_v5, %v4034_v5 }
0x2838   : > { %v4036_v8 = vsel %vm4029_vm6, %v4035_v6, 0.0 }
0x2839   : > { %4037 = vadd.xlane.f32.xlu1 %v4036_v8 }
0x28c6   : > { %v4038_v11 = vpop.xlane.xlu1 %4037 }
0x28c7   : > { %v4039_v12 = vmul.f32 0.03125, %v4038_v11 }
0x28c9   : > { %v4040_v14 = vadd.f32 1e-05, %v4039_v12 }
0x28cb   : > { %5117 = vrsqrt.f32 %v4040_v14 }
0x28d5   : > { %v5118_v15 = vpop.eup %5117 }
0x28d6   : > { %v4042_v18 = vmul.f32 %v5118_v15, %v4034_v5 }
0x28d8   : > { %v4049_v7 = vmul.f32 %v4466_v17, %v4042_v18 }
0x28da   : > { %v4056_v20 = vadd.f32 %v4467_v19, %v4049_v7 }
0x28dc   : > { %v4057_v21 = vpack.c.bf16 %v4056_v20, %v4056_v20 }
0x28de   : > { %v4063_v1 = vshrl.u32 %v4057_v21, 16 }
0x28e0   : > { %v4065_v42 = vrot.slane %v4063_v1, 3 }
0x28e2   : > { %5001 = vmatmul.mubr.msk.bf16.vlgmr.msra.gmra.mrb[104].mxu0 %vm786_vm2, %v4065_v42 }
0x29b5   : > { %v4115_v22 = vpop.f32.mrb[104].mxu0 }
0x29b6   : > { %v4121_v24 = vmax.f32 %v4115_v22, 0.0  ;;  %v5002_v25 = vpop.f32.mrb[105].mxu0 }
0x29b7   : > { %v4118_v26 = vpop.f32.mrb[106].mxu0 }
0x29b8   : > { %v5003_v27 = vpop.f32.mrb[107].mxu0  ;;  %v4123_v28 = vmul.f32 %v4122_v23, %v4121_v24 }
0x29ba   : > { %v4125_v29 = vsel %vm4124_vm7, %v4123_v28, 0.0 }
0x29bb   : > { %4126 = vadd.xlane.f32.xlu0 %v4125_v29 }
0x2a48   : > { %v4127_v30 = vpop.xlane.xlu0 %4126 }
0x2a49   : > { %4129 = vst.msk [vmem:[%s703_s7] sm:$0x1] %vm4128_vm8, %v4127_v30 }
0x2a4a PF: > { %s33_s4 = sadd.s32 1, %s5125_s4  }
0x2a4b   : > { %p30_p4 = scmp.ge.s32.totalorder %s33_s4, 4  }
0x2a4d   :  { %32 = sbr.rel (!%p30_p4) target bundleno = 9 (0x9), region = 200 }

</bundles_post_ra>
